<compile_context>
chip_gen: v5e
topology: v5e:2x2
jax: 0.10.0
libtpu: 0.0.40
codegen_flags: <defaults>
</compile_context>

<pallas_src>
import jax
import jax.numpy as jnp
from jax.experimental import pallas as pl
from jax.experimental.pallas import tpu as pltpu

# ----------------------------- configuration ------------------------------ #
B = 2                 # batch
IMG_C, IMG_H, IMG_W = 3, 16, 16
PATCH = 4
PH, PW = IMG_H // PATCH, IMG_W // PATCH
N_TOK = PH * PW       # image tokens
NC = 16               # cloud points
CLOUD_ENC = 16        # cloud_enc_dim
IMG_ENC = 16          # image_enc_dim
OBS_FEAT = 32         # obs_feature_dim
HIDDEN = 32           # hidden_dim (== obs_feature_dim, as in defaults 512==512)
NHEADS = 4
NLAYERS = 2           # num_attn_layers
FFN = 64              # dim_feedforward
NUM_ACTION = 8
ACTION_DIM = 6
L = NC + 1            # real sequence length (src + readout token)
L_PAD = NC + 8        # padded per-batch token rows (multiple of 8 sublanes)
INTERP_TAU = 0.1


# --------------------------- fused Pallas kernel --------------------------- #
def _rise2_kernel(
    patches_ref, coord_ref, cloud_ref,
    dense_w_ref, dense_b_ref,
    sp_w1_ref, sp_b1_ref, sp_w2_ref, sp_b2_ref,
    al_w1_ref, al_b1_ref, al_w2_ref, al_b2_ref, al_w3_ref, al_b3_ref,
    pos_w_ref, pos_b_ref, readout_ref,
    wqkv_ref, bqkv_ref, wo_ref, bo_ref, ln1_g_ref, ln1_b_ref,
    ff_w1_ref, ff_b1_ref, ff_w2_ref, ff_b2_ref, ln2_g_ref, ln2_b_ref,
    act_w1_ref, act_b1_ref, act_w2_ref, act_b2_ref,
    out_ref,
):
    f32 = jnp.float32

    def dot(a, bm):
        return jnp.dot(a, bm, preferred_element_type=f32)

    def dot_t(a, bm):
        # a @ bm.T via dot_general contraction on the last dims (no explicit transpose)
        return jax.lax.dot_general(a, bm, (((1,), (1,)), ((), ())),
                                   preferred_element_type=f32)

    def relu(x):
        return jnp.maximum(x, 0.0)

    def layernorm(x, g, bb, eps=1e-5):
        mu = jnp.mean(x, axis=-1, keepdims=True)
        xc = x - mu
        var = jnp.mean(xc * xc, axis=-1, keepdims=True)
        return xc * jax.lax.rsqrt(var + eps) * g + bb

    def softmax_rows(s):
        m = jnp.max(s, axis=-1, keepdims=True)
        p = jnp.exp(s - m)
        denom = jnp.sum(p, axis=-1, keepdims=True)
        return p * pl.reciprocal(denom, approx=True)     # EUP slot, co-issues free

    # ---- dense encoder: patchified image -> token features ----------------
    # TODO(synk): pretrained DINOv2/ResNet backbone replaced by patchify + linear.
    img_feat = relu(dot(patches_ref[...], dense_w_ref[...]) + dense_b_ref[...])   # (B*N_TOK, IMG_ENC)

    # ---- sparse encoder: pointwise MLP on cloud points ---------------------
    # TODO(synk): MinkowskiEngine sparse-conv encoder replaced by a pointwise MLP.
    cloud = cloud_ref[...]                               # (B*NC, 6) xyz+rgb
    cloud_xyz = cloud[:, 0:3]                            # (B*NC, 3)
    h = relu(dot(cloud, sp_w1_ref[...]) + sp_b1_ref[...])
    cloud_feat = dot(h, sp_w2_ref[...]) + sp_b2_ref[...]  # (B*NC, CLOUD_ENC)

    # ---- spatial aligner: softmax inverse-distance interpolation ----------
    # TODO(synk): custom interp_fn approximated by softmax inverse-distance interpolation.
    inv_tau = 1.0 / INTERP_TAU
    interp_parts = []
    for b in range(B):
        p_xyz = cloud_xyz[b * NC:(b + 1) * NC, :]        # (NC, 3)
        c_xyz = coord_ref[b]                             # (3, N_TOK) kept transposed
        f_img = img_feat[b * N_TOK:(b + 1) * N_TOK, :]   # (N_TOK, IMG_ENC)
        d2 = (jnp.sum(p_xyz * p_xyz, axis=-1, keepdims=True)
              - 2.0 * dot(p_xyz, c_xyz)
              + jnp.sum(c_xyz * c_xyz, axis=0, keepdims=True))
        w = softmax_rows(-d2 * inv_tau)
        interp_parts.append(dot(w, f_img))               # (NC, IMG_ENC)
    interp = jnp.concatenate(interp_parts, axis=0)       # (B*NC, IMG_ENC)

    # fused = [cloud_feat | interp]; fold the lane-concat into al_w1 by row-splitting it
    al_w1 = al_w1_ref[...]
    h = relu(dot(cloud_feat, al_w1[0:CLOUD_ENC, :])
             + dot(interp, al_w1[CLOUD_ENC:CLOUD_ENC + IMG_ENC, :])
             + al_b1_ref[...])
    h = relu(dot(h, al_w2_ref[...]) + al_b2_ref[...])
    src = dot(h, al_w3_ref[...]) + al_b3_ref[...]        # (B*NC, OBS_FEAT == HIDDEN)
    pos = dot(cloud_xyz, pos_w_ref[...]) + pos_b_ref[...]  # (B*NC, HIDDEN)

    # ---- token assembly: [cloud tokens | readout | pad] per batch ----------
    pad_rows = L_PAD - NC
    is_readout_row = jax.lax.broadcasted_iota(jnp.int32, (pad_rows, HIDDEN), 0) == 0
    readout_pos_block = jnp.where(is_readout_row, readout_ref[...], 0.0)   # row 0 = readout embed
    zeros_block = jnp.zeros((pad_rows, HIDDEN), f32)
    x = jnp.concatenate(
        [jnp.concatenate([src[b * NC:(b + 1) * NC, :], zeros_block], axis=0)
         for b in range(B)], axis=0)                     # (B*L_PAD, HIDDEN)
    pos_tok = jnp.concatenate(
        [jnp.concatenate([pos[b * NC:(b + 1) * NC, :], readout_pos_block], axis=0)
         for b in range(B)], axis=0)                     # (B*L_PAD, HIDDEN)

    # ---- static attention bias built in-kernel (generate_attn_mask + padding) ----
    rows = jax.lax.broadcasted_iota(jnp.int32, (L_PAD, L_PAD), 0)
    cols = jax.lax.broadcasted_iota(jnp.int32, (L_PAD, L_PAD), 1)
    # cloud rows attend to cloud cols; readout row (== NC) attends to all real cols;
    # padded rows/cols fully masked (padded rows still get a finite uniform softmax).
    allowed = (((rows < NC) & (cols < NC)) | (rows == NC)) & (cols <= NC)
    bias = jnp.where(allowed, 0.0, -1e9)

    dh = HIDDEN // NHEADS
    scale = 1.0 / float(dh) ** 0.5

    # ---- transformer encoder (DETR-style: q = k = src + pos, v = src) ------
    for li in range(NLAYERS):
        wqkv = wqkv_ref[li]                              # (HIDDEN, 3*HIDDEN) = [q|k|v]
        bqkv = bqkv_ref[li]                              # (1, 3*HIDDEN)
        wo = wo_ref[li]                                  # (HIDDEN, HIDDEN)
        qk_in = x + pos_tok
        qk = dot(qk_in, wqkv[:, 0:2 * HIDDEN]) + bqkv[:, 0:2 * HIDDEN]   # (B*L_PAD, 2H)
        v = dot(x, wqkv[:, 2 * HIDDEN:3 * HIDDEN]) + bqkv[:, 2 * HIDDEN:3 * HIDDEN]

        attn_parts = []
        for b in range(B):
            r0, r1 = b * L_PAD, (b + 1) * L_PAD
            q_b = qk[r0:r1, 0:HIDDEN]
            k_b = qk[r0:r1, HIDDEN:2 * HIDDEN]
            v_b = v[r0:r1, :]
            attn_b = jnp.zeros((L_PAD, HIDDEN), f32)
            for hh in range(NHEADS):
                c0, c1 = hh * dh, (hh + 1) * dh
                s = dot_t(q_b[:, c0:c1], k_b[:, c0:c1]) * scale + bias
                p = softmax_rows(s)
                o_h = dot(p, v_b[:, c0:c1])              # (L_PAD, dh)
                # fold head-concat into the output projection (row slice of wo)
                attn_b = attn_b + dot(o_h, wo[c0:c1, :])
            attn_parts.append(attn_b)
        attn = jnp.concatenate(attn_parts, axis=0) + bo_ref[li]

        x = layernorm(x + attn, ln1_g_ref[li], ln1_b_ref[li])
        ff = relu(dot(x, ff_w1_ref[li]) + ff_b1_ref[li])
        ff = dot(ff, ff_w2_ref[li]) + ff_b2_ref[li]
        x = layernorm(x + ff, ln2_g_ref[li], ln2_b_ref[li])

    # ---- action head (applied to all rows for sublane occupancy; only the
    #      readout row per batch is stored) ---------------------------------
    # TODO(synk): DiffusionUNetPolicy DDIM/DDPM sampling replaced by a deterministic MLP head.
    a = relu(dot(x, act_w1_ref[...]) + act_b1_ref[...])
    a = dot(a, act_w2_ref[...]) + act_b2_ref[...]        # (B*L_PAD, NUM_ACTION*ACTION_DIM)
    for b in range(B):
        row = b * L_PAD + NC                             # readout token row (8-aligned)
        out_ref[pl.ds(b, 1), :] = a[row:row + 1, :]


# ------------------------------ parameters --------------------------------- #
def _lin_init(key, fan_in, fan_out):
    kw, kb = jax.random.split(key)
    w = jax.random.normal(kw, (fan_in, fan_out), jnp.float32) / jnp.sqrt(float(fan_in))
    b = 0.01 * jax.random.normal(kb, (1, fan_out), jnp.float32)
    return w, b


def init_params(key):
    keys = iter(jax.random.split(key, 64))
    p = {}
    p["dense_w"], p["dense_b"] = _lin_init(next(keys), IMG_C * PATCH * PATCH, IMG_ENC)
    p["sp_w1"], p["sp_b1"] = _lin_init(next(keys), 6, CLOUD_ENC)
    p["sp_w2"], p["sp_b2"] = _lin_init(next(keys), CLOUD_ENC, CLOUD_ENC)
    fused = CLOUD_ENC + IMG_ENC
    p["al_w1"], p["al_b1"] = _lin_init(next(keys), fused, fused)
    p["al_w2"], p["al_b2"] = _lin_init(next(keys), fused, fused)
    p["al_w3"], p["al_b3"] = _lin_init(next(keys), fused, OBS_FEAT)
    p["pos_w"], p["pos_b"] = _lin_init(next(keys), 3, HIDDEN)
    p["readout_embed"] = jax.random.normal(next(keys), (1, HIDDEN), jnp.float32)

    # transformer layers, stacked along a leading layer axis; q|k|v packed
    wqkv, bqkv, wo, bo = [], [], [], []
    ln1_g, ln1_b, ff_w1, ff_b1, ff_w2, ff_b2, ln2_g, ln2_b = ([] for _ in range(8))
    for _ in range(NLAYERS):
        wq, bq = _lin_init(next(keys), HIDDEN, HIDDEN)
        wk, bk = _lin_init(next(keys), HIDDEN, HIDDEN)
        wv, bv = _lin_init(next(keys), HIDDEN, HIDDEN)
        wqkv.append(jnp.concatenate([wq, wk, wv], axis=1))        # (HIDDEN, 3*HIDDEN)
        bqkv.append(jnp.concatenate([bq, bk, bv], axis=1))        # (1, 3*HIDDEN)
        w, bb = _lin_init(next(keys), HIDDEN, HIDDEN)
        wo.append(w); bo.append(bb)
        ln1_g.append(jnp.ones((1, HIDDEN), jnp.float32))
        ln1_b.append(jnp.zeros((1, HIDDEN), jnp.float32))
        w1, b1 = _lin_init(next(keys), HIDDEN, FFN); ff_w1.append(w1); ff_b1.append(b1)
        w2, b2 = _lin_init(next(keys), FFN, HIDDEN); ff_w2.append(w2); ff_b2.append(b2)
        ln2_g.append(jnp.ones((1, HIDDEN), jnp.float32))
        ln2_b.append(jnp.zeros((1, HIDDEN), jnp.float32))
    p["wqkv"] = jnp.stack(wqkv); p["bqkv"] = jnp.stack(bqkv)
    p["wo"] = jnp.stack(wo); p["bo"] = jnp.stack(bo)
    p["ln1_g"] = jnp.stack(ln1_g); p["ln1_b"] = jnp.stack(ln1_b)
    p["ff_w1"] = jnp.stack(ff_w1); p["ff_b1"] = jnp.stack(ff_b1)
    p["ff_w2"] = jnp.stack(ff_w2); p["ff_b2"] = jnp.stack(ff_b2)
    p["ln2_g"] = jnp.stack(ln2_g); p["ln2_b"] = jnp.stack(ln2_b)

    p["act_w1"], p["act_b1"] = _lin_init(next(keys), HIDDEN, 64)
    p["act_w2"], p["act_b2"] = _lin_init(next(keys), 64, NUM_ACTION * ACTION_DIM)
    return p


# ------------------------------ forward pass ------------------------------- #
def rise2_forward(params, cloud, image, image_coord):
    b = image.shape[0]
    # Only tiny layout glue stays outside the fused kernel:
    patches = image.reshape(b, IMG_C, PH, PATCH, PW, PATCH)
    patches = patches.transpose(0, 2, 4, 1, 3, 5).reshape(b * PH * PW, IMG_C * PATCH * PATCH)
    cloud_flat = cloud.reshape(b * NC, 6)
    image_coord_flat = image_coord.reshape(b, 3, N_TOK)   # keep (B, 3, N) layout; handled in-kernel

    out = pl.pallas_call(
        _rise2_kernel,
        out_shape=jax.ShapeDtypeStruct((b, NUM_ACTION * ACTION_DIM), jnp.float32),
    )(
        patches, image_coord_flat, cloud_flat,
        params["dense_w"], params["dense_b"],
        params["sp_w1"], params["sp_b1"], params["sp_w2"], params["sp_b2"],
        params["al_w1"], params["al_b1"], params["al_w2"], params["al_b2"],
        params["al_w3"], params["al_b3"],
        params["pos_w"], params["pos_b"], params["readout_embed"],
        params["wqkv"], params["bqkv"], params["wo"], params["bo"],
        params["ln1_g"], params["ln1_b"],
        params["ff_w1"], params["ff_b1"], params["ff_w2"], params["ff_b2"],
        params["ln2_g"], params["ln2_b"],
        params["act_w1"], params["act_b1"], params["act_w2"], params["act_b2"],
    )
    return out.reshape(b, NUM_ACTION, ACTION_DIM)


# ---------------------------------- main ----------------------------------- #
if __name__ == "__main__":
    key = jax.random.PRNGKey(0)
    kp, kc, ki, kx = jax.random.split(key, 4)

    params = init_params(kp)
    cloud = jax.random.normal(kc, (B, NC, 6), jnp.float32)                 # xyz + rgb
    image = jax.random.normal(ki, (B, IMG_C, IMG_H, IMG_W), jnp.float32)   # NCHW
    image_coord = jax.random.normal(kx, (B, 3, PH, PW), jnp.float32)       # NCHW xyz map

    fwd = jax.jit(rise2_forward)
    action_pred = fwd(params, cloud, image, image_coord)
    action_pred = jax.block_until_ready(action_pred)

    assert action_pred.shape == (B, NUM_ACTION, ACTION_DIM)
    assert bool(jnp.all(jnp.isfinite(action_pred)))
    print("KERNEL_OK")
</pallas_src>

<mosaic_0001>
module attributes {stable_mosaic.version = 11 : i64} {
  func.func @_rise2_kernel(%arg0: memref<32x48xf32, #tpu.memory_space<vmem>>, %arg1: memref<2x3x16xf32, #tpu.memory_space<vmem>>, %arg2: memref<32x6xf32, #tpu.memory_space<vmem>>, %arg3: memref<48x16xf32, #tpu.memory_space<vmem>>, %arg4: memref<1x16xf32, #tpu.memory_space<vmem>>, %arg5: memref<6x16xf32, #tpu.memory_space<vmem>>, %arg6: memref<1x16xf32, #tpu.memory_space<vmem>>, %arg7: memref<16x16xf32, #tpu.memory_space<vmem>>, %arg8: memref<1x16xf32, #tpu.memory_space<vmem>>, %arg9: memref<32x32xf32, #tpu.memory_space<vmem>>, %arg10: memref<1x32xf32, #tpu.memory_space<vmem>>, %arg11: memref<32x32xf32, #tpu.memory_space<vmem>>, %arg12: memref<1x32xf32, #tpu.memory_space<vmem>>, %arg13: memref<32x32xf32, #tpu.memory_space<vmem>>, %arg14: memref<1x32xf32, #tpu.memory_space<vmem>>, %arg15: memref<3x32xf32, #tpu.memory_space<vmem>>, %arg16: memref<1x32xf32, #tpu.memory_space<vmem>>, %arg17: memref<1x32xf32, #tpu.memory_space<vmem>>, %arg18: memref<2x32x96xf32, #tpu.memory_space<vmem>>, %arg19: memref<2x1x96xf32, #tpu.memory_space<vmem>>, %arg20: memref<2x32x32xf32, #tpu.memory_space<vmem>>, %arg21: memref<2x1x32xf32, #tpu.memory_space<vmem>>, %arg22: memref<2x1x32xf32, #tpu.memory_space<vmem>>, %arg23: memref<2x1x32xf32, #tpu.memory_space<vmem>>, %arg24: memref<2x32x64xf32, #tpu.memory_space<vmem>>, %arg25: memref<2x1x64xf32, #tpu.memory_space<vmem>>, %arg26: memref<2x64x32xf32, #tpu.memory_space<vmem>>, %arg27: memref<2x1x32xf32, #tpu.memory_space<vmem>>, %arg28: memref<2x1x32xf32, #tpu.memory_space<vmem>>, %arg29: memref<2x1x32xf32, #tpu.memory_space<vmem>>, %arg30: memref<32x64xf32, #tpu.memory_space<vmem>>, %arg31: memref<1x64xf32, #tpu.memory_space<vmem>>, %arg32: memref<64x48xf32, #tpu.memory_space<vmem>>, %arg33: memref<1x48xf32, #tpu.memory_space<vmem>>, %arg34: memref<2x48xf32, #tpu.memory_space<vmem>>) attributes {dimension_semantics = [], scalar_prefetch = 0 : i64, scratch_operands = 0 : i64, tpu.core_type = #tpu.core_type<tc>} {
    %c0 = arith.constant 0 : index
    %c0_0 = arith.constant 0 : index
    %0 = vector.load %arg0[%c0, %c0_0] : memref<32x48xf32, #tpu.memory_space<vmem>>, vector<32x48xf32>
    %c0_1 = arith.constant 0 : index
    %c0_2 = arith.constant 0 : index
    %1 = vector.load %arg3[%c0_1, %c0_2] : memref<48x16xf32, #tpu.memory_space<vmem>>, vector<48x16xf32>
    %cst = arith.constant dense<0.000000e+00> : vector<32x16xf32>
    %2 = tpu.matmul %0, %1, %cst {dimension_numbers = #tpu.dot_dimension_numbers<[1], [0], [0], [1], [0, 0, 1, 1], [], []>} : vector<32x48xf32>, vector<48x16xf32>, vector<32x16xf32> -> vector<32x16xf32>
    %c0_3 = arith.constant 0 : index
    %c0_4 = arith.constant 0 : index
    %3 = vector.load %arg4[%c0_3, %c0_4] : memref<1x16xf32, #tpu.memory_space<vmem>>, vector<1x16xf32>
    %4 = vector.broadcast %3 : vector<1x16xf32> to vector<32x16xf32>
    %5 = arith.addf %2, %4 : vector<32x16xf32>
    %cst_5 = arith.constant 0.000000e+00 : f32
    %6 = vector.broadcast %cst_5 : f32 to vector<32x16xf32>
    %7 = arith.maximumf %5, %6 : vector<32x16xf32>
    %c0_6 = arith.constant 0 : index
    %c0_7 = arith.constant 0 : index
    %8 = vector.load %arg2[%c0_6, %c0_7] : memref<32x6xf32, #tpu.memory_space<vmem>>, vector<32x6xf32>
    %9 = vector.extract_strided_slice %8 {offsets = [0, 0], sizes = [32, 3], strides = [1, 1]} : vector<32x6xf32> to vector<32x3xf32>
    %c0_8 = arith.constant 0 : index
    %c0_9 = arith.constant 0 : index
    %10 = vector.load %arg5[%c0_8, %c0_9] : memref<6x16xf32, #tpu.memory_space<vmem>>, vector<6x16xf32>
    %cst_10 = arith.constant dense<0.000000e+00> : vector<32x16xf32>
    %11 = tpu.matmul %8, %10, %cst_10 {dimension_numbers = #tpu.dot_dimension_numbers<[1], [0], [0], [1], [0, 0, 1, 1], [], []>} : vector<32x6xf32>, vector<6x16xf32>, vector<32x16xf32> -> vector<32x16xf32>
    %c0_11 = arith.constant 0 : index
    %c0_12 = arith.constant 0 : index
    %12 = vector.load %arg6[%c0_11, %c0_12] : memref<1x16xf32, #tpu.memory_space<vmem>>, vector<1x16xf32>
    %13 = vector.broadcast %12 : vector<1x16xf32> to vector<32x16xf32>
    %14 = arith.addf %11, %13 : vector<32x16xf32>
    %cst_13 = arith.constant 0.000000e+00 : f32
    %15 = vector.broadcast %cst_13 : f32 to vector<32x16xf32>
    %16 = arith.maximumf %14, %15 : vector<32x16xf32>
    %c0_14 = arith.constant 0 : index
    %c0_15 = arith.constant 0 : index
    %17 = vector.load %arg7[%c0_14, %c0_15] : memref<16x16xf32, #tpu.memory_space<vmem>>, vector<16x16xf32>
    %cst_16 = arith.constant dense<0.000000e+00> : vector<32x16xf32>
    %18 = tpu.matmul %16, %17, %cst_16 {dimension_numbers = #tpu.dot_dimension_numbers<[1], [0], [0], [1], [0, 0, 1, 1], [], []>} : vector<32x16xf32>, vector<16x16xf32>, vector<32x16xf32> -> vector<32x16xf32>
    %c0_17 = arith.constant 0 : index
    %c0_18 = arith.constant 0 : index
    %19 = vector.load %arg8[%c0_17, %c0_18] : memref<1x16xf32, #tpu.memory_space<vmem>>, vector<1x16xf32>
    %20 = vector.broadcast %19 : vector<1x16xf32> to vector<32x16xf32>
    %21 = arith.addf %18, %20 : vector<32x16xf32>
    %22 = vector.extract_strided_slice %9 {offsets = [0, 0], sizes = [16, 3], strides = [1, 1]} : vector<32x3xf32> to vector<16x3xf32>
    %c0_19 = arith.constant 0 : index
    %c0_20 = arith.constant 0 : index
    %c0_21 = arith.constant 0 : index
    %23 = vector.load %arg1[%c0_19, %c0_20, %c0_21] : memref<2x3x16xf32, #tpu.memory_space<vmem>>, vector<1x3x16xf32>
    %24 = vector.shape_cast %23 : vector<1x3x16xf32> to vector<3x16xf32>
    %25 = vector.extract_strided_slice %7 {offsets = [0, 0], sizes = [16, 16], strides = [1, 1]} : vector<32x16xf32> to vector<16x16xf32>
    %26 = arith.mulf %22, %22 : vector<16x3xf32>
    %cst_22 = arith.constant dense<0.000000e+00> : vector<16xf32>
    %27 = vector.multi_reduction <add>, %26, %cst_22 [1] : vector<16x3xf32> to vector<16xf32>
    %28 = vector.shape_cast %27 : vector<16xf32> to vector<16x1xf32>
    %cst_23 = arith.constant dense<0.000000e+00> : vector<16x16xf32>
    %29 = tpu.matmul %22, %24, %cst_23 {dimension_numbers = #tpu.dot_dimension_numbers<[1], [0], [0], [1], [0, 0, 1, 1], [], []>} : vector<16x3xf32>, vector<3x16xf32>, vector<16x16xf32> -> vector<16x16xf32>
    %cst_24 = arith.constant 2.000000e+00 : f32
    %30 = vector.broadcast %cst_24 : f32 to vector<16x16xf32>
    %31 = arith.mulf %30, %29 : vector<16x16xf32>
    %32 = vector.broadcast %28 : vector<16x1xf32> to vector<16x16xf32>
    %33 = arith.subf %32, %31 : vector<16x16xf32>
    %34 = arith.mulf %24, %24 : vector<3x16xf32>
    %cst_25 = arith.constant dense<0.000000e+00> : vector<16xf32>
    %35 = vector.multi_reduction <add>, %34, %cst_25 [0] : vector<3x16xf32> to vector<16xf32>
    %36 = vector.shape_cast %35 : vector<16xf32> to vector<1x16xf32>
    %37 = vector.broadcast %36 : vector<1x16xf32> to vector<16x16xf32>
    %38 = arith.addf %33, %37 : vector<16x16xf32>
    %cst_26 = arith.constant 0.000000e+00 : f32
    %39 = vector.broadcast %cst_26 : f32 to vector<16x16xf32>
    %40 = arith.subf %39, %38 : vector<16x16xf32>
    %cst_27 = arith.constant 1.000000e+01 : f32
    %41 = vector.broadcast %cst_27 : f32 to vector<16x16xf32>
    %42 = arith.mulf %40, %41 : vector<16x16xf32>
    %cst_28 = arith.constant dense<0xFF800000> : vector<16xf32>
    %43 = vector.multi_reduction <maximumf>, %42, %cst_28 [1] : vector<16x16xf32> to vector<16xf32>
    %44 = vector.shape_cast %43 : vector<16xf32> to vector<16x1xf32>
    %45 = vector.broadcast %44 : vector<16x1xf32> to vector<16x16xf32>
    %46 = arith.subf %42, %45 : vector<16x16xf32>
    %47 = math.exp %46 : vector<16x16xf32>
    %cst_29 = arith.constant dense<0.000000e+00> : vector<16xf32>
    %48 = vector.multi_reduction <add>, %47, %cst_29 [1] : vector<16x16xf32> to vector<16xf32>
    %49 = vector.shape_cast %48 : vector<16xf32> to vector<16x1xf32>
    %50 = tpu.reciprocal %49 {approx = true} : vector<16x1xf32> -> vector<16x1xf32>
    %51 = vector.broadcast %50 : vector<16x1xf32> to vector<16x16xf32>
    %52 = arith.mulf %47, %51 : vector<16x16xf32>
    %cst_30 = arith.constant dense<0.000000e+00> : vector<16x16xf32>
    %53 = tpu.matmul %52, %25, %cst_30 {dimension_numbers = #tpu.dot_dimension_numbers<[1], [0], [0], [1], [0, 0, 1, 1], [], []>} : vector<16x16xf32>, vector<16x16xf32>, vector<16x16xf32> -> vector<16x16xf32>
    %54 = vector.extract_strided_slice %9 {offsets = [16, 0], sizes = [16, 3], strides = [1, 1]} : vector<32x3xf32> to vector<16x3xf32>
    %c1 = arith.constant 1 : index
    %c0_31 = arith.constant 0 : index
    %c0_32 = arith.constant 0 : index
    %55 = vector.load %arg1[%c1, %c0_31, %c0_32] : memref<2x3x16xf32, #tpu.memory_space<vmem>>, vector<1x3x16xf32>
    %56 = vector.shape_cast %55 : vector<1x3x16xf32> to vector<3x16xf32>
    %57 = vector.extract_strided_slice %7 {offsets = [16, 0], sizes = [16, 16], strides = [1, 1]} : vector<32x16xf32> to vector<16x16xf32>
    %58 = arith.mulf %54, %54 : vector<16x3xf32>
    %cst_33 = arith.constant dense<0.000000e+00> : vector<16xf32>
    %59 = vector.multi_reduction <add>, %58, %cst_33 [1] : vector<16x3xf32> to vector<16xf32>
    %60 = vector.shape_cast %59 : vector<16xf32> to vector<16x1xf32>
    %cst_34 = arith.constant dense<0.000000e+00> : vector<16x16xf32>
    %61 = tpu.matmul %54, %56, %cst_34 {dimension_numbers = #tpu.dot_dimension_numbers<[1], [0], [0], [1], [0, 0, 1, 1], [], []>} : vector<16x3xf32>, vector<3x16xf32>, vector<16x16xf32> -> vector<16x16xf32>
    %cst_35 = arith.constant 2.000000e+00 : f32
    %62 = vector.broadcast %cst_35 : f32 to vector<16x16xf32>
    %63 = arith.mulf %62, %61 : vector<16x16xf32>
    %64 = vector.broadcast %60 : vector<16x1xf32> to vector<16x16xf32>
    %65 = arith.subf %64, %63 : vector<16x16xf32>
    %66 = arith.mulf %56, %56 : vector<3x16xf32>
    %cst_36 = arith.constant dense<0.000000e+00> : vector<16xf32>
    %67 = vector.multi_reduction <add>, %66, %cst_36 [0] : vector<3x16xf32> to vector<16xf32>
    %68 = vector.shape_cast %67 : vector<16xf32> to vector<1x16xf32>
    %69 = vector.broadcast %68 : vector<1x16xf32> to vector<16x16xf32>
    %70 = arith.addf %65, %69 : vector<16x16xf32>
    %cst_37 = arith.constant 0.000000e+00 : f32
    %71 = vector.broadcast %cst_37 : f32 to vector<16x16xf32>
    %72 = arith.subf %71, %70 : vector<16x16xf32>
    %cst_38 = arith.constant 1.000000e+01 : f32
    %73 = vector.broadcast %cst_38 : f32 to vector<16x16xf32>
    %74 = arith.mulf %72, %73 : vector<16x16xf32>
    %cst_39 = arith.constant dense<0xFF800000> : vector<16xf32>
    %75 = vector.multi_reduction <maximumf>, %74, %cst_39 [1] : vector<16x16xf32> to vector<16xf32>
    %76 = vector.shape_cast %75 : vector<16xf32> to vector<16x1xf32>
    %77 = vector.broadcast %76 : vector<16x1xf32> to vector<16x16xf32>
    %78 = arith.subf %74, %77 : vector<16x16xf32>
    %79 = math.exp %78 : vector<16x16xf32>
    %cst_40 = arith.constant dense<0.000000e+00> : vector<16xf32>
    %80 = vector.multi_reduction <add>, %79, %cst_40 [1] : vector<16x16xf32> to vector<16xf32>
    %81 = vector.shape_cast %80 : vector<16xf32> to vector<16x1xf32>
    %82 = tpu.reciprocal %81 {approx = true} : vector<16x1xf32> -> vector<16x1xf32>
    %83 = vector.broadcast %82 : vector<16x1xf32> to vector<16x16xf32>
    %84 = arith.mulf %79, %83 : vector<16x16xf32>
    %cst_41 = arith.constant dense<0.000000e+00> : vector<16x16xf32>
    %85 = tpu.matmul %84, %57, %cst_41 {dimension_numbers = #tpu.dot_dimension_numbers<[1], [0], [0], [1], [0, 0, 1, 1], [], []>} : vector<16x16xf32>, vector<16x16xf32>, vector<16x16xf32> -> vector<16x16xf32>
    %86 = tpu.concatenate %53, %85 in 0 : vector<16x16xf32>, vector<16x16xf32> -> vector<32x16xf32>
    %c0_42 = arith.constant 0 : index
    %c0_43 = arith.constant 0 : index
    %87 = vector.load %arg9[%c0_42, %c0_43] : memref<32x32xf32, #tpu.memory_space<vmem>>, vector<32x32xf32>
    %88 = vector.extract_strided_slice %87 {offsets = [0, 0], sizes = [16, 32], strides = [1, 1]} : vector<32x32xf32> to vector<16x32xf32>
    %cst_44 = arith.constant dense<0.000000e+00> : vector<32x32xf32>
    %89 = tpu.matmul %21, %88, %cst_44 {dimension_numbers = #tpu.dot_dimension_numbers<[1], [0], [0], [1], [0, 0, 1, 1], [], []>} : vector<32x16xf32>, vector<16x32xf32>, vector<32x32xf32> -> vector<32x32xf32>
    %90 = vector.extract_strided_slice %87 {offsets = [16, 0], sizes = [16, 32], strides = [1, 1]} : vector<32x32xf32> to vector<16x32xf32>
    %cst_45 = arith.constant dense<0.000000e+00> : vector<32x32xf32>
    %91 = tpu.matmul %86, %90, %cst_45 {dimension_numbers = #tpu.dot_dimension_numbers<[1], [0], [0], [1], [0, 0, 1, 1], [], []>} : vector<32x16xf32>, vector<16x32xf32>, vector<32x32xf32> -> vector<32x32xf32>
    %92 = arith.addf %89, %91 : vector<32x32xf32>
    %c0_46 = arith.constant 0 : index
    %c0_47 = arith.constant 0 : index
    %93 = vector.load %arg10[%c0_46, %c0_47] : memref<1x32xf32, #tpu.memory_space<vmem>>, vector<1x32xf32>
    %94 = vector.broadcast %93 : vector<1x32xf32> to vector<32x32xf32>
    %95 = arith.addf %92, %94 : vector<32x32xf32>
    %cst_48 = arith.constant 0.000000e+00 : f32
    %96 = vector.broadcast %cst_48 : f32 to vector<32x32xf32>
    %97 = arith.maximumf %95, %96 : vector<32x32xf32>
    %c0_49 = arith.constant 0 : index
    %c0_50 = arith.constant 0 : index
    %98 = vector.load %arg11[%c0_49, %c0_50] : memref<32x32xf32, #tpu.memory_space<vmem>>, vector<32x32xf32>
    %cst_51 = arith.constant dense<0.000000e+00> : vector<32x32xf32>
    %99 = tpu.matmul %97, %98, %cst_51 {dimension_numbers = #tpu.dot_dimension_numbers<[1], [0], [0], [1], [0, 0, 1, 1], [], []>} : vector<32x32xf32>, vector<32x32xf32>, vector<32x32xf32> -> vector<32x32xf32>
    %c0_52 = arith.constant 0 : index
    %c0_53 = arith.constant 0 : index
    %100 = vector.load %arg12[%c0_52, %c0_53] : memref<1x32xf32, #tpu.memory_space<vmem>>, vector<1x32xf32>
    %101 = vector.broadcast %100 : vector<1x32xf32> to vector<32x32xf32>
    %102 = arith.addf %99, %101 : vector<32x32xf32>
    %cst_54 = arith.constant 0.000000e+00 : f32
    %103 = vector.broadcast %cst_54 : f32 to vector<32x32xf32>
    %104 = arith.maximumf %102, %103 : vector<32x32xf32>
    %c0_55 = arith.constant 0 : index
    %c0_56 = arith.constant 0 : index
    %105 = vector.load %arg13[%c0_55, %c0_56] : memref<32x32xf32, #tpu.memory_space<vmem>>, vector<32x32xf32>
    %cst_57 = arith.constant dense<0.000000e+00> : vector<32x32xf32>
    %106 = tpu.matmul %104, %105, %cst_57 {dimension_numbers = #tpu.dot_dimension_numbers<[1], [0], [0], [1], [0, 0, 1, 1], [], []>} : vector<32x32xf32>, vector<32x32xf32>, vector<32x32xf32> -> vector<32x32xf32>
    %c0_58 = arith.constant 0 : index
    %c0_59 = arith.constant 0 : index
    %107 = vector.load %arg14[%c0_58, %c0_59] : memref<1x32xf32, #tpu.memory_space<vmem>>, vector<1x32xf32>
    %108 = vector.broadcast %107 : vector<1x32xf32> to vector<32x32xf32>
    %109 = arith.addf %106, %108 : vector<32x32xf32>
    %c0_60 = arith.constant 0 : index
    %c0_61 = arith.constant 0 : index
    %110 = vector.load %arg15[%c0_60, %c0_61] : memref<3x32xf32, #tpu.memory_space<vmem>>, vector<3x32xf32>
    %cst_62 = arith.constant dense<0.000000e+00> : vector<32x32xf32>
    %111 = tpu.matmul %9, %110, %cst_62 {dimension_numbers = #tpu.dot_dimension_numbers<[1], [0], [0], [1], [0, 0, 1, 1], [], []>} : vector<32x3xf32>, vector<3x32xf32>, vector<32x32xf32> -> vector<32x32xf32>
    %c0_63 = arith.constant 0 : index
    %c0_64 = arith.constant 0 : index
    %112 = vector.load %arg16[%c0_63, %c0_64] : memref<1x32xf32, #tpu.memory_space<vmem>>, vector<1x32xf32>
    %113 = vector.broadcast %112 : vector<1x32xf32> to vector<32x32xf32>
    %114 = arith.addf %111, %113 : vector<32x32xf32>
    %115 = tpu.iota {dimensions = array<i32: 0>} : vector<8x32xi32>
    %c0_i32 = arith.constant 0 : i32
    %116 = vector.broadcast %c0_i32 : i32 to vector<8x32xi32>
    %117 = arith.cmpi eq, %115, %116 : vector<8x32xi32>
    %c0_65 = arith.constant 0 : index
    %c0_66 = arith.constant 0 : index
    %118 = vector.load %arg17[%c0_65, %c0_66] : memref<1x32xf32, #tpu.memory_space<vmem>>, vector<1x32xf32>
    %cst_67 = arith.constant 0.000000e+00 : f32
    %119 = vector.shape_cast %118 : vector<1x32xf32> to vector<1x32xf32>
    %120 = vector.broadcast %119 : vector<1x32xf32> to vector<8x32xf32>
    %121 = vector.broadcast %cst_67 : f32 to vector<8x32xf32>
    %122 = arith.select %117, %120, %121 : vector<8x32xi1>, vector<8x32xf32>
    %cst_68 = arith.constant 0.000000e+00 : f32
    %123 = vector.broadcast %cst_68 : f32 to vector<8x32xf32>
    %124 = vector.extract_strided_slice %109 {offsets = [0, 0], sizes = [16, 32], strides = [1, 1]} : vector<32x32xf32> to vector<16x32xf32>
    %125 = tpu.concatenate %124, %123 in 0 : vector<16x32xf32>, vector<8x32xf32> -> vector<24x32xf32>
    %126 = vector.extract_strided_slice %109 {offsets = [16, 0], sizes = [16, 32], strides = [1, 1]} : vector<32x32xf32> to vector<16x32xf32>
    %127 = tpu.concatenate %126, %123 in 0 : vector<16x32xf32>, vector<8x32xf32> -> vector<24x32xf32>
    %128 = tpu.concatenate %125, %127 in 0 : vector<24x32xf32>, vector<24x32xf32> -> vector<48x32xf32>
    %129 = vector.extract_strided_slice %114 {offsets = [0, 0], sizes = [16, 32], strides = [1, 1]} : vector<32x32xf32> to vector<16x32xf32>
    %130 = tpu.concatenate %129, %122 in 0 : vector<16x32xf32>, vector<8x32xf32> -> vector<24x32xf32>
    %131 = vector.extract_strided_slice %114 {offsets = [16, 0], sizes = [16, 32], strides = [1, 1]} : vector<32x32xf32> to vector<16x32xf32>
    %132 = tpu.concatenate %131, %122 in 0 : vector<16x32xf32>, vector<8x32xf32> -> vector<24x32xf32>
    %133 = tpu.concatenate %130, %132 in 0 : vector<24x32xf32>, vector<24x32xf32> -> vector<48x32xf32>
    %134 = tpu.iota {dimensions = array<i32: 0>} : vector<24x24xi32>
    %135 = tpu.iota {dimensions = array<i32: 1>} : vector<24x24xi32>
    %c16_i32 = arith.constant 16 : i32
    %136 = vector.broadcast %c16_i32 : i32 to vector<24x24xi32>
    %137 = arith.cmpi slt, %134, %136 : vector<24x24xi32>
    %c16_i32_69 = arith.constant 16 : i32
    %138 = vector.broadcast %c16_i32_69 : i32 to vector<24x24xi32>
    %139 = arith.cmpi slt, %135, %138 : vector<24x24xi32>
    %140 = arith.andi %137, %139 : vector<24x24xi1>
    %c16_i32_70 = arith.constant 16 : i32
    %141 = vector.broadcast %c16_i32_70 : i32 to vector<24x24xi32>
    %142 = arith.cmpi eq, %134, %141 : vector<24x24xi32>
    %143 = arith.ori %140, %142 : vector<24x24xi1>
    %c16_i32_71 = arith.constant 16 : i32
    %144 = vector.broadcast %c16_i32_71 : i32 to vector<24x24xi32>
    %145 = arith.cmpi sle, %135, %144 : vector<24x24xi32>
    %146 = arith.andi %143, %145 : vector<24x24xi1>
    %cst_72 = arith.constant 0.000000e+00 : f32
    %cst_73 = arith.constant -1.000000e+09 : f32
    %147 = vector.broadcast %cst_72 : f32 to vector<24x24xf32>
    %148 = vector.broadcast %cst_73 : f32 to vector<24x24xf32>
    %149 = arith.select %146, %147, %148 : vector<24x24xi1>, vector<24x24xf32>
    %c0_74 = arith.constant 0 : index
    %c0_75 = arith.constant 0 : index
    %c0_76 = arith.constant 0 : index
    %150 = vector.load %arg18[%c0_74, %c0_75, %c0_76] : memref<2x32x96xf32, #tpu.memory_space<vmem>>, vector<1x32x96xf32>
    %151 = vector.shape_cast %150 : vector<1x32x96xf32> to vector<32x96xf32>
    %c0_77 = arith.constant 0 : index
    %c0_78 = arith.constant 0 : index
    %c0_79 = arith.constant 0 : index
    %152 = vector.load %arg19[%c0_77, %c0_78, %c0_79] : memref<2x1x96xf32, #tpu.memory_space<vmem>>, vector<1x1x96xf32>
    %153 = vector.shape_cast %152 : vector<1x1x96xf32> to vector<1x96xf32>
    %c0_80 = arith.constant 0 : index
    %c0_81 = arith.constant 0 : index
    %c0_82 = arith.constant 0 : index
    %154 = vector.load %arg20[%c0_80, %c0_81, %c0_82] : memref<2x32x32xf32, #tpu.memory_space<vmem>>, vector<1x32x32xf32>
    %155 = vector.shape_cast %154 : vector<1x32x32xf32> to vector<32x32xf32>
    %156 = arith.addf %128, %133 : vector<48x32xf32>
    %157 = vector.extract_strided_slice %151 {offsets = [0, 0], sizes = [32, 64], strides = [1, 1]} : vector<32x96xf32> to vector<32x64xf32>
    %cst_83 = arith.constant dense<0.000000e+00> : vector<48x64xf32>
    %158 = tpu.matmul %156, %157, %cst_83 {dimension_numbers = #tpu.dot_dimension_numbers<[1], [0], [0], [1], [0, 0, 1, 1], [], []>} : vector<48x32xf32>, vector<32x64xf32>, vector<48x64xf32> -> vector<48x64xf32>
    %159 = vector.extract_strided_slice %153 {offsets = [0, 0], sizes = [1, 64], strides = [1, 1]} : vector<1x96xf32> to vector<1x64xf32>
    %160 = vector.broadcast %159 : vector<1x64xf32> to vector<48x64xf32>
    %161 = arith.addf %158, %160 : vector<48x64xf32>
    %162 = vector.extract_strided_slice %151 {offsets = [0, 64], sizes = [32, 32], strides = [1, 1]} : vector<32x96xf32> to vector<32x32xf32>
    %cst_84 = arith.constant dense<0.000000e+00> : vector<48x32xf32>
    %163 = tpu.matmul %128, %162, %cst_84 {dimension_numbers = #tpu.dot_dimension_numbers<[1], [0], [0], [1], [0, 0, 1, 1], [], []>} : vector<48x32xf32>, vector<32x32xf32>, vector<48x32xf32> -> vector<48x32xf32>
    %164 = vector.extract_strided_slice %153 {offsets = [0, 64], sizes = [1, 32], strides = [1, 1]} : vector<1x96xf32> to vector<1x32xf32>
    %165 = vector.broadcast %164 : vector<1x32xf32> to vector<48x32xf32>
    %166 = arith.addf %163, %165 : vector<48x32xf32>
    %167 = vector.extract_strided_slice %161 {offsets = [0, 0], sizes = [24, 32], strides = [1, 1]} : vector<48x64xf32> to vector<24x32xf32>
    %168 = vector.extract_strided_slice %161 {offsets = [0, 32], sizes = [24, 32], strides = [1, 1]} : vector<48x64xf32> to vector<24x32xf32>
    %169 = vector.extract_strided_slice %166 {offsets = [0, 0], sizes = [24, 32], strides = [1, 1]} : vector<48x32xf32> to vector<24x32xf32>
    %cst_85 = arith.constant 0.000000e+00 : f32
    %170 = vector.broadcast %cst_85 : f32 to vector<24x32xf32>
    %171 = vector.extract_strided_slice %167 {offsets = [0, 0], sizes = [24, 8], strides = [1, 1]} : vector<24x32xf32> to vector<24x8xf32>
    %172 = vector.extract_strided_slice %168 {offsets = [0, 0], sizes = [24, 8], strides = [1, 1]} : vector<24x32xf32> to vector<24x8xf32>
    %cst_86 = arith.constant dense<0.000000e+00> : vector<24x24xf32>
    %173 = tpu.matmul %171, %172, %cst_86 {dimension_numbers = #tpu.dot_dimension_numbers<[1], [1], [0], [0], [0, 0, 1, 0], [], []>} : vector<24x8xf32>, vector<24x8xf32>, vector<24x24xf32> -> vector<24x24xf32>
    %cst_87 = arith.constant 0.353553385 : f32
    %174 = vector.broadcast %cst_87 : f32 to vector<24x24xf32>
    %175 = arith.mulf %173, %174 : vector<24x24xf32>
    %176 = arith.addf %175, %149 : vector<24x24xf32>
    %cst_88 = arith.constant dense<0xFF800000> : vector<24xf32>
    %177 = vector.multi_reduction <maximumf>, %176, %cst_88 [1] : vector<24x24xf32> to vector<24xf32>
    %178 = vector.shape_cast %177 : vector<24xf32> to vector<24x1xf32>
    %179 = vector.broadcast %178 : vector<24x1xf32> to vector<24x24xf32>
    %180 = arith.subf %176, %179 : vector<24x24xf32>
    %181 = math.exp %180 : vector<24x24xf32>
    %cst_89 = arith.constant dense<0.000000e+00> : vector<24xf32>
    %182 = vector.multi_reduction <add>, %181, %cst_89 [1] : vector<24x24xf32> to vector<24xf32>
    %183 = vector.shape_cast %182 : vector<24xf32> to vector<24x1xf32>
    %184 = tpu.reciprocal %183 {approx = true} : vector<24x1xf32> -> vector<24x1xf32>
    %185 = vector.broadcast %184 : vector<24x1xf32> to vector<24x24xf32>
    %186 = arith.mulf %181, %185 : vector<24x24xf32>
    %187 = vector.extract_strided_slice %169 {offsets = [0, 0], sizes = [24, 8], strides = [1, 1]} : vector<24x32xf32> to vector<24x8xf32>
    %cst_90 = arith.constant dense<0.000000e+00> : vector<24x8xf32>
    %188 = tpu.matmul %186, %187, %cst_90 {dimension_numbers = #tpu.dot_dimension_numbers<[1], [0], [0], [1], [0, 0, 1, 1], [], []>} : vector<24x24xf32>, vector<24x8xf32>, vector<24x8xf32> -> vector<24x8xf32>
    %189 = vector.extract_strided_slice %155 {offsets = [0, 0], sizes = [8, 32], strides = [1, 1]} : vector<32x32xf32> to vector<8x32xf32>
    %cst_91 = arith.constant dense<0.000000e+00> : vector<24x32xf32>
    %190 = tpu.matmul %188, %189, %cst_91 {dimension_numbers = #tpu.dot_dimension_numbers<[1], [0], [0], [1], [0, 0, 1, 1], [], []>} : vector<24x8xf32>, vector<8x32xf32>, vector<24x32xf32> -> vector<24x32xf32>
    %191 = arith.addf %170, %190 : vector<24x32xf32>
    %192 = vector.extract_strided_slice %167 {offsets = [0, 8], sizes = [24, 8], strides = [1, 1]} : vector<24x32xf32> to vector<24x8xf32>
    %193 = vector.extract_strided_slice %168 {offsets = [0, 8], sizes = [24, 8], strides = [1, 1]} : vector<24x32xf32> to vector<24x8xf32>
    %cst_92 = arith.constant dense<0.000000e+00> : vector<24x24xf32>
    %194 = tpu.matmul %192, %193, %cst_92 {dimension_numbers = #tpu.dot_dimension_numbers<[1], [1], [0], [0], [0, 0, 1, 0], [], []>} : vector<24x8xf32>, vector<24x8xf32>, vector<24x24xf32> -> vector<24x24xf32>
    %cst_93 = arith.constant 0.353553385 : f32
    %195 = vector.broadcast %cst_93 : f32 to vector<24x24xf32>
    %196 = arith.mulf %194, %195 : vector<24x24xf32>
    %197 = arith.addf %196, %149 : vector<24x24xf32>
    %cst_94 = arith.constant dense<0xFF800000> : vector<24xf32>
    %198 = vector.multi_reduction <maximumf>, %197, %cst_94 [1] : vector<24x24xf32> to vector<24xf32>
    %199 = vector.shape_cast %198 : vector<24xf32> to vector<24x1xf32>
    %200 = vector.broadcast %199 : vector<24x1xf32> to vector<24x24xf32>
    %201 = arith.subf %197, %200 : vector<24x24xf32>
    %202 = math.exp %201 : vector<24x24xf32>
    %cst_95 = arith.constant dense<0.000000e+00> : vector<24xf32>
    %203 = vector.multi_reduction <add>, %202, %cst_95 [1] : vector<24x24xf32> to vector<24xf32>
    %204 = vector.shape_cast %203 : vector<24xf32> to vector<24x1xf32>
    %205 = tpu.reciprocal %204 {approx = true} : vector<24x1xf32> -> vector<24x1xf32>
    %206 = vector.broadcast %205 : vector<24x1xf32> to vector<24x24xf32>
    %207 = arith.mulf %202, %206 : vector<24x24xf32>
    %208 = vector.extract_strided_slice %169 {offsets = [0, 8], sizes = [24, 8], strides = [1, 1]} : vector<24x32xf32> to vector<24x8xf32>
    %cst_96 = arith.constant dense<0.000000e+00> : vector<24x8xf32>
    %209 = tpu.matmul %207, %208, %cst_96 {dimension_numbers = #tpu.dot_dimension_numbers<[1], [0], [0], [1], [0, 0, 1, 1], [], []>} : vector<24x24xf32>, vector<24x8xf32>, vector<24x8xf32> -> vector<24x8xf32>
    %210 = vector.extract_strided_slice %155 {offsets = [8, 0], sizes = [8, 32], strides = [1, 1]} : vector<32x32xf32> to vector<8x32xf32>
    %cst_97 = arith.constant dense<0.000000e+00> : vector<24x32xf32>
    %211 = tpu.matmul %209, %210, %cst_97 {dimension_numbers = #tpu.dot_dimension_numbers<[1], [0], [0], [1], [0, 0, 1, 1], [], []>} : vector<24x8xf32>, vector<8x32xf32>, vector<24x32xf32> -> vector<24x32xf32>
    %212 = arith.addf %191, %211 : vector<24x32xf32>
    %213 = vector.extract_strided_slice %167 {offsets = [0, 16], sizes = [24, 8], strides = [1, 1]} : vector<24x32xf32> to vector<24x8xf32>
    %214 = vector.extract_strided_slice %168 {offsets = [0, 16], sizes = [24, 8], strides = [1, 1]} : vector<24x32xf32> to vector<24x8xf32>
    %cst_98 = arith.constant dense<0.000000e+00> : vector<24x24xf32>
    %215 = tpu.matmul %213, %214, %cst_98 {dimension_numbers = #tpu.dot_dimension_numbers<[1], [1], [0], [0], [0, 0, 1, 0], [], []>} : vector<24x8xf32>, vector<24x8xf32>, vector<24x24xf32> -> vector<24x24xf32>
    %cst_99 = arith.constant 0.353553385 : f32
    %216 = vector.broadcast %cst_99 : f32 to vector<24x24xf32>
    %217 = arith.mulf %215, %216 : vector<24x24xf32>
    %218 = arith.addf %217, %149 : vector<24x24xf32>
    %cst_100 = arith.constant dense<0xFF800000> : vector<24xf32>
    %219 = vector.multi_reduction <maximumf>, %218, %cst_100 [1] : vector<24x24xf32> to vector<24xf32>
    %220 = vector.shape_cast %219 : vector<24xf32> to vector<24x1xf32>
    %221 = vector.broadcast %220 : vector<24x1xf32> to vector<24x24xf32>
    %222 = arith.subf %218, %221 : vector<24x24xf32>
    %223 = math.exp %222 : vector<24x24xf32>
    %cst_101 = arith.constant dense<0.000000e+00> : vector<24xf32>
    %224 = vector.multi_reduction <add>, %223, %cst_101 [1] : vector<24x24xf32> to vector<24xf32>
    %225 = vector.shape_cast %224 : vector<24xf32> to vector<24x1xf32>
    %226 = tpu.reciprocal %225 {approx = true} : vector<24x1xf32> -> vector<24x1xf32>
    %227 = vector.broadcast %226 : vector<24x1xf32> to vector<24x24xf32>
    %228 = arith.mulf %223, %227 : vector<24x24xf32>
    %229 = vector.extract_strided_slice %169 {offsets = [0, 16], sizes = [24, 8], strides = [1, 1]} : vector<24x32xf32> to vector<24x8xf32>
    %cst_102 = arith.constant dense<0.000000e+00> : vector<24x8xf32>
    %230 = tpu.matmul %228, %229, %cst_102 {dimension_numbers = #tpu.dot_dimension_numbers<[1], [0], [0], [1], [0, 0, 1, 1], [], []>} : vector<24x24xf32>, vector<24x8xf32>, vector<24x8xf32> -> vector<24x8xf32>
    %231 = vector.extract_strided_slice %155 {offsets = [16, 0], sizes = [8, 32], strides = [1, 1]} : vector<32x32xf32> to vector<8x32xf32>
    %cst_103 = arith.constant dense<0.000000e+00> : vector<24x32xf32>
    %232 = tpu.matmul %230, %231, %cst_103 {dimension_numbers = #tpu.dot_dimension_numbers<[1], [0], [0], [1], [0, 0, 1, 1], [], []>} : vector<24x8xf32>, vector<8x32xf32>, vector<24x32xf32> -> vector<24x32xf32>
    %233 = arith.addf %212, %232 : vector<24x32xf32>
    %234 = vector.extract_strided_slice %167 {offsets = [0, 24], sizes = [24, 8], strides = [1, 1]} : vector<24x32xf32> to vector<24x8xf32>
    %235 = vector.extract_strided_slice %168 {offsets = [0, 24], sizes = [24, 8], strides = [1, 1]} : vector<24x32xf32> to vector<24x8xf32>
    %cst_104 = arith.constant dense<0.000000e+00> : vector<24x24xf32>
    %236 = tpu.matmul %234, %235, %cst_104 {dimension_numbers = #tpu.dot_dimension_numbers<[1], [1], [0], [0], [0, 0, 1, 0], [], []>} : vector<24x8xf32>, vector<24x8xf32>, vector<24x24xf32> -> vector<24x24xf32>
    %cst_105 = arith.constant 0.353553385 : f32
    %237 = vector.broadcast %cst_105 : f32 to vector<24x24xf32>
    %238 = arith.mulf %236, %237 : vector<24x24xf32>
    %239 = arith.addf %238, %149 : vector<24x24xf32>
    %cst_106 = arith.constant dense<0xFF800000> : vector<24xf32>
    %240 = vector.multi_reduction <maximumf>, %239, %cst_106 [1] : vector<24x24xf32> to vector<24xf32>
    %241 = vector.shape_cast %240 : vector<24xf32> to vector<24x1xf32>
    %242 = vector.broadcast %241 : vector<24x1xf32> to vector<24x24xf32>
    %243 = arith.subf %239, %242 : vector<24x24xf32>
    %244 = math.exp %243 : vector<24x24xf32>
    %cst_107 = arith.constant dense<0.000000e+00> : vector<24xf32>
    %245 = vector.multi_reduction <add>, %244, %cst_107 [1] : vector<24x24xf32> to vector<24xf32>
    %246 = vector.shape_cast %245 : vector<24xf32> to vector<24x1xf32>
    %247 = tpu.reciprocal %246 {approx = true} : vector<24x1xf32> -> vector<24x1xf32>
    %248 = vector.broadcast %247 : vector<24x1xf32> to vector<24x24xf32>
    %249 = arith.mulf %244, %248 : vector<24x24xf32>
    %250 = vector.extract_strided_slice %169 {offsets = [0, 24], sizes = [24, 8], strides = [1, 1]} : vector<24x32xf32> to vector<24x8xf32>
    %cst_108 = arith.constant dense<0.000000e+00> : vector<24x8xf32>
    %251 = tpu.matmul %249, %250, %cst_108 {dimension_numbers = #tpu.dot_dimension_numbers<[1], [0], [0], [1], [0, 0, 1, 1], [], []>} : vector<24x24xf32>, vector<24x8xf32>, vector<24x8xf32> -> vector<24x8xf32>
    %252 = vector.extract_strided_slice %155 {offsets = [24, 0], sizes = [8, 32], strides = [1, 1]} : vector<32x32xf32> to vector<8x32xf32>
    %cst_109 = arith.constant dense<0.000000e+00> : vector<24x32xf32>
    %253 = tpu.matmul %251, %252, %cst_109 {dimension_numbers = #tpu.dot_dimension_numbers<[1], [0], [0], [1], [0, 0, 1, 1], [], []>} : vector<24x8xf32>, vector<8x32xf32>, vector<24x32xf32> -> vector<24x32xf32>
    %254 = arith.addf %233, %253 : vector<24x32xf32>
    %255 = vector.extract_strided_slice %161 {offsets = [24, 0], sizes = [24, 32], strides = [1, 1]} : vector<48x64xf32> to vector<24x32xf32>
    %256 = vector.extract_strided_slice %161 {offsets = [24, 32], sizes = [24, 32], strides = [1, 1]} : vector<48x64xf32> to vector<24x32xf32>
    %257 = vector.extract_strided_slice %166 {offsets = [24, 0], sizes = [24, 32], strides = [1, 1]} : vector<48x32xf32> to vector<24x32xf32>
    %cst_110 = arith.constant 0.000000e+00 : f32
    %258 = vector.broadcast %cst_110 : f32 to vector<24x32xf32>
    %259 = vector.extract_strided_slice %255 {offsets = [0, 0], sizes = [24, 8], strides = [1, 1]} : vector<24x32xf32> to vector<24x8xf32>
    %260 = vector.extract_strided_slice %256 {offsets = [0, 0], sizes = [24, 8], strides = [1, 1]} : vector<24x32xf32> to vector<24x8xf32>
    %cst_111 = arith.constant dense<0.000000e+00> : vector<24x24xf32>
    %261 = tpu.matmul %259, %260, %cst_111 {dimension_numbers = #tpu.dot_dimension_numbers<[1], [1], [0], [0], [0, 0, 1, 0], [], []>} : vector<24x8xf32>, vector<24x8xf32>, vector<24x24xf32> -> vector<24x24xf32>
    %cst_112 = arith.constant 0.353553385 : f32
    %262 = vector.broadcast %cst_112 : f32 to vector<24x24xf32>
    %263 = arith.mulf %261, %262 : vector<24x24xf32>
    %264 = arith.addf %263, %149 : vector<24x24xf32>
    %cst_113 = arith.constant dense<0xFF800000> : vector<24xf32>
    %265 = vector.multi_reduction <maximumf>, %264, %cst_113 [1] : vector<24x24xf32> to vector<24xf32>
    %266 = vector.shape_cast %265 : vector<24xf32> to vector<24x1xf32>
    %267 = vector.broadcast %266 : vector<24x1xf32> to vector<24x24xf32>
    %268 = arith.subf %264, %267 : vector<24x24xf32>
    %269 = math.exp %268 : vector<24x24xf32>
    %cst_114 = arith.constant dense<0.000000e+00> : vector<24xf32>
    %270 = vector.multi_reduction <add>, %269, %cst_114 [1] : vector<24x24xf32> to vector<24xf32>
    %271 = vector.shape_cast %270 : vector<24xf32> to vector<24x1xf32>
    %272 = tpu.reciprocal %271 {approx = true} : vector<24x1xf32> -> vector<24x1xf32>
    %273 = vector.broadcast %272 : vector<24x1xf32> to vector<24x24xf32>
    %274 = arith.mulf %269, %273 : vector<24x24xf32>
    %275 = vector.extract_strided_slice %257 {offsets = [0, 0], sizes = [24, 8], strides = [1, 1]} : vector<24x32xf32> to vector<24x8xf32>
    %cst_115 = arith.constant dense<0.000000e+00> : vector<24x8xf32>
    %276 = tpu.matmul %274, %275, %cst_115 {dimension_numbers = #tpu.dot_dimension_numbers<[1], [0], [0], [1], [0, 0, 1, 1], [], []>} : vector<24x24xf32>, vector<24x8xf32>, vector<24x8xf32> -> vector<24x8xf32>
    %277 = vector.extract_strided_slice %155 {offsets = [0, 0], sizes = [8, 32], strides = [1, 1]} : vector<32x32xf32> to vector<8x32xf32>
    %cst_116 = arith.constant dense<0.000000e+00> : vector<24x32xf32>
    %278 = tpu.matmul %276, %277, %cst_116 {dimension_numbers = #tpu.dot_dimension_numbers<[1], [0], [0], [1], [0, 0, 1, 1], [], []>} : vector<24x8xf32>, vector<8x32xf32>, vector<24x32xf32> -> vector<24x32xf32>
    %279 = arith.addf %258, %278 : vector<24x32xf32>
    %280 = vector.extract_strided_slice %255 {offsets = [0, 8], sizes = [24, 8], strides = [1, 1]} : vector<24x32xf32> to vector<24x8xf32>
    %281 = vector.extract_strided_slice %256 {offsets = [0, 8], sizes = [24, 8], strides = [1, 1]} : vector<24x32xf32> to vector<24x8xf32>
    %cst_117 = arith.constant dense<0.000000e+00> : vector<24x24xf32>
    %282 = tpu.matmul %280, %281, %cst_117 {dimension_numbers = #tpu.dot_dimension_numbers<[1], [1], [0], [0], [0, 0, 1, 0], [], []>} : vector<24x8xf32>, vector<24x8xf32>, vector<24x24xf32> -> vector<24x24xf32>
    %cst_118 = arith.constant 0.353553385 : f32
    %283 = vector.broadcast %cst_118 : f32 to vector<24x24xf32>
    %284 = arith.mulf %282, %283 : vector<24x24xf32>
    %285 = arith.addf %284, %149 : vector<24x24xf32>
    %cst_119 = arith.constant dense<0xFF800000> : vector<24xf32>
    %286 = vector.multi_reduction <maximumf>, %285, %cst_119 [1] : vector<24x24xf32> to vector<24xf32>
    %287 = vector.shape_cast %286 : vector<24xf32> to vector<24x1xf32>
    %288 = vector.broadcast %287 : vector<24x1xf32> to vector<24x24xf32>
    %289 = arith.subf %285, %288 : vector<24x24xf32>
    %290 = math.exp %289 : vector<24x24xf32>
    %cst_120 = arith.constant dense<0.000000e+00> : vector<24xf32>
    %291 = vector.multi_reduction <add>, %290, %cst_120 [1] : vector<24x24xf32> to vector<24xf32>
    %292 = vector.shape_cast %291 : vector<24xf32> to vector<24x1xf32>
    %293 = tpu.reciprocal %292 {approx = true} : vector<24x1xf32> -> vector<24x1xf32>
    %294 = vector.broadcast %293 : vector<24x1xf32> to vector<24x24xf32>
    %295 = arith.mulf %290, %294 : vector<24x24xf32>
    %296 = vector.extract_strided_slice %257 {offsets = [0, 8], sizes = [24, 8], strides = [1, 1]} : vector<24x32xf32> to vector<24x8xf32>
    %cst_121 = arith.constant dense<0.000000e+00> : vector<24x8xf32>
    %297 = tpu.matmul %295, %296, %cst_121 {dimension_numbers = #tpu.dot_dimension_numbers<[1], [0], [0], [1], [0, 0, 1, 1], [], []>} : vector<24x24xf32>, vector<24x8xf32>, vector<24x8xf32> -> vector<24x8xf32>
    %298 = vector.extract_strided_slice %155 {offsets = [8, 0], sizes = [8, 32], strides = [1, 1]} : vector<32x32xf32> to vector<8x32xf32>
    %cst_122 = arith.constant dense<0.000000e+00> : vector<24x32xf32>
    %299 = tpu.matmul %297, %298, %cst_122 {dimension_numbers = #tpu.dot_dimension_numbers<[1], [0], [0], [1], [0, 0, 1, 1], [], []>} : vector<24x8xf32>, vector<8x32xf32>, vector<24x32xf32> -> vector<24x32xf32>
    %300 = arith.addf %279, %299 : vector<24x32xf32>
    %301 = vector.extract_strided_slice %255 {offsets = [0, 16], sizes = [24, 8], strides = [1, 1]} : vector<24x32xf32> to vector<24x8xf32>
    %302 = vector.extract_strided_slice %256 {offsets = [0, 16], sizes = [24, 8], strides = [1, 1]} : vector<24x32xf32> to vector<24x8xf32>
    %cst_123 = arith.constant dense<0.000000e+00> : vector<24x24xf32>
    %303 = tpu.matmul %301, %302, %cst_123 {dimension_numbers = #tpu.dot_dimension_numbers<[1], [1], [0], [0], [0, 0, 1, 0], [], []>} : vector<24x8xf32>, vector<24x8xf32>, vector<24x24xf32> -> vector<24x24xf32>
    %cst_124 = arith.constant 0.353553385 : f32
    %304 = vector.broadcast %cst_124 : f32 to vector<24x24xf32>
    %305 = arith.mulf %303, %304 : vector<24x24xf32>
    %306 = arith.addf %305, %149 : vector<24x24xf32>
    %cst_125 = arith.constant dense<0xFF800000> : vector<24xf32>
    %307 = vector.multi_reduction <maximumf>, %306, %cst_125 [1] : vector<24x24xf32> to vector<24xf32>
    %308 = vector.shape_cast %307 : vector<24xf32> to vector<24x1xf32>
    %309 = vector.broadcast %308 : vector<24x1xf32> to vector<24x24xf32>
    %310 = arith.subf %306, %309 : vector<24x24xf32>
    %311 = math.exp %310 : vector<24x24xf32>
    %cst_126 = arith.constant dense<0.000000e+00> : vector<24xf32>
    %312 = vector.multi_reduction <add>, %311, %cst_126 [1] : vector<24x24xf32> to vector<24xf32>
    %313 = vector.shape_cast %312 : vector<24xf32> to vector<24x1xf32>
    %314 = tpu.reciprocal %313 {approx = true} : vector<24x1xf32> -> vector<24x1xf32>
    %315 = vector.broadcast %314 : vector<24x1xf32> to vector<24x24xf32>
    %316 = arith.mulf %311, %315 : vector<24x24xf32>
    %317 = vector.extract_strided_slice %257 {offsets = [0, 16], sizes = [24, 8], strides = [1, 1]} : vector<24x32xf32> to vector<24x8xf32>
    %cst_127 = arith.constant dense<0.000000e+00> : vector<24x8xf32>
    %318 = tpu.matmul %316, %317, %cst_127 {dimension_numbers = #tpu.dot_dimension_numbers<[1], [0], [0], [1], [0, 0, 1, 1], [], []>} : vector<24x24xf32>, vector<24x8xf32>, vector<24x8xf32> -> vector<24x8xf32>
    %319 = vector.extract_strided_slice %155 {offsets = [16, 0], sizes = [8, 32], strides = [1, 1]} : vector<32x32xf32> to vector<8x32xf32>
    %cst_128 = arith.constant dense<0.000000e+00> : vector<24x32xf32>
    %320 = tpu.matmul %318, %319, %cst_128 {dimension_numbers = #tpu.dot_dimension_numbers<[1], [0], [0], [1], [0, 0, 1, 1], [], []>} : vector<24x8xf32>, vector<8x32xf32>, vector<24x32xf32> -> vector<24x32xf32>
    %321 = arith.addf %300, %320 : vector<24x32xf32>
    %322 = vector.extract_strided_slice %255 {offsets = [0, 24], sizes = [24, 8], strides = [1, 1]} : vector<24x32xf32> to vector<24x8xf32>
    %323 = vector.extract_strided_slice %256 {offsets = [0, 24], sizes = [24, 8], strides = [1, 1]} : vector<24x32xf32> to vector<24x8xf32>
    %cst_129 = arith.constant dense<0.000000e+00> : vector<24x24xf32>
    %324 = tpu.matmul %322, %323, %cst_129 {dimension_numbers = #tpu.dot_dimension_numbers<[1], [1], [0], [0], [0, 0, 1, 0], [], []>} : vector<24x8xf32>, vector<24x8xf32>, vector<24x24xf32> -> vector<24x24xf32>
    %cst_130 = arith.constant 0.353553385 : f32
    %325 = vector.broadcast %cst_130 : f32 to vector<24x24xf32>
    %326 = arith.mulf %324, %325 : vector<24x24xf32>
    %327 = arith.addf %326, %149 : vector<24x24xf32>
    %cst_131 = arith.constant dense<0xFF800000> : vector<24xf32>
    %328 = vector.multi_reduction <maximumf>, %327, %cst_131 [1] : vector<24x24xf32> to vector<24xf32>
    %329 = vector.shape_cast %328 : vector<24xf32> to vector<24x1xf32>
    %330 = vector.broadcast %329 : vector<24x1xf32> to vector<24x24xf32>
    %331 = arith.subf %327, %330 : vector<24x24xf32>
    %332 = math.exp %331 : vector<24x24xf32>
    %cst_132 = arith.constant dense<0.000000e+00> : vector<24xf32>
    %333 = vector.multi_reduction <add>, %332, %cst_132 [1] : vector<24x24xf32> to vector<24xf32>
    %334 = vector.shape_cast %333 : vector<24xf32> to vector<24x1xf32>
    %335 = tpu.reciprocal %334 {approx = true} : vector<24x1xf32> -> vector<24x1xf32>
    %336 = vector.broadcast %335 : vector<24x1xf32> to vector<24x24xf32>
    %337 = arith.mulf %332, %336 : vector<24x24xf32>
    %338 = vector.extract_strided_slice %257 {offsets = [0, 24], sizes = [24, 8], strides = [1, 1]} : vector<24x32xf32> to vector<24x8xf32>
    %cst_133 = arith.constant dense<0.000000e+00> : vector<24x8xf32>
    %339 = tpu.matmul %337, %338, %cst_133 {dimension_numbers = #tpu.dot_dimension_numbers<[1], [0], [0], [1], [0, 0, 1, 1], [], []>} : vector<24x24xf32>, vector<24x8xf32>, vector<24x8xf32> -> vector<24x8xf32>
    %340 = vector.extract_strided_slice %155 {offsets = [24, 0], sizes = [8, 32], strides = [1, 1]} : vector<32x32xf32> to vector<8x32xf32>
    %cst_134 = arith.constant dense<0.000000e+00> : vector<24x32xf32>
    %341 = tpu.matmul %339, %340, %cst_134 {dimension_numbers = #tpu.dot_dimension_numbers<[1], [0], [0], [1], [0, 0, 1, 1], [], []>} : vector<24x8xf32>, vector<8x32xf32>, vector<24x32xf32> -> vector<24x32xf32>
    %342 = arith.addf %321, %341 : vector<24x32xf32>
    %343 = tpu.concatenate %254, %342 in 0 : vector<24x32xf32>, vector<24x32xf32> -> vector<48x32xf32>
    %c0_135 = arith.constant 0 : index
    %c0_136 = arith.constant 0 : index
    %c0_137 = arith.constant 0 : index
    %344 = vector.load %arg21[%c0_135, %c0_136, %c0_137] : memref<2x1x32xf32, #tpu.memory_space<vmem>>, vector<1x1x32xf32>
    %345 = vector.shape_cast %344 : vector<1x1x32xf32> to vector<1x32xf32>
    %346 = vector.broadcast %345 : vector<1x32xf32> to vector<48x32xf32>
    %347 = arith.addf %343, %346 : vector<48x32xf32>
    %348 = arith.addf %128, %347 : vector<48x32xf32>
    %c0_138 = arith.constant 0 : index
    %c0_139 = arith.constant 0 : index
    %c0_140 = arith.constant 0 : index
    %349 = vector.load %arg22[%c0_138, %c0_139, %c0_140] : memref<2x1x32xf32, #tpu.memory_space<vmem>>, vector<1x1x32xf32>
    %350 = vector.shape_cast %349 : vector<1x1x32xf32> to vector<1x32xf32>
    %c0_141 = arith.constant 0 : index
    %c0_142 = arith.constant 0 : index
    %c0_143 = arith.constant 0 : index
    %351 = vector.load %arg23[%c0_141, %c0_142, %c0_143] : memref<2x1x32xf32, #tpu.memory_space<vmem>>, vector<1x1x32xf32>
    %352 = vector.shape_cast %351 : vector<1x1x32xf32> to vector<1x32xf32>
    %cst_144 = arith.constant dense<0.000000e+00> : vector<48xf32>
    %353 = vector.multi_reduction <add>, %348, %cst_144 [1] : vector<48x32xf32> to vector<48xf32>
    %354 = vector.shape_cast %353 : vector<48xf32> to vector<48x1xf32>
    %cst_145 = arith.constant 3.200000e+01 : f32
    %355 = vector.broadcast %cst_145 : f32 to vector<48x1xf32>
    %356 = arith.divf %354, %355 : vector<48x1xf32>
    %357 = vector.broadcast %356 : vector<48x1xf32> to vector<48x32xf32>
    %358 = arith.subf %348, %357 : vector<48x32xf32>
    %359 = arith.mulf %358, %358 : vector<48x32xf32>
    %cst_146 = arith.constant dense<0.000000e+00> : vector<48xf32>
    %360 = vector.multi_reduction <add>, %359, %cst_146 [1] : vector<48x32xf32> to vector<48xf32>
    %361 = vector.shape_cast %360 : vector<48xf32> to vector<48x1xf32>
    %cst_147 = arith.constant 3.200000e+01 : f32
    %362 = vector.broadcast %cst_147 : f32 to vector<48x1xf32>
    %363 = arith.divf %361, %362 : vector<48x1xf32>
    %cst_148 = arith.constant 9.99999974E-6 : f32
    %364 = vector.broadcast %cst_148 : f32 to vector<48x1xf32>
    %365 = arith.addf %363, %364 : vector<48x1xf32>
    %366 = math.rsqrt %365 : vector<48x1xf32>
    %367 = vector.broadcast %366 : vector<48x1xf32> to vector<48x32xf32>
    %368 = arith.mulf %358, %367 : vector<48x32xf32>
    %369 = vector.broadcast %350 : vector<1x32xf32> to vector<48x32xf32>
    %370 = arith.mulf %368, %369 : vector<48x32xf32>
    %371 = vector.broadcast %352 : vector<1x32xf32> to vector<48x32xf32>
    %372 = arith.addf %370, %371 : vector<48x32xf32>
    %c0_149 = arith.constant 0 : index
    %c0_150 = arith.constant 0 : index
    %c0_151 = arith.constant 0 : index
    %373 = vector.load %arg24[%c0_149, %c0_150, %c0_151] : memref<2x32x64xf32, #tpu.memory_space<vmem>>, vector<1x32x64xf32>
    %374 = vector.shape_cast %373 : vector<1x32x64xf32> to vector<32x64xf32>
    %cst_152 = arith.constant dense<0.000000e+00> : vector<48x64xf32>
    %375 = tpu.matmul %372, %374, %cst_152 {dimension_numbers = #tpu.dot_dimension_numbers<[1], [0], [0], [1], [0, 0, 1, 1], [], []>} : vector<48x32xf32>, vector<32x64xf32>, vector<48x64xf32> -> vector<48x64xf32>
    %c0_153 = arith.constant 0 : index
    %c0_154 = arith.constant 0 : index
    %c0_155 = arith.constant 0 : index
    %376 = vector.load %arg25[%c0_153, %c0_154, %c0_155] : memref<2x1x64xf32, #tpu.memory_space<vmem>>, vector<1x1x64xf32>
    %377 = vector.shape_cast %376 : vector<1x1x64xf32> to vector<1x64xf32>
    %378 = vector.broadcast %377 : vector<1x64xf32> to vector<48x64xf32>
    %379 = arith.addf %375, %378 : vector<48x64xf32>
    %cst_156 = arith.constant 0.000000e+00 : f32
    %380 = vector.broadcast %cst_156 : f32 to vector<48x64xf32>
    %381 = arith.maximumf %379, %380 : vector<48x64xf32>
    %c0_157 = arith.constant 0 : index
    %c0_158 = arith.constant 0 : index
    %c0_159 = arith.constant 0 : index
    %382 = vector.load %arg26[%c0_157, %c0_158, %c0_159] : memref<2x64x32xf32, #tpu.memory_space<vmem>>, vector<1x64x32xf32>
    %383 = vector.shape_cast %382 : vector<1x64x32xf32> to vector<64x32xf32>
    %cst_160 = arith.constant dense<0.000000e+00> : vector<48x32xf32>
    %384 = tpu.matmul %381, %383, %cst_160 {dimension_numbers = #tpu.dot_dimension_numbers<[1], [0], [0], [1], [0, 0, 1, 1], [], []>} : vector<48x64xf32>, vector<64x32xf32>, vector<48x32xf32> -> vector<48x32xf32>
    %c0_161 = arith.constant 0 : index
    %c0_162 = arith.constant 0 : index
    %c0_163 = arith.constant 0 : index
    %385 = vector.load %arg27[%c0_161, %c0_162, %c0_163] : memref<2x1x32xf32, #tpu.memory_space<vmem>>, vector<1x1x32xf32>
    %386 = vector.shape_cast %385 : vector<1x1x32xf32> to vector<1x32xf32>
    %387 = vector.broadcast %386 : vector<1x32xf32> to vector<48x32xf32>
    %388 = arith.addf %384, %387 : vector<48x32xf32>
    %389 = arith.addf %372, %388 : vector<48x32xf32>
    %c0_164 = arith.constant 0 : index
    %c0_165 = arith.constant 0 : index
    %c0_166 = arith.constant 0 : index
    %390 = vector.load %arg28[%c0_164, %c0_165, %c0_166] : memref<2x1x32xf32, #tpu.memory_space<vmem>>, vector<1x1x32xf32>
    %391 = vector.shape_cast %390 : vector<1x1x32xf32> to vector<1x32xf32>
    %c0_167 = arith.constant 0 : index
    %c0_168 = arith.constant 0 : index
    %c0_169 = arith.constant 0 : index
    %392 = vector.load %arg29[%c0_167, %c0_168, %c0_169] : memref<2x1x32xf32, #tpu.memory_space<vmem>>, vector<1x1x32xf32>
    %393 = vector.shape_cast %392 : vector<1x1x32xf32> to vector<1x32xf32>
    %cst_170 = arith.constant dense<0.000000e+00> : vector<48xf32>
    %394 = vector.multi_reduction <add>, %389, %cst_170 [1] : vector<48x32xf32> to vector<48xf32>
    %395 = vector.shape_cast %394 : vector<48xf32> to vector<48x1xf32>
    %cst_171 = arith.constant 3.200000e+01 : f32
    %396 = vector.broadcast %cst_171 : f32 to vector<48x1xf32>
    %397 = arith.divf %395, %396 : vector<48x1xf32>
    %398 = vector.broadcast %397 : vector<48x1xf32> to vector<48x32xf32>
    %399 = arith.subf %389, %398 : vector<48x32xf32>
    %400 = arith.mulf %399, %399 : vector<48x32xf32>
    %cst_172 = arith.constant dense<0.000000e+00> : vector<48xf32>
    %401 = vector.multi_reduction <add>, %400, %cst_172 [1] : vector<48x32xf32> to vector<48xf32>
    %402 = vector.shape_cast %401 : vector<48xf32> to vector<48x1xf32>
    %cst_173 = arith.constant 3.200000e+01 : f32
    %403 = vector.broadcast %cst_173 : f32 to vector<48x1xf32>
    %404 = arith.divf %402, %403 : vector<48x1xf32>
    %cst_174 = arith.constant 9.99999974E-6 : f32
    %405 = vector.broadcast %cst_174 : f32 to vector<48x1xf32>
    %406 = arith.addf %404, %405 : vector<48x1xf32>
    %407 = math.rsqrt %406 : vector<48x1xf32>
    %408 = vector.broadcast %407 : vector<48x1xf32> to vector<48x32xf32>
    %409 = arith.mulf %399, %408 : vector<48x32xf32>
    %410 = vector.broadcast %391 : vector<1x32xf32> to vector<48x32xf32>
    %411 = arith.mulf %409, %410 : vector<48x32xf32>
    %412 = vector.broadcast %393 : vector<1x32xf32> to vector<48x32xf32>
    %413 = arith.addf %411, %412 : vector<48x32xf32>
    %c1_175 = arith.constant 1 : index
    %c0_176 = arith.constant 0 : index
    %c0_177 = arith.constant 0 : index
    %414 = vector.load %arg18[%c1_175, %c0_176, %c0_177] : memref<2x32x96xf32, #tpu.memory_space<vmem>>, vector<1x32x96xf32>
    %415 = vector.shape_cast %414 : vector<1x32x96xf32> to vector<32x96xf32>
    %c1_178 = arith.constant 1 : index
    %c0_179 = arith.constant 0 : index
    %c0_180 = arith.constant 0 : index
    %416 = vector.load %arg19[%c1_178, %c0_179, %c0_180] : memref<2x1x96xf32, #tpu.memory_space<vmem>>, vector<1x1x96xf32>
    %417 = vector.shape_cast %416 : vector<1x1x96xf32> to vector<1x96xf32>
    %c1_181 = arith.constant 1 : index
    %c0_182 = arith.constant 0 : index
    %c0_183 = arith.constant 0 : index
    %418 = vector.load %arg20[%c1_181, %c0_182, %c0_183] : memref<2x32x32xf32, #tpu.memory_space<vmem>>, vector<1x32x32xf32>
    %419 = vector.shape_cast %418 : vector<1x32x32xf32> to vector<32x32xf32>
    %420 = arith.addf %413, %133 : vector<48x32xf32>
    %421 = vector.extract_strided_slice %415 {offsets = [0, 0], sizes = [32, 64], strides = [1, 1]} : vector<32x96xf32> to vector<32x64xf32>
    %cst_184 = arith.constant dense<0.000000e+00> : vector<48x64xf32>
    %422 = tpu.matmul %420, %421, %cst_184 {dimension_numbers = #tpu.dot_dimension_numbers<[1], [0], [0], [1], [0, 0, 1, 1], [], []>} : vector<48x32xf32>, vector<32x64xf32>, vector<48x64xf32> -> vector<48x64xf32>
    %423 = vector.extract_strided_slice %417 {offsets = [0, 0], sizes = [1, 64], strides = [1, 1]} : vector<1x96xf32> to vector<1x64xf32>
    %424 = vector.broadcast %423 : vector<1x64xf32> to vector<48x64xf32>
    %425 = arith.addf %422, %424 : vector<48x64xf32>
    %426 = vector.extract_strided_slice %415 {offsets = [0, 64], sizes = [32, 32], strides = [1, 1]} : vector<32x96xf32> to vector<32x32xf32>
    %cst_185 = arith.constant dense<0.000000e+00> : vector<48x32xf32>
    %427 = tpu.matmul %413, %426, %cst_185 {dimension_numbers = #tpu.dot_dimension_numbers<[1], [0], [0], [1], [0, 0, 1, 1], [], []>} : vector<48x32xf32>, vector<32x32xf32>, vector<48x32xf32> -> vector<48x32xf32>
    %428 = vector.extract_strided_slice %417 {offsets = [0, 64], sizes = [1, 32], strides = [1, 1]} : vector<1x96xf32> to vector<1x32xf32>
    %429 = vector.broadcast %428 : vector<1x32xf32> to vector<48x32xf32>
    %430 = arith.addf %427, %429 : vector<48x32xf32>
    %431 = vector.extract_strided_slice %425 {offsets = [0, 0], sizes = [24, 32], strides = [1, 1]} : vector<48x64xf32> to vector<24x32xf32>
    %432 = vector.extract_strided_slice %425 {offsets = [0, 32], sizes = [24, 32], strides = [1, 1]} : vector<48x64xf32> to vector<24x32xf32>
    %433 = vector.extract_strided_slice %430 {offsets = [0, 0], sizes = [24, 32], strides = [1, 1]} : vector<48x32xf32> to vector<24x32xf32>
    %cst_186 = arith.constant 0.000000e+00 : f32
    %434 = vector.broadcast %cst_186 : f32 to vector<24x32xf32>
    %435 = vector.extract_strided_slice %431 {offsets = [0, 0], sizes = [24, 8], strides = [1, 1]} : vector<24x32xf32> to vector<24x8xf32>
    %436 = vector.extract_strided_slice %432 {offsets = [0, 0], sizes = [24, 8], strides = [1, 1]} : vector<24x32xf32> to vector<24x8xf32>
    %cst_187 = arith.constant dense<0.000000e+00> : vector<24x24xf32>
    %437 = tpu.matmul %435, %436, %cst_187 {dimension_numbers = #tpu.dot_dimension_numbers<[1], [1], [0], [0], [0, 0, 1, 0], [], []>} : vector<24x8xf32>, vector<24x8xf32>, vector<24x24xf32> -> vector<24x24xf32>
    %cst_188 = arith.constant 0.353553385 : f32
    %438 = vector.broadcast %cst_188 : f32 to vector<24x24xf32>
    %439 = arith.mulf %437, %438 : vector<24x24xf32>
    %440 = arith.addf %439, %149 : vector<24x24xf32>
    %cst_189 = arith.constant dense<0xFF800000> : vector<24xf32>
    %441 = vector.multi_reduction <maximumf>, %440, %cst_189 [1] : vector<24x24xf32> to vector<24xf32>
    %442 = vector.shape_cast %441 : vector<24xf32> to vector<24x1xf32>
    %443 = vector.broadcast %442 : vector<24x1xf32> to vector<24x24xf32>
    %444 = arith.subf %440, %443 : vector<24x24xf32>
    %445 = math.exp %444 : vector<24x24xf32>
    %cst_190 = arith.constant dense<0.000000e+00> : vector<24xf32>
    %446 = vector.multi_reduction <add>, %445, %cst_190 [1] : vector<24x24xf32> to vector<24xf32>
    %447 = vector.shape_cast %446 : vector<24xf32> to vector<24x1xf32>
    %448 = tpu.reciprocal %447 {approx = true} : vector<24x1xf32> -> vector<24x1xf32>
    %449 = vector.broadcast %448 : vector<24x1xf32> to vector<24x24xf32>
    %450 = arith.mulf %445, %449 : vector<24x24xf32>
    %451 = vector.extract_strided_slice %433 {offsets = [0, 0], sizes = [24, 8], strides = [1, 1]} : vector<24x32xf32> to vector<24x8xf32>
    %cst_191 = arith.constant dense<0.000000e+00> : vector<24x8xf32>
    %452 = tpu.matmul %450, %451, %cst_191 {dimension_numbers = #tpu.dot_dimension_numbers<[1], [0], [0], [1], [0, 0, 1, 1], [], []>} : vector<24x24xf32>, vector<24x8xf32>, vector<24x8xf32> -> vector<24x8xf32>
    %453 = vector.extract_strided_slice %419 {offsets = [0, 0], sizes = [8, 32], strides = [1, 1]} : vector<32x32xf32> to vector<8x32xf32>
    %cst_192 = arith.constant dense<0.000000e+00> : vector<24x32xf32>
    %454 = tpu.matmul %452, %453, %cst_192 {dimension_numbers = #tpu.dot_dimension_numbers<[1], [0], [0], [1], [0, 0, 1, 1], [], []>} : vector<24x8xf32>, vector<8x32xf32>, vector<24x32xf32> -> vector<24x32xf32>
    %455 = arith.addf %434, %454 : vector<24x32xf32>
    %456 = vector.extract_strided_slice %431 {offsets = [0, 8], sizes = [24, 8], strides = [1, 1]} : vector<24x32xf32> to vector<24x8xf32>
    %457 = vector.extract_strided_slice %432 {offsets = [0, 8], sizes = [24, 8], strides = [1, 1]} : vector<24x32xf32> to vector<24x8xf32>
    %cst_193 = arith.constant dense<0.000000e+00> : vector<24x24xf32>
    %458 = tpu.matmul %456, %457, %cst_193 {dimension_numbers = #tpu.dot_dimension_numbers<[1], [1], [0], [0], [0, 0, 1, 0], [], []>} : vector<24x8xf32>, vector<24x8xf32>, vector<24x24xf32> -> vector<24x24xf32>
    %cst_194 = arith.constant 0.353553385 : f32
    %459 = vector.broadcast %cst_194 : f32 to vector<24x24xf32>
    %460 = arith.mulf %458, %459 : vector<24x24xf32>
    %461 = arith.addf %460, %149 : vector<24x24xf32>
    %cst_195 = arith.constant dense<0xFF800000> : vector<24xf32>
    %462 = vector.multi_reduction <maximumf>, %461, %cst_195 [1] : vector<24x24xf32> to vector<24xf32>
    %463 = vector.shape_cast %462 : vector<24xf32> to vector<24x1xf32>
    %464 = vector.broadcast %463 : vector<24x1xf32> to vector<24x24xf32>
    %465 = arith.subf %461, %464 : vector<24x24xf32>
    %466 = math.exp %465 : vector<24x24xf32>
    %cst_196 = arith.constant dense<0.000000e+00> : vector<24xf32>
    %467 = vector.multi_reduction <add>, %466, %cst_196 [1] : vector<24x24xf32> to vector<24xf32>
    %468 = vector.shape_cast %467 : vector<24xf32> to vector<24x1xf32>
    %469 = tpu.reciprocal %468 {approx = true} : vector<24x1xf32> -> vector<24x1xf32>
    %470 = vector.broadcast %469 : vector<24x1xf32> to vector<24x24xf32>
    %471 = arith.mulf %466, %470 : vector<24x24xf32>
    %472 = vector.extract_strided_slice %433 {offsets = [0, 8], sizes = [24, 8], strides = [1, 1]} : vector<24x32xf32> to vector<24x8xf32>
    %cst_197 = arith.constant dense<0.000000e+00> : vector<24x8xf32>
    %473 = tpu.matmul %471, %472, %cst_197 {dimension_numbers = #tpu.dot_dimension_numbers<[1], [0], [0], [1], [0, 0, 1, 1], [], []>} : vector<24x24xf32>, vector<24x8xf32>, vector<24x8xf32> -> vector<24x8xf32>
    %474 = vector.extract_strided_slice %419 {offsets = [8, 0], sizes = [8, 32], strides = [1, 1]} : vector<32x32xf32> to vector<8x32xf32>
    %cst_198 = arith.constant dense<0.000000e+00> : vector<24x32xf32>
    %475 = tpu.matmul %473, %474, %cst_198 {dimension_numbers = #tpu.dot_dimension_numbers<[1], [0], [0], [1], [0, 0, 1, 1], [], []>} : vector<24x8xf32>, vector<8x32xf32>, vector<24x32xf32> -> vector<24x32xf32>
    %476 = arith.addf %455, %475 : vector<24x32xf32>
    %477 = vector.extract_strided_slice %431 {offsets = [0, 16], sizes = [24, 8], strides = [1, 1]} : vector<24x32xf32> to vector<24x8xf32>
    %478 = vector.extract_strided_slice %432 {offsets = [0, 16], sizes = [24, 8], strides = [1, 1]} : vector<24x32xf32> to vector<24x8xf32>
    %cst_199 = arith.constant dense<0.000000e+00> : vector<24x24xf32>
    %479 = tpu.matmul %477, %478, %cst_199 {dimension_numbers = #tpu.dot_dimension_numbers<[1], [1], [0], [0], [0, 0, 1, 0], [], []>} : vector<24x8xf32>, vector<24x8xf32>, vector<24x24xf32> -> vector<24x24xf32>
    %cst_200 = arith.constant 0.353553385 : f32
    %480 = vector.broadcast %cst_200 : f32 to vector<24x24xf32>
    %481 = arith.mulf %479, %480 : vector<24x24xf32>
    %482 = arith.addf %481, %149 : vector<24x24xf32>
    %cst_201 = arith.constant dense<0xFF800000> : vector<24xf32>
    %483 = vector.multi_reduction <maximumf>, %482, %cst_201 [1] : vector<24x24xf32> to vector<24xf32>
    %484 = vector.shape_cast %483 : vector<24xf32> to vector<24x1xf32>
    %485 = vector.broadcast %484 : vector<24x1xf32> to vector<24x24xf32>
    %486 = arith.subf %482, %485 : vector<24x24xf32>
    %487 = math.exp %486 : vector<24x24xf32>
    %cst_202 = arith.constant dense<0.000000e+00> : vector<24xf32>
    %488 = vector.multi_reduction <add>, %487, %cst_202 [1] : vector<24x24xf32> to vector<24xf32>
    %489 = vector.shape_cast %488 : vector<24xf32> to vector<24x1xf32>
    %490 = tpu.reciprocal %489 {approx = true} : vector<24x1xf32> -> vector<24x1xf32>
    %491 = vector.broadcast %490 : vector<24x1xf32> to vector<24x24xf32>
    %492 = arith.mulf %487, %491 : vector<24x24xf32>
    %493 = vector.extract_strided_slice %433 {offsets = [0, 16], sizes = [24, 8], strides = [1, 1]} : vector<24x32xf32> to vector<24x8xf32>
    %cst_203 = arith.constant dense<0.000000e+00> : vector<24x8xf32>
    %494 = tpu.matmul %492, %493, %cst_203 {dimension_numbers = #tpu.dot_dimension_numbers<[1], [0], [0], [1], [0, 0, 1, 1], [], []>} : vector<24x24xf32>, vector<24x8xf32>, vector<24x8xf32> -> vector<24x8xf32>
    %495 = vector.extract_strided_slice %419 {offsets = [16, 0], sizes = [8, 32], strides = [1, 1]} : vector<32x32xf32> to vector<8x32xf32>
    %cst_204 = arith.constant dense<0.000000e+00> : vector<24x32xf32>
    %496 = tpu.matmul %494, %495, %cst_204 {dimension_numbers = #tpu.dot_dimension_numbers<[1], [0], [0], [1], [0, 0, 1, 1], [], []>} : vector<24x8xf32>, vector<8x32xf32>, vector<24x32xf32> -> vector<24x32xf32>
    %497 = arith.addf %476, %496 : vector<24x32xf32>
    %498 = vector.extract_strided_slice %431 {offsets = [0, 24], sizes = [24, 8], strides = [1, 1]} : vector<24x32xf32> to vector<24x8xf32>
    %499 = vector.extract_strided_slice %432 {offsets = [0, 24], sizes = [24, 8], strides = [1, 1]} : vector<24x32xf32> to vector<24x8xf32>
    %cst_205 = arith.constant dense<0.000000e+00> : vector<24x24xf32>
    %500 = tpu.matmul %498, %499, %cst_205 {dimension_numbers = #tpu.dot_dimension_numbers<[1], [1], [0], [0], [0, 0, 1, 0], [], []>} : vector<24x8xf32>, vector<24x8xf32>, vector<24x24xf32> -> vector<24x24xf32>
    %cst_206 = arith.constant 0.353553385 : f32
    %501 = vector.broadcast %cst_206 : f32 to vector<24x24xf32>
    %502 = arith.mulf %500, %501 : vector<24x24xf32>
    %503 = arith.addf %502, %149 : vector<24x24xf32>
    %cst_207 = arith.constant dense<0xFF800000> : vector<24xf32>
    %504 = vector.multi_reduction <maximumf>, %503, %cst_207 [1] : vector<24x24xf32> to vector<24xf32>
    %505 = vector.shape_cast %504 : vector<24xf32> to vector<24x1xf32>
    %506 = vector.broadcast %505 : vector<24x1xf32> to vector<24x24xf32>
    %507 = arith.subf %503, %506 : vector<24x24xf32>
    %508 = math.exp %507 : vector<24x24xf32>
    %cst_208 = arith.constant dense<0.000000e+00> : vector<24xf32>
    %509 = vector.multi_reduction <add>, %508, %cst_208 [1] : vector<24x24xf32> to vector<24xf32>
    %510 = vector.shape_cast %509 : vector<24xf32> to vector<24x1xf32>
    %511 = tpu.reciprocal %510 {approx = true} : vector<24x1xf32> -> vector<24x1xf32>
    %512 = vector.broadcast %511 : vector<24x1xf32> to vector<24x24xf32>
    %513 = arith.mulf %508, %512 : vector<24x24xf32>
    %514 = vector.extract_strided_slice %433 {offsets = [0, 24], sizes = [24, 8], strides = [1, 1]} : vector<24x32xf32> to vector<24x8xf32>
    %cst_209 = arith.constant dense<0.000000e+00> : vector<24x8xf32>
    %515 = tpu.matmul %513, %514, %cst_209 {dimension_numbers = #tpu.dot_dimension_numbers<[1], [0], [0], [1], [0, 0, 1, 1], [], []>} : vector<24x24xf32>, vector<24x8xf32>, vector<24x8xf32> -> vector<24x8xf32>
    %516 = vector.extract_strided_slice %419 {offsets = [24, 0], sizes = [8, 32], strides = [1, 1]} : vector<32x32xf32> to vector<8x32xf32>
    %cst_210 = arith.constant dense<0.000000e+00> : vector<24x32xf32>
    %517 = tpu.matmul %515, %516, %cst_210 {dimension_numbers = #tpu.dot_dimension_numbers<[1], [0], [0], [1], [0, 0, 1, 1], [], []>} : vector<24x8xf32>, vector<8x32xf32>, vector<24x32xf32> -> vector<24x32xf32>
    %518 = arith.addf %497, %517 : vector<24x32xf32>
    %519 = vector.extract_strided_slice %425 {offsets = [24, 0], sizes = [24, 32], strides = [1, 1]} : vector<48x64xf32> to vector<24x32xf32>
    %520 = vector.extract_strided_slice %425 {offsets = [24, 32], sizes = [24, 32], strides = [1, 1]} : vector<48x64xf32> to vector<24x32xf32>
    %521 = vector.extract_strided_slice %430 {offsets = [24, 0], sizes = [24, 32], strides = [1, 1]} : vector<48x32xf32> to vector<24x32xf32>
    %cst_211 = arith.constant 0.000000e+00 : f32
    %522 = vector.broadcast %cst_211 : f32 to vector<24x32xf32>
    %523 = vector.extract_strided_slice %519 {offsets = [0, 0], sizes = [24, 8], strides = [1, 1]} : vector<24x32xf32> to vector<24x8xf32>
    %524 = vector.extract_strided_slice %520 {offsets = [0, 0], sizes = [24, 8], strides = [1, 1]} : vector<24x32xf32> to vector<24x8xf32>
    %cst_212 = arith.constant dense<0.000000e+00> : vector<24x24xf32>
    %525 = tpu.matmul %523, %524, %cst_212 {dimension_numbers = #tpu.dot_dimension_numbers<[1], [1], [0], [0], [0, 0, 1, 0], [], []>} : vector<24x8xf32>, vector<24x8xf32>, vector<24x24xf32> -> vector<24x24xf32>
    %cst_213 = arith.constant 0.353553385 : f32
    %526 = vector.broadcast %cst_213 : f32 to vector<24x24xf32>
    %527 = arith.mulf %525, %526 : vector<24x24xf32>
    %528 = arith.addf %527, %149 : vector<24x24xf32>
    %cst_214 = arith.constant dense<0xFF800000> : vector<24xf32>
    %529 = vector.multi_reduction <maximumf>, %528, %cst_214 [1] : vector<24x24xf32> to vector<24xf32>
    %530 = vector.shape_cast %529 : vector<24xf32> to vector<24x1xf32>
    %531 = vector.broadcast %530 : vector<24x1xf32> to vector<24x24xf32>
    %532 = arith.subf %528, %531 : vector<24x24xf32>
    %533 = math.exp %532 : vector<24x24xf32>
    %cst_215 = arith.constant dense<0.000000e+00> : vector<24xf32>
    %534 = vector.multi_reduction <add>, %533, %cst_215 [1] : vector<24x24xf32> to vector<24xf32>
    %535 = vector.shape_cast %534 : vector<24xf32> to vector<24x1xf32>
    %536 = tpu.reciprocal %535 {approx = true} : vector<24x1xf32> -> vector<24x1xf32>
    %537 = vector.broadcast %536 : vector<24x1xf32> to vector<24x24xf32>
    %538 = arith.mulf %533, %537 : vector<24x24xf32>
    %539 = vector.extract_strided_slice %521 {offsets = [0, 0], sizes = [24, 8], strides = [1, 1]} : vector<24x32xf32> to vector<24x8xf32>
    %cst_216 = arith.constant dense<0.000000e+00> : vector<24x8xf32>
    %540 = tpu.matmul %538, %539, %cst_216 {dimension_numbers = #tpu.dot_dimension_numbers<[1], [0], [0], [1], [0, 0, 1, 1], [], []>} : vector<24x24xf32>, vector<24x8xf32>, vector<24x8xf32> -> vector<24x8xf32>
    %541 = vector.extract_strided_slice %419 {offsets = [0, 0], sizes = [8, 32], strides = [1, 1]} : vector<32x32xf32> to vector<8x32xf32>
    %cst_217 = arith.constant dense<0.000000e+00> : vector<24x32xf32>
    %542 = tpu.matmul %540, %541, %cst_217 {dimension_numbers = #tpu.dot_dimension_numbers<[1], [0], [0], [1], [0, 0, 1, 1], [], []>} : vector<24x8xf32>, vector<8x32xf32>, vector<24x32xf32> -> vector<24x32xf32>
    %543 = arith.addf %522, %542 : vector<24x32xf32>
    %544 = vector.extract_strided_slice %519 {offsets = [0, 8], sizes = [24, 8], strides = [1, 1]} : vector<24x32xf32> to vector<24x8xf32>
    %545 = vector.extract_strided_slice %520 {offsets = [0, 8], sizes = [24, 8], strides = [1, 1]} : vector<24x32xf32> to vector<24x8xf32>
    %cst_218 = arith.constant dense<0.000000e+00> : vector<24x24xf32>
    %546 = tpu.matmul %544, %545, %cst_218 {dimension_numbers = #tpu.dot_dimension_numbers<[1], [1], [0], [0], [0, 0, 1, 0], [], []>} : vector<24x8xf32>, vector<24x8xf32>, vector<24x24xf32> -> vector<24x24xf32>
    %cst_219 = arith.constant 0.353553385 : f32
    %547 = vector.broadcast %cst_219 : f32 to vector<24x24xf32>
    %548 = arith.mulf %546, %547 : vector<24x24xf32>
    %549 = arith.addf %548, %149 : vector<24x24xf32>
    %cst_220 = arith.constant dense<0xFF800000> : vector<24xf32>
    %550 = vector.multi_reduction <maximumf>, %549, %cst_220 [1] : vector<24x24xf32> to vector<24xf32>
    %551 = vector.shape_cast %550 : vector<24xf32> to vector<24x1xf32>
    %552 = vector.broadcast %551 : vector<24x1xf32> to vector<24x24xf32>
    %553 = arith.subf %549, %552 : vector<24x24xf32>
    %554 = math.exp %553 : vector<24x24xf32>
    %cst_221 = arith.constant dense<0.000000e+00> : vector<24xf32>
    %555 = vector.multi_reduction <add>, %554, %cst_221 [1] : vector<24x24xf32> to vector<24xf32>
    %556 = vector.shape_cast %555 : vector<24xf32> to vector<24x1xf32>
    %557 = tpu.reciprocal %556 {approx = true} : vector<24x1xf32> -> vector<24x1xf32>
    %558 = vector.broadcast %557 : vector<24x1xf32> to vector<24x24xf32>
    %559 = arith.mulf %554, %558 : vector<24x24xf32>
    %560 = vector.extract_strided_slice %521 {offsets = [0, 8], sizes = [24, 8], strides = [1, 1]} : vector<24x32xf32> to vector<24x8xf32>
    %cst_222 = arith.constant dense<0.000000e+00> : vector<24x8xf32>
    %561 = tpu.matmul %559, %560, %cst_222 {dimension_numbers = #tpu.dot_dimension_numbers<[1], [0], [0], [1], [0, 0, 1, 1], [], []>} : vector<24x24xf32>, vector<24x8xf32>, vector<24x8xf32> -> vector<24x8xf32>
    %562 = vector.extract_strided_slice %419 {offsets = [8, 0], sizes = [8, 32], strides = [1, 1]} : vector<32x32xf32> to vector<8x32xf32>
    %cst_223 = arith.constant dense<0.000000e+00> : vector<24x32xf32>
    %563 = tpu.matmul %561, %562, %cst_223 {dimension_numbers = #tpu.dot_dimension_numbers<[1], [0], [0], [1], [0, 0, 1, 1], [], []>} : vector<24x8xf32>, vector<8x32xf32>, vector<24x32xf32> -> vector<24x32xf32>
    %564 = arith.addf %543, %563 : vector<24x32xf32>
    %565 = vector.extract_strided_slice %519 {offsets = [0, 16], sizes = [24, 8], strides = [1, 1]} : vector<24x32xf32> to vector<24x8xf32>
    %566 = vector.extract_strided_slice %520 {offsets = [0, 16], sizes = [24, 8], strides = [1, 1]} : vector<24x32xf32> to vector<24x8xf32>
    %cst_224 = arith.constant dense<0.000000e+00> : vector<24x24xf32>
    %567 = tpu.matmul %565, %566, %cst_224 {dimension_numbers = #tpu.dot_dimension_numbers<[1], [1], [0], [0], [0, 0, 1, 0], [], []>} : vector<24x8xf32>, vector<24x8xf32>, vector<24x24xf32> -> vector<24x24xf32>
    %cst_225 = arith.constant 0.353553385 : f32
    %568 = vector.broadcast %cst_225 : f32 to vector<24x24xf32>
    %569 = arith.mulf %567, %568 : vector<24x24xf32>
    %570 = arith.addf %569, %149 : vector<24x24xf32>
    %cst_226 = arith.constant dense<0xFF800000> : vector<24xf32>
    %571 = vector.multi_reduction <maximumf>, %570, %cst_226 [1] : vector<24x24xf32> to vector<24xf32>
    %572 = vector.shape_cast %571 : vector<24xf32> to vector<24x1xf32>
    %573 = vector.broadcast %572 : vector<24x1xf32> to vector<24x24xf32>
    %574 = arith.subf %570, %573 : vector<24x24xf32>
    %575 = math.exp %574 : vector<24x24xf32>
    %cst_227 = arith.constant dense<0.000000e+00> : vector<24xf32>
    %576 = vector.multi_reduction <add>, %575, %cst_227 [1] : vector<24x24xf32> to vector<24xf32>
    %577 = vector.shape_cast %576 : vector<24xf32> to vector<24x1xf32>
    %578 = tpu.reciprocal %577 {approx = true} : vector<24x1xf32> -> vector<24x1xf32>
    %579 = vector.broadcast %578 : vector<24x1xf32> to vector<24x24xf32>
    %580 = arith.mulf %575, %579 : vector<24x24xf32>
    %581 = vector.extract_strided_slice %521 {offsets = [0, 16], sizes = [24, 8], strides = [1, 1]} : vector<24x32xf32> to vector<24x8xf32>
    %cst_228 = arith.constant dense<0.000000e+00> : vector<24x8xf32>
    %582 = tpu.matmul %580, %581, %cst_228 {dimension_numbers = #tpu.dot_dimension_numbers<[1], [0], [0], [1], [0, 0, 1, 1], [], []>} : vector<24x24xf32>, vector<24x8xf32>, vector<24x8xf32> -> vector<24x8xf32>
    %583 = vector.extract_strided_slice %419 {offsets = [16, 0], sizes = [8, 32], strides = [1, 1]} : vector<32x32xf32> to vector<8x32xf32>
    %cst_229 = arith.constant dense<0.000000e+00> : vector<24x32xf32>
    %584 = tpu.matmul %582, %583, %cst_229 {dimension_numbers = #tpu.dot_dimension_numbers<[1], [0], [0], [1], [0, 0, 1, 1], [], []>} : vector<24x8xf32>, vector<8x32xf32>, vector<24x32xf32> -> vector<24x32xf32>
    %585 = arith.addf %564, %584 : vector<24x32xf32>
    %586 = vector.extract_strided_slice %519 {offsets = [0, 24], sizes = [24, 8], strides = [1, 1]} : vector<24x32xf32> to vector<24x8xf32>
    %587 = vector.extract_strided_slice %520 {offsets = [0, 24], sizes = [24, 8], strides = [1, 1]} : vector<24x32xf32> to vector<24x8xf32>
    %cst_230 = arith.constant dense<0.000000e+00> : vector<24x24xf32>
    %588 = tpu.matmul %586, %587, %cst_230 {dimension_numbers = #tpu.dot_dimension_numbers<[1], [1], [0], [0], [0, 0, 1, 0], [], []>} : vector<24x8xf32>, vector<24x8xf32>, vector<24x24xf32> -> vector<24x24xf32>
    %cst_231 = arith.constant 0.353553385 : f32
    %589 = vector.broadcast %cst_231 : f32 to vector<24x24xf32>
    %590 = arith.mulf %588, %589 : vector<24x24xf32>
    %591 = arith.addf %590, %149 : vector<24x24xf32>
    %cst_232 = arith.constant dense<0xFF800000> : vector<24xf32>
    %592 = vector.multi_reduction <maximumf>, %591, %cst_232 [1] : vector<24x24xf32> to vector<24xf32>
    %593 = vector.shape_cast %592 : vector<24xf32> to vector<24x1xf32>
    %594 = vector.broadcast %593 : vector<24x1xf32> to vector<24x24xf32>
    %595 = arith.subf %591, %594 : vector<24x24xf32>
    %596 = math.exp %595 : vector<24x24xf32>
    %cst_233 = arith.constant dense<0.000000e+00> : vector<24xf32>
    %597 = vector.multi_reduction <add>, %596, %cst_233 [1] : vector<24x24xf32> to vector<24xf32>
    %598 = vector.shape_cast %597 : vector<24xf32> to vector<24x1xf32>
    %599 = tpu.reciprocal %598 {approx = true} : vector<24x1xf32> -> vector<24x1xf32>
    %600 = vector.broadcast %599 : vector<24x1xf32> to vector<24x24xf32>
    %601 = arith.mulf %596, %600 : vector<24x24xf32>
    %602 = vector.extract_strided_slice %521 {offsets = [0, 24], sizes = [24, 8], strides = [1, 1]} : vector<24x32xf32> to vector<24x8xf32>
    %cst_234 = arith.constant dense<0.000000e+00> : vector<24x8xf32>
    %603 = tpu.matmul %601, %602, %cst_234 {dimension_numbers = #tpu.dot_dimension_numbers<[1], [0], [0], [1], [0, 0, 1, 1], [], []>} : vector<24x24xf32>, vector<24x8xf32>, vector<24x8xf32> -> vector<24x8xf32>
    %604 = vector.extract_strided_slice %419 {offsets = [24, 0], sizes = [8, 32], strides = [1, 1]} : vector<32x32xf32> to vector<8x32xf32>
    %cst_235 = arith.constant dense<0.000000e+00> : vector<24x32xf32>
    %605 = tpu.matmul %603, %604, %cst_235 {dimension_numbers = #tpu.dot_dimension_numbers<[1], [0], [0], [1], [0, 0, 1, 1], [], []>} : vector<24x8xf32>, vector<8x32xf32>, vector<24x32xf32> -> vector<24x32xf32>
    %606 = arith.addf %585, %605 : vector<24x32xf32>
    %607 = tpu.concatenate %518, %606 in 0 : vector<24x32xf32>, vector<24x32xf32> -> vector<48x32xf32>
    %c1_236 = arith.constant 1 : index
    %c0_237 = arith.constant 0 : index
    %c0_238 = arith.constant 0 : index
    %608 = vector.load %arg21[%c1_236, %c0_237, %c0_238] : memref<2x1x32xf32, #tpu.memory_space<vmem>>, vector<1x1x32xf32>
    %609 = vector.shape_cast %608 : vector<1x1x32xf32> to vector<1x32xf32>
    %610 = vector.broadcast %609 : vector<1x32xf32> to vector<48x32xf32>
    %611 = arith.addf %607, %610 : vector<48x32xf32>
    %612 = arith.addf %413, %611 : vector<48x32xf32>
    %c1_239 = arith.constant 1 : index
    %c0_240 = arith.constant 0 : index
    %c0_241 = arith.constant 0 : index
    %613 = vector.load %arg22[%c1_239, %c0_240, %c0_241] : memref<2x1x32xf32, #tpu.memory_space<vmem>>, vector<1x1x32xf32>
    %614 = vector.shape_cast %613 : vector<1x1x32xf32> to vector<1x32xf32>
    %c1_242 = arith.constant 1 : index
    %c0_243 = arith.constant 0 : index
    %c0_244 = arith.constant 0 : index
    %615 = vector.load %arg23[%c1_242, %c0_243, %c0_244] : memref<2x1x32xf32, #tpu.memory_space<vmem>>, vector<1x1x32xf32>
    %616 = vector.shape_cast %615 : vector<1x1x32xf32> to vector<1x32xf32>
    %cst_245 = arith.constant dense<0.000000e+00> : vector<48xf32>
    %617 = vector.multi_reduction <add>, %612, %cst_245 [1] : vector<48x32xf32> to vector<48xf32>
    %618 = vector.shape_cast %617 : vector<48xf32> to vector<48x1xf32>
    %cst_246 = arith.constant 3.200000e+01 : f32
    %619 = vector.broadcast %cst_246 : f32 to vector<48x1xf32>
    %620 = arith.divf %618, %619 : vector<48x1xf32>
    %621 = vector.broadcast %620 : vector<48x1xf32> to vector<48x32xf32>
    %622 = arith.subf %612, %621 : vector<48x32xf32>
    %623 = arith.mulf %622, %622 : vector<48x32xf32>
    %cst_247 = arith.constant dense<0.000000e+00> : vector<48xf32>
    %624 = vector.multi_reduction <add>, %623, %cst_247 [1] : vector<48x32xf32> to vector<48xf32>
    %625 = vector.shape_cast %624 : vector<48xf32> to vector<48x1xf32>
    %cst_248 = arith.constant 3.200000e+01 : f32
    %626 = vector.broadcast %cst_248 : f32 to vector<48x1xf32>
    %627 = arith.divf %625, %626 : vector<48x1xf32>
    %cst_249 = arith.constant 9.99999974E-6 : f32
    %628 = vector.broadcast %cst_249 : f32 to vector<48x1xf32>
    %629 = arith.addf %627, %628 : vector<48x1xf32>
    %630 = math.rsqrt %629 : vector<48x1xf32>
    %631 = vector.broadcast %630 : vector<48x1xf32> to vector<48x32xf32>
    %632 = arith.mulf %622, %631 : vector<48x32xf32>
    %633 = vector.broadcast %614 : vector<1x32xf32> to vector<48x32xf32>
    %634 = arith.mulf %632, %633 : vector<48x32xf32>
    %635 = vector.broadcast %616 : vector<1x32xf32> to vector<48x32xf32>
    %636 = arith.addf %634, %635 : vector<48x32xf32>
    %c1_250 = arith.constant 1 : index
    %c0_251 = arith.constant 0 : index
    %c0_252 = arith.constant 0 : index
    %637 = vector.load %arg24[%c1_250, %c0_251, %c0_252] : memref<2x32x64xf32, #tpu.memory_space<vmem>>, vector<1x32x64xf32>
    %638 = vector.shape_cast %637 : vector<1x32x64xf32> to vector<32x64xf32>
    %cst_253 = arith.constant dense<0.000000e+00> : vector<48x64xf32>
    %639 = tpu.matmul %636, %638, %cst_253 {dimension_numbers = #tpu.dot_dimension_numbers<[1], [0], [0], [1], [0, 0, 1, 1], [], []>} : vector<48x32xf32>, vector<32x64xf32>, vector<48x64xf32> -> vector<48x64xf32>
    %c1_254 = arith.constant 1 : index
    %c0_255 = arith.constant 0 : index
    %c0_256 = arith.constant 0 : index
    %640 = vector.load %arg25[%c1_254, %c0_255, %c0_256] : memref<2x1x64xf32, #tpu.memory_space<vmem>>, vector<1x1x64xf32>
    %641 = vector.shape_cast %640 : vector<1x1x64xf32> to vector<1x64xf32>
    %642 = vector.broadcast %641 : vector<1x64xf32> to vector<48x64xf32>
    %643 = arith.addf %639, %642 : vector<48x64xf32>
    %cst_257 = arith.constant 0.000000e+00 : f32
    %644 = vector.broadcast %cst_257 : f32 to vector<48x64xf32>
    %645 = arith.maximumf %643, %644 : vector<48x64xf32>
    %c1_258 = arith.constant 1 : index
    %c0_259 = arith.constant 0 : index
    %c0_260 = arith.constant 0 : index
    %646 = vector.load %arg26[%c1_258, %c0_259, %c0_260] : memref<2x64x32xf32, #tpu.memory_space<vmem>>, vector<1x64x32xf32>
    %647 = vector.shape_cast %646 : vector<1x64x32xf32> to vector<64x32xf32>
    %cst_261 = arith.constant dense<0.000000e+00> : vector<48x32xf32>
    %648 = tpu.matmul %645, %647, %cst_261 {dimension_numbers = #tpu.dot_dimension_numbers<[1], [0], [0], [1], [0, 0, 1, 1], [], []>} : vector<48x64xf32>, vector<64x32xf32>, vector<48x32xf32> -> vector<48x32xf32>
    %c1_262 = arith.constant 1 : index
    %c0_263 = arith.constant 0 : index
    %c0_264 = arith.constant 0 : index
    %649 = vector.load %arg27[%c1_262, %c0_263, %c0_264] : memref<2x1x32xf32, #tpu.memory_space<vmem>>, vector<1x1x32xf32>
    %650 = vector.shape_cast %649 : vector<1x1x32xf32> to vector<1x32xf32>
    %651 = vector.broadcast %650 : vector<1x32xf32> to vector<48x32xf32>
    %652 = arith.addf %648, %651 : vector<48x32xf32>
    %653 = arith.addf %636, %652 : vector<48x32xf32>
    %c1_265 = arith.constant 1 : index
    %c0_266 = arith.constant 0 : index
    %c0_267 = arith.constant 0 : index
    %654 = vector.load %arg28[%c1_265, %c0_266, %c0_267] : memref<2x1x32xf32, #tpu.memory_space<vmem>>, vector<1x1x32xf32>
    %655 = vector.shape_cast %654 : vector<1x1x32xf32> to vector<1x32xf32>
    %c1_268 = arith.constant 1 : index
    %c0_269 = arith.constant 0 : index
    %c0_270 = arith.constant 0 : index
    %656 = vector.load %arg29[%c1_268, %c0_269, %c0_270] : memref<2x1x32xf32, #tpu.memory_space<vmem>>, vector<1x1x32xf32>
    %657 = vector.shape_cast %656 : vector<1x1x32xf32> to vector<1x32xf32>
    %cst_271 = arith.constant dense<0.000000e+00> : vector<48xf32>
    %658 = vector.multi_reduction <add>, %653, %cst_271 [1] : vector<48x32xf32> to vector<48xf32>
    %659 = vector.shape_cast %658 : vector<48xf32> to vector<48x1xf32>
    %cst_272 = arith.constant 3.200000e+01 : f32
    %660 = vector.broadcast %cst_272 : f32 to vector<48x1xf32>
    %661 = arith.divf %659, %660 : vector<48x1xf32>
    %662 = vector.broadcast %661 : vector<48x1xf32> to vector<48x32xf32>
    %663 = arith.subf %653, %662 : vector<48x32xf32>
    %664 = arith.mulf %663, %663 : vector<48x32xf32>
    %cst_273 = arith.constant dense<0.000000e+00> : vector<48xf32>
    %665 = vector.multi_reduction <add>, %664, %cst_273 [1] : vector<48x32xf32> to vector<48xf32>
    %666 = vector.shape_cast %665 : vector<48xf32> to vector<48x1xf32>
    %cst_274 = arith.constant 3.200000e+01 : f32
    %667 = vector.broadcast %cst_274 : f32 to vector<48x1xf32>
    %668 = arith.divf %666, %667 : vector<48x1xf32>
    %cst_275 = arith.constant 9.99999974E-6 : f32
    %669 = vector.broadcast %cst_275 : f32 to vector<48x1xf32>
    %670 = arith.addf %668, %669 : vector<48x1xf32>
    %671 = math.rsqrt %670 : vector<48x1xf32>
    %672 = vector.broadcast %671 : vector<48x1xf32> to vector<48x32xf32>
    %673 = arith.mulf %663, %672 : vector<48x32xf32>
    %674 = vector.broadcast %655 : vector<1x32xf32> to vector<48x32xf32>
    %675 = arith.mulf %673, %674 : vector<48x32xf32>
    %676 = vector.broadcast %657 : vector<1x32xf32> to vector<48x32xf32>
    %677 = arith.addf %675, %676 : vector<48x32xf32>
    %c0_276 = arith.constant 0 : index
    %c0_277 = arith.constant 0 : index
    %678 = vector.load %arg30[%c0_276, %c0_277] : memref<32x64xf32, #tpu.memory_space<vmem>>, vector<32x64xf32>
    %cst_278 = arith.constant dense<0.000000e+00> : vector<48x64xf32>
    %679 = tpu.matmul %677, %678, %cst_278 {dimension_numbers = #tpu.dot_dimension_numbers<[1], [0], [0], [1], [0, 0, 1, 1], [], []>} : vector<48x32xf32>, vector<32x64xf32>, vector<48x64xf32> -> vector<48x64xf32>
    %c0_279 = arith.constant 0 : index
    %c0_280 = arith.constant 0 : index
    %680 = vector.load %arg31[%c0_279, %c0_280] : memref<1x64xf32, #tpu.memory_space<vmem>>, vector<1x64xf32>
    %681 = vector.broadcast %680 : vector<1x64xf32> to vector<48x64xf32>
    %682 = arith.addf %679, %681 : vector<48x64xf32>
    %cst_281 = arith.constant 0.000000e+00 : f32
    %683 = vector.broadcast %cst_281 : f32 to vector<48x64xf32>
    %684 = arith.maximumf %682, %683 : vector<48x64xf32>
    %c0_282 = arith.constant 0 : index
    %c0_283 = arith.constant 0 : index
    %685 = vector.load %arg32[%c0_282, %c0_283] : memref<64x48xf32, #tpu.memory_space<vmem>>, vector<64x48xf32>
    %cst_284 = arith.constant dense<0.000000e+00> : vector<48x48xf32>
    %686 = tpu.matmul %684, %685, %cst_284 {dimension_numbers = #tpu.dot_dimension_numbers<[1], [0], [0], [1], [0, 0, 1, 1], [], []>} : vector<48x64xf32>, vector<64x48xf32>, vector<48x48xf32> -> vector<48x48xf32>
    %c0_285 = arith.constant 0 : index
    %c0_286 = arith.constant 0 : index
    %687 = vector.load %arg33[%c0_285, %c0_286] : memref<1x48xf32, #tpu.memory_space<vmem>>, vector<1x48xf32>
    %688 = vector.broadcast %687 : vector<1x48xf32> to vector<48x48xf32>
    %689 = arith.addf %686, %688 : vector<48x48xf32>
    %690 = vector.extract_strided_slice %689 {offsets = [16, 0], sizes = [1, 48], strides = [1, 1]} : vector<48x48xf32> to vector<1x48xf32>
    %c0_287 = arith.constant 0 : index
    %c0_288 = arith.constant 0 : index
    %691 = vector.load %arg34[%c0_287, %c0_288] : memref<2x48xf32, #tpu.memory_space<vmem>>, vector<1x48xf32>
    tpu.vector_store %arg34[%c0_287, %c0_288], %690 {strides = array<i32>} : memref<2x48xf32, #tpu.memory_space<vmem>>, vector<1x48xf32>,
    %692 = vector.extract_strided_slice %689 {offsets = [40, 0], sizes = [1, 48], strides = [1, 1]} : vector<48x48xf32> to vector<1x48xf32>
    %c1_289 = arith.constant 1 : index
    %c0_290 = arith.constant 0 : index
    %693 = vector.load %arg34[%c1_289, %c0_290] : memref<2x48xf32, #tpu.memory_space<vmem>>, vector<1x48xf32>
    tpu.vector_store %arg34[%c1_289, %c0_290], %692 {strides = array<i32>} : memref<2x48xf32, #tpu.memory_space<vmem>>, vector<1x48xf32>,
    return
  }
}

</mosaic_0001>

<bundles_post_ra>
// kernel: rise2_forward.1
= control target key start
LH: loop header
LB: loop body
LE: loop exit
PB: predicated region body
PF: predicated region fallthrough
CT: control target
= control target key end

     0   :  { %s5599_s3 = smov 1   ;;  %s5600_s7 = smov 2   ;;  %vm323_vm0 = vcmask 1042432   ;;  %vm312_vm1 = vcmask 23552   ;;  %vm224_vm2 = vcmask 1045504   ;;  %vm211_vm3 = vcmask 48128   ;;  %s7422_s0 = inlined_call_operand.smem [shape: u32[35], index: -1, kind: input, shape index: {}] }
   0x1   :  { %s5652_s6 = sld [smem:[%s7422_s0 + %s5599_s3]]   ;;  %s5601_s11 = smov 5   ;;  %vm355_vm4 = vcmask 124928   ;;  %vm156_vm5 = vcmask 392192   ;;  %vm267_vm6 = vcmask 130048   ;;  %vm635_vm7 = vcmask 261120  }
   0x2   :  { %s4828_s10 = sld [smem:[%s7422_s0 + %s5600_s7]]   ;;  %s5602_s15 = smov 6   ;;  %vm944_vm12 = vcmask 64512   ;;  %vm989_vm15 = vcmask 195584  }
   0x3   :  { %s4831_s14 = sld [smem:[%s7422_s0 + %s5601_s11]]   ;;  %s5603_s19 = smov 3  }
   0x4   :  { %s5691_s18 = sld [smem:[%s7422_s0 + %s5602_s15]]   ;;  %s5604_s26 = smov 4  }
   0x5   :  { %s4829_s22 = sld [smem:[%s7422_s0 + %s5603_s19]]   ;;  %s5605_s30 = smov 7  }
   0x6   :  { %s5711_s25 = sld [smem:[%s7422_s0]]   ;;  %s5606_s4 = smov 8  }
   0x7   :  { %v309_v0 = vld [vmem:[%s5652_s6] sm:$0x7]  ;;  %v5694_v10 = vld [vmem:[%s5652_s6 + $0x4] sm:$0x7]  ;;  %s5726_s29 = sld [smem:[%s7422_s0 + %s5604_s26]]   ;;  %s5607_s8 = smov 9  }
   0x8   :  { %4874 = vmatpush.msk.msra.mxu3 %vm323_vm0, %v309_v0  ;;  %v5662_v1 = vld [vmem:[%s4828_s10] sm:$0xff]  ;;  %v5671_v5 = vld [vmem:[%s4828_s10 + $0x8] sm:$0xff]  ;;  %v5680_v8 = vld [vmem:[%s4828_s10 + $0x10] sm:$0xff]  ;;  %v354_v11 = vmul.f32 %v309_v0, %v309_v0  ;;  %v464_v50 = vmul.f32 %v5694_v10, %v5694_v10  ;;  %s4833_s3 = sld [smem:[%s7422_s0 + %s5605_s30]]   ;;  %s5608_s12 = smov 10  }
   0x9   :  { %4875 = vmatmul.msk.f32.vlgmr.msra.gmra.mxu3 %vm312_vm1, %v5662_v1  ;;  %v310_v2 = vmul.f32 %v5662_v1, %v5662_v1  ;;  %v206_v3 = vld [vmem:[%s4831_s14] sm:$0x3f]  ;;  %v311_v6 = vmul.f32 %v5671_v5, %v5671_v5  ;;  %v5684_v9 = vld [vmem:[%s4828_s10 + $0x18] sm:$0xff]  ;;  %v422_v17 = vmul.f32 %v5680_v8, %v5680_v8  ;;  %s4834_s7 = sld [smem:[%s7422_s0 + %s5606_s4]]   ;;  %s5609_s16 = smov 12  }
   0xa   :  { %4865 = vmatpush.msk.msra.mxu1 %vm224_vm2, %v206_v3  ;;  %v356_v12 = vsel %vm355_vm4, %v354_v11, 0.0  ;;  %v423_v45 = vmul.f32 %v5684_v9, %v5684_v9  ;;  %v465_v51 = vsel %vm355_vm4, %v464_v50, 0.0  ;;  %v5315_v54 = vld [vmem:[%s5691_s18] ss:$0 sm:$0xff]  ;;  %s5757_s11 = sld [smem:[%s7422_s0 + %s5607_s8]]   ;;  %s5610_s20 = smov 11  }
   0xb   :  { %v313_v4 = vsel %vm312_vm1, %v310_v2, 0.0  ;;  %4866 = vmatmul.msk.f32.vlgmr.msra.gmra.mxu1 %vm211_vm3, %v5662_v1  ;;  %v316_v7 = vsel %vm312_vm1, %v311_v6, 0.0  ;;  %v357_v13 = vrot.slane %v356_v12, 4  ;;  %v151_v18 = vld [vmem:[%s4829_s22 + $0x28] sm:$0xff]  ;;  %v150_v19 = vld [vmem:[%s4829_s22 + $0x20] sm:$0xff]  ;;  %v424_v22 = vsel %vm312_vm1, %v422_v17, 0.0  ;;  %s5774_s15 = sld [smem:[%s7422_s0 + %s5608_s12]]  }
   0xc   :  { %314 = vadd.xlane.f32.xlu0 %v313_v4  ;;  %4880 = vmatpush.msk.msrb.mxu1 %vm323_vm0, %v5694_v10  ;;  %v149_v23 = vld [vmem:[%s4829_s22 + $0x18] sm:$0xff]  ;;  %v148_v25 = vld [vmem:[%s4829_s22 + $0x10] sm:$0xff]  ;;  %v147_v28 = vld [vmem:[%s4829_s22 + $0x8] sm:$0xff]  ;;  %v427_v46 = vsel %vm312_vm1, %v423_v45, 0.0  ;;  %v466_v53 = vrot.slane %v465_v51, 4  ;;  %s5786_s19 = sld [smem:[%s7422_s0 + %s5609_s16]]   ;;  %s5611_s24 = smov 15  }
   0xd   :  { %v358_v14 = vadd.f32 %v357_v13, %v356_v12  ;;  %179 = vmatpush.msra.mxu0 %v151_v18  ;;  %5184 = vmatpush.msra.mxu2 %v151_v18  ;;  %v146_v30 = vld [vmem:[%s4829_s22] sm:$0xff]  ;;  %v143_v41 = vld [vmem:[%s5711_s25 + $0x8] sm:$0xff]  ;;  %v145_v56 = vld [vmem:[%s5711_s25 + $0x18] sm:$0xff]  ;;  %s4837_s23 = sld [smem:[%s7422_s0 + %s5610_s20]]   ;;  %s5612_s28 = smov 13  }
   0xe   :  { %v142_v32 = vld [vmem:[%s5711_s25] sm:$0xff]  ;;  %v467_v55 = vadd.f32 %v466_v53, %v465_v51  ;;  %v262_v57 = vld [vmem:[%s4833_s3 + $0x8] sm:$0xff]  ;;  %s4841_s27 = sld [smem:[%s7422_s0 + %s5611_s24]]   ;;  %s5613_s2 = smov 14  }
   0xf   :  { %v359_v15 = vrot.slane %v358_v14, 2  ;;  %180 = vmatpush.msra.mxu0 %v150_v19  ;;  %5185 = vmatpush.msra.mxu2 %v150_v19  ;;  %v261_v59 = vld [vmem:[%s4833_s3] sm:$0xff]  ;;  %s5797_s1 = sld [smem:[%s7422_s0 + %s5612_s28]]   ;;  %s5614_s6 = smov 18  }
  0x10   :  { %v468_v60 = vrot.slane %v467_v55, 2  ;;  %v5739_v19 = vld [vmem:[%s5726_s29] ss:$0 sm:$0xff]  ;;  %v530_v45 = vld [vmem:[%s5757_s11 + $0x8] sm:$0xff]  ;;  %v532_v51 = vld [vmem:[%s5757_s11 + $0x18] sm:$0xff]  ;;  %s5811_s5 = sld [smem:[%s7422_s0 + %s5613_s2]]   ;;  %s5615_s10 = smov 16  }
  0x11   :  { %4876 = vmatmul.msk.f32.gmra.mxu3 %vm312_vm1, %v5671_v5  ;;  %v360_v16 = vadd.f32 %v359_v15, %v358_v14  ;;  %181 = vmatpush.msra.mxu0 %v149_v23  ;;  %s5825_s9 = sld [smem:[%s7422_s0 + %s5614_s6]]   ;;  %s5616_s14 = smov 17  }
  0x12   :  { %5186 = vmatpush.msra.mxu2 %v149_v23  ;;  %v469_v3 = vadd.f32 %v468_v60, %v467_v55  ;;  %s5835_s13 = sld [smem:[%s7422_s0 + %s5615_s10]]   ;;  %s5617_s18 = smov 19  }
  0x13   :  { %4867 = vmatmul.msk.f32.gmra.mxu1 %vm211_vm3, %v5671_v5  ;;  %v361_v20 = vrot.slane %v360_v16, 1  ;;  %182 = vmatpush.msra.mxu0 %v148_v25  ;;  %s5843_s17 = sld [smem:[%s7422_s0 + %s5616_s14]]   ;;  %s5618_s22 = smov 96  }
  0x14   :  { %317 = vadd.xlane.f32.xlu0 %v316_v7  ;;  %5187 = vmatpush.msra.mxu2 %v148_v25  ;;  %v470_v12 = vrot.slane %v469_v3, 1  ;;  %s5849_s21 = sld [smem:[%s7422_s0 + %s5617_s18]]   ;;  %s5620_s24 = smov 120  }
  0x15   :  { %v362_v27 = vadd.f32 %v361_v20, %v360_v16  ;;  %183 = vmatpush.msra.mxu0 %v147_v28  ;;  %s5622_s26 = smov 112   ;;  %s5626_s28 = smov 72  }
  0x16   :  { %5188 = vmatpush.msra.mxu2 %v147_v28  ;;  %s5627_s29 = smov 104   ;;  %s5628_s30 = smov 20  }
  0x17   :  { %184 = vmatpush.msra.mxu0 %v146_v30  ;;  %s6112_s3 = sld [smem:[%s7422_s0 + %s5628_s30]]   ;;  %s5629_s4 = smov 21  }
  0x18   :  { %4861 = vmatmul.msk.f32.vlgmr.msra.gmra.mxu0 %vm156_vm5, %v142_v32  ;;  %5189 = vmatpush.msra.mxu2 %v146_v30  ;;  %s5631_s8 = smov 22   ;;  %s5634_s30 = smov 25  }
  0x19   :  { %4864 = vmatmul.msk.f32.vlgmr.msra.gmra.mxu2 %vm156_vm5, %v145_v56  ;;  %600 = vmatpush.msrb.mxu0 %v530_v45  ;;  %s6395_s12 = sld [smem:[%s7422_s0 + %s5631_s8]]   ;;  %s5643_s8 = smov 34  }
  0x1a   :  { %294 = vmatpush.msrb.mxu2 %v262_v57 }
  0x1b   :  { %4868 = vmatmul.msk.f32.gmra.mxu1 %vm211_vm3, %v5680_v8 }
  0x1c   :  { %425 = vadd.xlane.f32.xlu0 %v424_v22  ;;  %295 = vmatpush.msrb.mxu2 %v261_v59 }
  0x1e   :  { %559 = vmatpush.msra.mxu2 %v532_v51 }
  0x20   :  { %4862 = vmatmul.msk.f32.gmra.mxu0 %vm156_vm5, %v143_v41 }
  0x23   :  { %4869 = vmatmul.msk.f32.gmra.mxu1 %vm211_vm3, %v5684_v9 }
  0x2b   :  { %4881 = vmatmul.msk.f32.vlgmr.msrb.gmra.mxu1 %vm312_vm1, %v5680_v8 }
  0x33   :  { %4882 = vmatmul.msk.f32.gmra.mxu1 %vm312_vm1, %v5684_v9 }
  0x7f   :  { %v315_v21 = vpop.xlane.xlu0 %314 }
  0x87   :  { %v318_v35 = vpop.xlane.xlu0 %317 }
  0x88   :  { %v245_v47 = vpop.f32.mrf.mxu1 }
  0x89   :  { %v246_v58 = vadd.f32 %v5315_v54, %v245_v47 }
  0x8b   :  { %v257_v0 = vmax.f32 %v246_v58, 0.0 }
  0x8c   :  { %v344_v24 = vpop.f32.mrf.mxu3 }
  0x8d   :  { %v350_v26 = vmul.f32 2.0, %v344_v24  ;;  %4870 = vmatmul.msk.f32.vlgmr.msrb.gmra.mxu2 %vm267_vm6, %v257_v0 }
  0x8f   :  { %v352_v29 = vsub.f32 %v315_v21, %v350_v26  ;;  %v426_v10 = vpop.xlane.xlu0 %425  ;;  %v471_v21 = vadd.f32 %v470_v12, %v469_v3 }
  0x90   :  { %v248_v48 = vpop.f32.mrf.mxu1 }
  0x91   :  { %v363_v31 = vadd.f32 %v362_v27, %v352_v29  ;;  %v249_v4 = vadd.f32 %v5315_v54, %v248_v48 }
  0x93   :  { %v365_v33 = vsub.f32 0.0, %v363_v31  ;;  %v258_v14 = vmax.f32 %v249_v4, 0.0 }
  0x94   :  { %v347_v34 = vpop.f32.mrf.mxu3 }
  0x95   :  { %v351_v36 = vmul.f32 2.0, %v347_v34  ;;  %v367_v37 = vmul.f32 10.0, %v365_v33  ;;  %v186_v7 = vpop.f32.mrf.mxu0  ;;  %4871 = vmatmul.msk.f32.gmra.mxu2 %vm267_vm6, %v258_v14 }
  0x96   :  { %v187_v23 = vadd.f32 %v5739_v19, %v186_v7 }
  0x97   :  { %v353_v38 = vsub.f32 %v318_v35, %v351_v36  ;;  %v369_v39 = vsel %vm267_vm6, %v367_v37, -inf }
  0x98   :  { %370 = vmax.xlane.f32.xlu1 %v369_v39  ;;  %v251_v49 = vpop.f32.mrf.mxu1  ;;  %v198_v31 = vmax.f32 %v187_v23, 0.0 }
  0x99   :  { %v364_v40 = vadd.f32 %v362_v27, %v353_v38  ;;  %v252_v24 = vadd.f32 %v5315_v54, %v251_v49 }
  0x9b   :  { %v366_v42 = vsub.f32 0.0, %v364_v40  ;;  %v259_v32 = vmax.f32 %v252_v24, 0.0 }
  0x9c   :  { %v195_v48 = vpop.f32.mrf.mxu2 }
  0x9d   :  { %v368_v43 = vmul.f32 10.0, %v366_v42  ;;  %v189_v26 = vpop.f32.mrf.mxu0  ;;  %4872 = vmatmul.msk.f32.gmra.mxu2 %vm267_vm6, %v259_v32  ;;  %v196_v49 = vadd.f32 %v5739_v19, %v195_v48  ;;  %v730_v32 = vld [vmem:[%s4841_s27] sm:$0x7]  ;;  %v682_v48 = vld [vmem:[%s5797_s1 + $0x8] sm:$0xff]  ;;  %s5623_s27 = smov 64  }
  0x9e   :  { %v190_v27 = vadd.f32 %v5739_v19, %v189_v26 }
  0x9f   :  { %v372_v44 = vsel %vm267_vm6, %v368_v43, -inf  ;;  %v201_v50 = vmax.f32 %v196_v49, 0.0 }
  0xa0   :  { %373 = vmax.xlane.f32.xlu1 %v372_v44  ;;  %v254_v52 = vpop.f32.mrf.mxu1  ;;  %v199_v30 = vmax.f32 %v190_v27, 0.0  ;;  %v144_v44 = vld [vmem:[%s5711_s25 + $0x10] sm:$0xff]  ;;  %s5621_s25 = smov 80  }
  0xa1   :  { %v255_v38 = vadd.f32 %v5315_v54, %v254_v52  ;;  %4863 = vmatmul.msk.f32.gmra.mxu0 %vm156_vm5, %v144_v44  ;;  %v5317_v52 = vld [vmem:[%s4834_s7] ss:$0 sm:$0xff]  ;;  %s6276_s7 = sld [smem:[%s7422_s0 + %s5629_s4]]  }
  0xa2   :  { %411 = vmatpush.msrb.mxu3 %v199_v30  ;;  %v628_v30 = vld [vmem:[%s4837_s23 + $0x8] sm:$0xff]  ;;  %s6448_s4 = sld [smem:[%s7422_s0 + %s5634_s30]]  }
  0xa3   :  { %v260_v42 = vmax.f32 %v255_v38, 0.0 }
  0xa4   :  { %412 = vmatpush.msrb.mxu3 %v198_v31  ;;  %v627_v31 = vld [vmem:[%s4837_s23] sm:$0xff] }
  0xa5   :  { %4873 = vmatmul.msk.f32.gmra.mxu2 %vm267_vm6, %v260_v42 }
  0xa6   :  { %520 = vmatpush.msra.mxu3 %v201_v50 }
  0xa8   :  { %428 = vadd.xlane.f32.xlu1 %v427_v46  ;;  %v454_v62 = vpop.f32.mrf.mxu1  ;;  %v529_v46 = vld [vmem:[%s5757_s11] sm:$0xff] }
  0xa9   :  { %v460_v6 = vmul.f32 2.0, %v454_v62  ;;  %601 = vmatpush.msrb.mxu0 %v529_v46 }
  0xab   :  { %v462_v16 = vsub.f32 %v426_v10, %v460_v6 }
  0xad   :  { %v472_v25 = vadd.f32 %v471_v21, %v462_v16  ;;  %v531_v16 = vld [vmem:[%s5757_s11 + $0x10] sm:$0xff]  ;;  %s5636_s11 = smov 27  }
  0xae   :  { %560 = vmatpush.msra.mxu2 %v531_v16 }
  0xaf   :  { %v474_v33 = vsub.f32 0.0, %v472_v25 }
  0xb0   :  { %v457_v15 = vpop.f32.mrf.mxu1  ;;  %4901 = vmatpush.msk.msrb.mxu2 %vm323_vm0, %v730_v32 }
  0xb1   :  { %v461_v22 = vmul.f32 2.0, %v457_v15  ;;  %v476_v39 = vmul.f32 10.0, %v474_v33  ;;  %v684_v33 = vld [vmem:[%s5797_s1 + $0x18] sm:$0xff] }
 0x10b   :  { %v371_v61 = vpop.xlane.xlu1 %370 }
 0x10c   :  { %v375_v63 = vsub.f32 %v367_v37, %v371_v61 }
 0x10e   :  { %v377_v2 = vmul.f32 1.442695, %v375_v63 }
 0x110   :  { %5341 = vpow2.f32 %v377_v2  ;;  %v297_v56 = vpop.f32.mrf.mxu2 }
 0x111   :  { %v298_v57 = vadd.f32 %v5317_v52, %v297_v56 }
 0x113   :  { %v374_v11 = vpop.xlane.xlu1 %373  ;;  %4889 = vmatmul.msk.f32.vlgmr.msrb.gmra.mxu0 %vm267_vm6, %v298_v57 }
 0x114   :  { %v376_v13 = vsub.f32 %v368_v43, %v374_v11  ;;  %v478_v43 = vsel %vm267_vm6, %v476_v39, -inf }
 0x116   :  { %v5342_v17 = vpop.eup %5341  ;;  %v379_v18 = vmul.f32 1.442695, %v376_v13 }
 0x117   :  { %v381_v20 = vsel %vm267_vm6, %v5342_v17, 0.0 }
 0x118   :  { %5343 = vpow2.f32 %v379_v18  ;;  %382 = vadd.xlane.f32.xlu2 %v381_v20  ;;  %v300_v2 = vpop.f32.mrf.mxu2 }
 0x119   :  { %v301_v3 = vadd.f32 %v5317_v52, %v300_v2  ;;  %v5856_v2 = vld [vmem:[%s5825_s9 + $0x8] sm:$0xff] }
 0x11b   :  { %v429_v28 = vpop.xlane.xlu1 %428  ;;  %4890 = vmatmul.msk.f32.gmra.mxu0 %vm267_vm6, %v301_v3  ;;  %v5860_v3 = vld [vmem:[%s5825_s9] sm:$0xff] }
 0x11c   :  { %v463_v29 = vsub.f32 %v429_v28, %v461_v22 }
 0x11e   :  { %v5344_v34 = vpop.eup %5343  ;;  %v473_v35 = vadd.f32 %v471_v21, %v463_v29  ;;  %v629_v29 = vld [vmem:[%s4837_s23 + $0x10] sm:$0xff] }
 0x11f   :  { %v384_v36 = vsel %vm267_vm6, %v5344_v34, 0.0 }
 0x120   :  { %385 = vadd.xlane.f32.xlu2 %v384_v36  ;;  %v475_v37 = vsub.f32 0.0, %v473_v35  ;;  %v303_v10 = vpop.f32.mrf.mxu2  ;;  %v5318_v35 = vld [vmem:[%s5774_s15] ss:$0 sm:$0xff]  ;;  %s6505_s15 = sld [smem:[%s7422_s0 + %s5636_s11]]  }
 0x121   :  { %v304_v11 = vadd.f32 %v5317_v52, %v303_v10 }
 0x122   :  { %v477_v40 = vmul.f32 10.0, %v475_v37 }
 0x123   :  { %4891 = vmatmul.msk.f32.gmra.mxu0 %vm267_vm6, %v304_v11 }
 0x124   :  { %v481_v41 = vsel %vm267_vm6, %v477_v40, -inf }
 0x125   :  { %482 = vmax.xlane.f32.xlu0 %v481_v41 }
 0x128   :  { %479 = vmax.xlane.f32.xlu2 %v478_v43  ;;  %v306_v14 = vpop.f32.mrf.mxu2 }
 0x129   :  { %v307_v15 = vadd.f32 %v5317_v52, %v306_v14  ;;  %v5321_v14 = vld [vmem:[%s5835_s13] ss:$0 sm:$0xff]  ;;  %s5632_s13 = smov 23  }
 0x12a   :  { %s6401_s16 = sld [smem:[%s7422_s0 + %s5632_s13]]  }
 0x12b   :  { %4892 = vmatmul.msk.f32.gmra.mxu0 %vm267_vm6, %v307_v15  ;;  %v5320_v15 = vld [vmem:[%s5811_s5] ss:$0 sm:$0xff]  ;;  %s5635_s5 = smov 26   ;;  %s4860_s13 = sld [smem:[%s7422_s0 + %s5643_s8]]  }
 0x12c   :  { %s6470_s10 = sld [smem:[%s7422_s0 + %s5635_s5]]  }
 0x18b   :  { %v383_v47 = vpop.xlane.xlu2 %382 }
 0x18c   :  { %5345 = vrcp.f32 %v383_v47  ;;  %v683_v47 = vld [vmem:[%s5797_s1 + $0x10] sm:$0xff] }
 0x192   :  { %v5346_v53 = vpop.eup %5345 }
 0x193   :  { %v386_v54 = vpop.xlane.xlu2 %385  ;;  %v389_v55 = vmul.f32 %v5346_v53, %v5342_v17  ;;  %v192_v17 = vpop.f32.mrf.mxu0 }
 0x194   :  { %5347 = vrcp.f32 %v386_v54  ;;  %v193_v18 = vadd.f32 %v5739_v19, %v192_v17  ;;  %v630_v19 = vld [vmem:[%s4837_s23 + $0x18] sm:$0xff]  ;;  %s5619_s23 = smov 88  }
 0x195   :  { %4877 = vmatmul.msk.f32.vlgmr.msrb.gmra.mxu3 %vm267_vm6, %v389_v55  ;;  %660 = vmatpush.msra.mxu1 %v630_v19  ;;  %v5322_v19 = vld [vmem:[%s5843_s17] ss:$0 sm:$0xff]  ;;  %s5633_s17 = smov 24  }
 0x196   :  { %v200_v20 = vmax.f32 %v193_v18, 0.0  ;;  %s6437_s20 = sld [smem:[%s7422_s0 + %s5633_s17]]   ;;  %s5637_s17 = smov 28  }
 0x197   :  { %661 = vmatpush.msra.mxu1 %v629_v29  ;;  %s6559_s30 = sld [smem:[%s7422_s0 + %s5637_s17]]  }
 0x198   :  { %v483_v58 = vpop.xlane.xlu0 %482  ;;  %521 = vmatpush.msra.mxu3 %v200_v20 }
 0x199   :  { %v485_v59 = vsub.f32 %v477_v40, %v483_v58  ;;  %662 = vmatpush.msra.mxu1 %v628_v30 }
 0x19a   :  { %v5348_v60 = vpop.eup %5347  ;;  %713 = vmatpush.msrb.mxu3 %v684_v33  ;;  %v5898_v33 = vld [vmem:[%s5849_s21] ss:$0 sm:$0xff] }
 0x19b   :  { %v488_v61 = vmul.f32 1.442695, %v485_v59  ;;  %v480_v62 = vpop.xlane.xlu2 %479  ;;  %v390_v63 = vmul.f32 %v5348_v60, %v5344_v34  ;;  %663 = vmatpush.msra.mxu1 %v627_v31  ;;  %v603_v34 = vpop.f32.mrf.mxu0 }
 0x19c   :  { %v484_v0 = vsub.f32 %v476_v39, %v480_v62  ;;  %714 = vmatpush.msrb.mxu3 %v683_v47 }
 0x19d   :  { %5349 = vpow2.f32 %v488_v61  ;;  %4878 = vmatmul.msk.f32.gmra.mxu3 %vm267_vm6, %v390_v63 }
 0x19e   :  { %v486_v4 = vmul.f32 1.442695, %v484_v0  ;;  %715 = vmatpush.msrb.mxu3 %v682_v48  ;;  %v5852_v0 = vld [vmem:[%s5825_s9 + $0x10] sm:$0xff] }
 0x1a0   :  { %5351 = vpow2.f32 %v486_v4  ;;  %v5240_v4 = vpack.i.bf16 %v5860_v3, %v5856_v2 }
 0x1a3   :  { %v5350_v6 = vpop.eup %5349  ;;  %v606_v40 = vpop.f32.mrf.mxu0 }
 0x1a4   :  { %v493_v7 = vsel %vm267_vm6, %v5350_v6, 0.0 }
 0x1a5   :  { %494 = vadd.xlane.f32.xlu2 %v493_v7 }
 0x1a6   :  { %v5352_v12 = vpop.eup %5351 }
 0x1a7   :  { %v490_v13 = vsel %vm267_vm6, %v5352_v12, 0.0 }
 0x1a8   :  { %491 = vadd.xlane.f32.xlu1 %v490_v13 }
 0x1ab   :  { %v609_v53 = vpop.f32.mrf.mxu0 }
 0x1b3   :  { %v612_v59 = vpop.f32.mrf.mxu0 }
 0x218   :  { %v414_v21 = vpop.f32.mrf.mxu3  ;;  %v495_v23 = vpop.xlane.xlu2 %494 }
 0x219   :  { %4885 = vmatmul.msk.f32.vlgmr.msra.gmra.mxu2 %vm267_vm6, %v414_v21 }
 0x21b   :  { %v492_v22 = vpop.xlane.xlu1 %491 }
 0x21c   :  { %5353 = vrcp.f32 %v492_v22 }
 0x21d   :  { %5355 = vrcp.f32 %v495_v23 }
 0x220   :  { %v417_v24 = vpop.f32.mrf.mxu3 }
 0x221   :  { %4886 = vmatmul.msk.f32.gmra.mxu2 %vm267_vm6, %v417_v24 }
 0x222   :  { %v5354_v25 = vpop.eup %5353 }
 0x223   :  { %v498_v26 = vmul.f32 %v5354_v25, %v5352_v12  ;;  %v5356_v27 = vpop.eup %5355 }
 0x224   :  { %v499_v28 = vmul.f32 %v5356_v27, %v5350_v6  ;;  %v767_v6 = vlaneseq }
 0x225   :  { %4883 = vmatmul.msk.f32.vlgmr.msra.gmra.mxu3 %vm267_vm6, %v498_v26 }
 0x226   :  { %v768_v7 = vshrl.u32 %v767_v6, 7  ;;  %v5865_v11 = vand.u32 127, %v767_v6 }
 0x228   :  { %v776_v10 = vadd.s32 16, %v768_v7  ;;  %vm792_vm9 = vcmp.le.s32.totalorder %v5865_v11, 16  ;;  %vm769_vm11 = vcmp.eq.s32.totalorder %v768_v7, 0  ;;  %vm782_vm13 = vcmp.lt.s32.totalorder %v5865_v11, 16 }
 0x229   :  { %v5892_v31 = vsel %vm769_vm11, %v5322_v19, 0.0  ;;  %vm793_vm14 = vmand %vm782_vm13, %vm792_vm9  ;;  %vm2529_vm11 = vcmask 523264  }
 0x22a   :  { %vm788_vm8 = vcmp.eq.s32.totalorder %v776_v10, 16 }
 0x22b   :  { %vm5870_vm10 = vmand %vm788_vm8, %vm792_vm9 }
 0x22d   :  { %4884 = vmatmul.msk.f32.gmra.mxu3 %vm267_vm6, %v499_v28 }
 0x29c   :  { %v562_v36 = vpop.f32.mrf.mxu2 }
 0x29d   :  { %v604_v37 = vadd.f32 %v603_v34, %v562_v36 }
 0x29f   :  { %v619_v38 = vadd.f32 %v5318_v35, %v604_v37 }
 0x2a1   :  { %v623_v39 = vmax.f32 %v619_v38, 0.0 }
 0x2a3   :  { %4893 = vmatmul.msk.f32.vlgmr.msra.gmra.mxu1 %vm635_vm7, %v623_v39 }
 0x2a4   :  { %v565_v41 = vpop.f32.mrf.mxu2 }
 0x2a5   :  { %v607_v42 = vadd.f32 %v606_v40, %v565_v41 }
 0x2a7   :  { %v620_v43 = vadd.f32 %v5318_v35, %v607_v42 }
 0x2a8   :  { %v523_v44 = vpop.f32.mrf.mxu3 }
 0x2a9   :  { %4887 = vmatmul.msk.f32.gmra.mxu2 %vm267_vm6, %v523_v44  ;;  %v624_v45 = vmax.f32 %v620_v43, 0.0 }
 0x2ab   :  { %4894 = vmatmul.msk.f32.gmra.mxu1 %vm635_vm7, %v624_v45 }
 0x2b0   :  { %v526_v46 = vpop.f32.mrf.mxu3 }
 0x2b1   :  { %4888 = vmatmul.msk.f32.gmra.mxu2 %vm267_vm6, %v526_v46 }
 0x2b9   :  { %4902 = vmatmul.msk.f32.vlgmr.msrb.gmra.mxu2 %vm312_vm1, %v5662_v1  ;;  %v681_v1 = vld [vmem:[%s5797_s1] sm:$0xff]  ;;  %s5638_s1 = smov 29  }
 0x2ba   :  { %716 = vmatpush.msrb.mxu3 %v681_v1  ;;  %s6565_s6 = sld [smem:[%s7422_s0 + %s5638_s1]]  }
 0x2c1   :  { %4903 = vmatmul.msk.f32.gmra.mxu2 %vm312_vm1, %v5671_v5  ;;  %v5828_v5 = vld [vmem:[%s5825_s9 + $0x18] sm:$0xff] }
 0x2c2   :  { %843 = vmatpush.msra.mxu0 %v5828_v5 }
 0x2c4   :  { %844 = vmatpush.msra.mxu0 %v5852_v0 }
 0x2c6   :  { %845 = vmatpush.msra.mxu0 %v5856_v2 }
 0x2c8   :  { %846 = vmatpush.msra.mxu0 %v5860_v3 }
 0x2c9   :  { %4904 = vmatmul.msk.f32.gmra.mxu2 %vm312_vm1, %v5680_v8  ;;  %v5319_v8 = vld [vmem:[%s5786_s19] ss:$0 sm:$0xff] }
 0x2d1   :  { %4905 = vmatmul.msk.f32.gmra.mxu2 %vm312_vm1, %v5684_v9 }
 0x320   :  { %v665_v49 = vpop.f32.mrf.mxu1 }
 0x321   :  { %v666_v9 = vadd.f32 %v5319_v8, %v665_v49 }
 0x323   :  { %v677_v50 = vmax.f32 %v666_v9, 0.0 }
 0x325   :  { %4897 = vmatmul.msk.f32.vlgmr.msrb.gmra.mxu3 %vm635_vm7, %v677_v50 }
 0x328   :  { %v668_v51 = vpop.f32.mrf.mxu1 }
 0x329   :  { %v669_v52 = vadd.f32 %v5319_v8, %v668_v51 }
 0x32b   :  { %v678_v54 = vmax.f32 %v669_v52, 0.0 }
 0x32c   :  { %v568_v55 = vpop.f32.mrf.mxu2 }
 0x32d   :  { %v610_v56 = vadd.f32 %v609_v53, %v568_v55  ;;  %4898 = vmatmul.msk.f32.gmra.mxu3 %vm635_vm7, %v678_v54 }
 0x32f   :  { %v621_v57 = vadd.f32 %v5318_v35, %v610_v56 }
 0x331   :  { %v625_v58 = vmax.f32 %v621_v57, 0.0 }
 0x333   :  { %4895 = vmatmul.msk.f32.gmra.mxu1 %vm635_vm7, %v625_v58 }
 0x334   :  { %v571_v60 = vpop.f32.mrf.mxu2 }
 0x335   :  { %v613_v61 = vadd.f32 %v612_v59, %v571_v60 }
 0x337   :  { %v622_v62 = vadd.f32 %v5318_v35, %v613_v61 }
 0x339   :  { %v626_v63 = vmax.f32 %v622_v62, 0.0 }
 0x33b   :  { %4896 = vmatmul.msk.f32.gmra.mxu1 %vm635_vm7, %v626_v63 }
 0x33c   :  { %v755_v13 = vpop.f32.mrf.mxu2 }
 0x33d   :  { %v5876_v16 = vadd.f32 %v5321_v14, %v755_v13 }
 0x344   :  { %v758_v21 = vpop.f32.mrf.mxu2 }
 0x345   :  { %v5883_v22 = vadd.f32 %v5321_v14, %v758_v21 }
 0x34c   :  { %v761_v37 = vpop.f32.mrf.mxu2 }
 0x34d   :  { %v5912_v39 = vadd.f32 %v5321_v14, %v761_v37 }
 0x354   :  { %v764_v45 = vpop.f32.mrf.mxu2 }
 0x355   :  { %v5928_v46 = vadd.f32 %v5321_v14, %v764_v45 }
 0x3a8   :  { %v718_v17 = vpop.f32.mrf.mxu3 }
 0x3a9   :  { %v5878_v18 = vadd.f32 %v5320_v15, %v718_v17  ;;  %v5625_v17 = vmov -1e+09  }
 0x3ab   :  { %v808_v20 = vadd.f32 %v5876_v16, %v5878_v18 }
 0x3ad   :  { %4906 = vmatmul.msk.f32.vlgmr.msra.gmra.mxu0 %vm635_vm7, %v808_v20  ;;  %v6002_v20 = vsel %vm793_vm14, 0.0, %v5625_v17 }
 0x3b0   :  { %v671_v23 = vpop.f32.mrf.mxu1  ;;  %v721_v24 = vpop.f32.mrf.mxu3 }
 0x3b1   :  { %v672_v25 = vadd.f32 %v5319_v8, %v671_v23  ;;  %v5885_v26 = vadd.f32 %v5320_v15, %v721_v24 }
 0x3b3   :  { %v679_v27 = vmax.f32 %v672_v25, 0.0  ;;  %v809_v28 = vadd.f32 %v5883_v22, %v5885_v26 }
 0x3b5   :  { %4899 = vmatmul.msk.f32.gmra.mxu3 %vm635_vm7, %v679_v27  ;;  %4907 = vmatmul.msk.f32.gmra.mxu0 %vm635_vm7, %v809_v28 }
 0x3b8   :  { %v674_v29 = vpop.f32.mrf.mxu1 }
 0x3b9   :  { %v675_v30 = vadd.f32 %v5319_v8, %v674_v29  ;;  %v5235_v8 = vpack.i.bf16 %v5852_v0, %v5828_v5 }
 0x3bb   :  { %v680_v32 = vmax.f32 %v675_v30, 0.0 }
 0x3bd   :  { %4900 = vmatmul.msk.f32.gmra.mxu3 %vm635_vm7, %v680_v32  ;;  %4908 = vmatmul.msk.f32.gmra.mxu0 %vm635_vm7, %v5892_v31  ;;  %v6010_v32 = vsel %vm5870_vm10, 0.0, %v5625_v17 }
 0x42a   :  { %v848_v34 = vpop.f32.mrf.mxu0 }
 0x42b   :  { %v5901_v35 = vadd.f32 %v5898_v33, %v848_v34 }
 0x42d   :  { %938 = vrot.lane.b32.xlu2 %v5901_v35, %s5618_s22 }
 0x432   :  { %v851_v36 = vpop.f32.mrf.mxu0 }
 0x433   :  { %v5906_v38 = vadd.f32 %v5898_v33, %v851_v36 }
 0x435   :  { %940 = vrot.lane.b32.xlu1 %v5906_v38, %s5618_s22  ;;  %1066 = vrot.lane.b32.xlu2 %v5906_v38, %s5619_s23 }
 0x438   :  { %v724_v40 = vpop.f32.mrf.mxu3 }
 0x439   :  { %v5914_v41 = vadd.f32 %v5320_v15, %v724_v40 }
 0x43a   :  { %v854_v42 = vpop.f32.mrf.mxu0 }
 0x43b   :  { %v811_v43 = vadd.f32 %v5912_v39, %v5914_v41  ;;  %v5919_v44 = vadd.f32 %v5898_v33, %v854_v42 }
 0x43d   :  { %4909 = vmatmul.msk.f32.gmra.mxu0 %vm635_vm7, %v811_v43  ;;  %942 = vrot.lane.b32.xlu0 %v5919_v44, %s5618_s22 }
 0x43e   :  { %1064 = vrot.lane.b32.xlu1 %v5901_v35, %s5619_s23  ;;  %1060 = vrot.lane.b32.xlu2 %v5906_v38, %s5620_s24 }
 0x440   :  { %v727_v47 = vpop.f32.mrf.mxu3 }
 0x441   :  { %v5930_v48 = vadd.f32 %v5320_v15, %v727_v47 }
 0x443   :  { %v812_v1 = vadd.f32 %v5928_v46, %v5930_v48 }
 0x445   :  { %1068 = vrot.lane.b32.xlu0 %v5919_v44, %s5619_s23  ;;  %4910 = vmatmul.msk.f32.gmra.mxu0 %vm635_vm7, %v812_v1 }
 0x446   :  { %1274 = vrot.lane.b32.xlu1 %v5919_v44, %s5621_s25  ;;  %1272 = vrot.lane.b32.xlu2 %v5906_v38, %s5621_s25 }
 0x44d   :  { %1058 = vrot.lane.b32.xlu0 %v5901_v35, %s5620_s24  ;;  %4911 = vmatmul.msk.f32.gmra.mxu0 %vm635_vm7, %v5892_v31 }
 0x44e   :  { %1270 = vrot.lane.b32.xlu1 %v5901_v35, %s5621_s25  ;;  %1266 = vrot.lane.b32.xlu2 %v5906_v38, %s5622_s26 }
 0x455   :  { %1062 = vrot.lane.b32.xlu0 %v5919_v44, %s5620_s24 }
 0x456   :  { %1268 = vrot.lane.b32.xlu1 %v5919_v44, %s5622_s26  ;;  %5241 = vrot.lane.b32.xlu2 %v5240_v4, %s5623_s27  ;;  %v5624_v4 = vmov 0.0  }
 0x45d   :  { %1264 = vrot.lane.b32.xlu0 %v5901_v35, %s5622_s26 }
 0x45e   :  { %882 = vrot.lane.b32.xlu2 %v5898_v33, %s5623_s27 }
 0x465   :  { %5236 = vrot.lane.b32.xlu0 %v5235_v8, %s5623_s27 }
 0x487   :  { %v939_v49 = vpop.permute.xlu2 %938 }
 0x48f   :  { %v1067_v51 = vpop.permute.xlu2 %1066 }
 0x498   :  { %v1061_v54 = vpop.permute.xlu2 %1060 }
 0x4a0   :  { %v1273_v56 = vpop.permute.xlu2 %1272 }
 0x4a7   :  { %v941_v9 = vpop.permute.xlu1 %940 }
 0x4a8   :  { %v1267_v59 = vpop.permute.xlu2 %1266 }
 0x4af   :  { %v943_v50 = vpop.permute.xlu0 %942 }
 0x4b0   :  { %4916 = vmatpush.xpose.msk.msra.mxu3 %vm944_vm12, %v943_v50  ;;  %v1065_v52 = vpop.permute.xlu1 %1064  ;;  %v5242_v62 = vpop.permute.xlu2 %5241 }
 0x4b1   :  { %v5243_v2 = vunpack.i.l.bf16 %v5242_v62  ;;  %v5244_v3 = vunpack.i.h.bf16 %v5242_v62 }
 0x4b4   :  { %4917 = vmatpush.xpose.msk.msra.mxu3 %vm944_vm12, %v941_v9 }
 0x4b7   :  { %v1069_v53 = vpop.permute.xlu0 %1068 }
 0x4b8   :  { %4918 = vmatpush.xpose.msk.msra.mxu3 %vm944_vm12, %v939_v49  ;;  %v1275_v5 = vpop.permute.xlu1 %1274  ;;  %v6014_v37 = vpop.permute.xlu2 %882 }
 0x4bb   :  { %4919 = vmatmul.msk.f32.vlgmr.msra.gmra.mxu3 %vm944_vm12, %v5901_v35 }
 0x4bc   :  { %4925 = vmatpush.xpose.msk.msrb.mxu3 %vm944_vm12, %v1069_v53 }
 0x4bf   :  { %v1059_v55 = vpop.permute.xlu0 %1058 }
 0x4c0   :  { %4926 = vmatpush.xpose.msk.msrb.mxu3 %vm944_vm12, %v1067_v51  ;;  %v1271_v58 = vpop.permute.xlu1 %1270 }
 0x4c3   :  { %4920 = vmatmul.msk.f32.gmra.mxu3 %vm944_vm12, %v5906_v38 }
 0x4c4   :  { %4927 = vmatpush.xpose.msk.msrb.mxu3 %vm944_vm12, %v1065_v52 }
 0x4c7   :  { %v1063_v57 = vpop.permute.xlu0 %1062 }
 0x4c8   :  { %4940 = vmatpush.xpose.msk.msra.mxu3 %vm944_vm12, %v1275_v5  ;;  %v1269_v6 = vpop.permute.xlu1 %1268 }
 0x4cb   :  { %4921 = vmatmul.msk.f32.gmra.mxu3 %vm944_vm12, %v5919_v44 }
 0x4cc   :  { %4941 = vmatpush.xpose.msk.msra.mxu3 %vm944_vm12, %v1273_v56 }
 0x4cf   :  { %v1265_v60 = vpop.permute.xlu0 %1264 }
 0x4d0   :  { %4942 = vmatpush.xpose.msk.msra.mxu3 %vm944_vm12, %v1271_v58 }
 0x4d3   :  { %4928 = vmatmul.msk.f32.vlgmr.msrb.gmra.mxu3 %vm944_vm12, %v1059_v55 }
 0x4d7   :  { %v5237_v61 = vpop.permute.xlu0 %5236 }
 0x4d8   :  { %v5239_v63 = vunpack.i.h.bf16 %v5237_v61  ;;  %v5238_v0 = vunpack.i.l.bf16 %v5237_v61 }
 0x4da   :  { %912 = vmatpush.msrb.mxu1 %v5238_v0 }
 0x4db   :  { %4929 = vmatmul.msk.f32.gmra.mxu3 %vm944_vm12, %v1061_v54 }
 0x4dc   :  { %913 = vmatpush.msrb.mxu1 %v5239_v63 }
 0x4de   :  { %914 = vmatpush.msrb.mxu1 %v5243_v2 }
 0x4e0   :  { %915 = vmatpush.msrb.mxu1 %v5244_v3 }
 0x4e1   :  { %4912 = vmatmul.msk.f32.vlgmr.msrb.gmra.mxu1 %vm635_vm7, %v5878_v18 }
 0x4e3   :  { %4930 = vmatmul.msk.f32.gmra.mxu3 %vm944_vm12, %v1063_v57 }
 0x4e9   :  { %4913 = vmatmul.msk.f32.gmra.mxu1 %vm635_vm7, %v5885_v26 }
 0x4eb   :  { %4943 = vmatmul.msk.f32.vlgmr.msra.gmra.mxu3 %vm944_vm12, %v1265_v60 }
 0x4f1   :  { %922 = vmatmul.f32.gmra.mxu1 %v5624_v4 }
 0x4f3   :  { %4944 = vmatmul.msk.f32.gmra.mxu3 %vm944_vm12, %v1267_v59 }
 0x4f9   :  { %4914 = vmatmul.msk.f32.gmra.mxu1 %vm635_vm7, %v5914_v41 }
 0x4fb   :  { %4945 = vmatmul.msk.f32.gmra.mxu3 %vm944_vm12, %v1269_v6 }
 0x501   :  { %4915 = vmatmul.msk.f32.gmra.mxu1 %vm635_vm7, %v5930_v48 }
 0x509   :  { %931 = vmatmul.f32.gmra.mxu1 %v5624_v4 }
 0x53e   :  { %v5993_v7 = vpop.f32.mrf.mxu3 }
 0x546   :  { %v5995_v10 = vpop.f32.mrf.mxu3 }
 0x54e   :  { %v5997_v13 = vpop.f32.mrf.mxu3 }
 0x556   :  { %v1099_v14 = vpop.f32.mrf.mxu3 }
 0x557   :  { %v1108_v15 = vmul.f32 0.35355338, %v1099_v14 }
 0x559   :  { %v1111_v21 = vadd.f32 %v1108_v15, %v6002_v20 }
 0x55b   :  { %v1114_v23 = vsel %vm989_vm15, %v1111_v21, -inf }
 0x55c   :  { %1115 = vmax.xlane.f32.xlu1 %v1114_v23 }
 0x55e   :  { %v917_v24 = vpop.f32.mrf.mxu1  ;;  %v1102_v25 = vpop.f32.mrf.mxu3 }
 0x55f   :  { %v1109_v27 = vmul.f32 0.35355338, %v1102_v25  ;;  %v6022_v8 = vadd.f32 %v917_v24, %v6014_v37 }
 0x561   :  { %v1112_v28 = vadd.f32 %v1109_v27, %v6002_v20 }
 0x563   :  { %v1117_v19 = vsel %vm989_vm15, %v1112_v28, -inf }
 0x564   :  { %1118 = vmax.xlane.f32.xlu0 %v1117_v19 }
 0x566   :  { %v920_v11 = vpop.f32.mrf.mxu1  ;;  %v1105_v29 = vpop.f32.mrf.mxu3 }
 0x567   :  { %v1110_v30 = vmul.f32 0.35355338, %v1105_v29  ;;  %v921_v43 = vadd.f32 %v920_v11, %v6014_v37 }
 0x569   :  { %v1113_v34 = vadd.f32 %v1110_v30, %v6010_v32 }
 0x56b   :  { %v1120_v36 = vsel %vm989_vm15, %v1113_v34, -inf }
 0x56c   :  { %1121 = vmax.xlane.f32.xlu2 %v1120_v36  ;;  %v985_v36 = vmul.f32 0.35355338, %v5997_v13  ;;  %v984_v13 = vmul.f32 0.35355338, %v5995_v10 }
 0x56e   :  { %v923_v40 = vpop.f32.mrf.mxu1  ;;  %v1305_v42 = vpop.f32.mrf.mxu3 }
 0x56f   :  { %v924_v45 = vadd.f32 %v923_v40, %v6014_v37  ;;  %v1314_v47 = vmul.f32 0.35355338, %v1305_v42 }
 0x571   :  { %1045 = vmatpush.msra.mxu2 %v924_v45  ;;  %v1317_v1 = vadd.f32 %v1314_v47, %v6002_v20  ;;  %v6019_v12 = vpack.i.bf16 %v921_v43, %v924_v45 }
 0x573   :  { %1046 = vmatpush.msra.mxu2 %v921_v43  ;;  %v1320_v49 = vsel %vm989_vm15, %v1317_v1, -inf  ;;  %v6055_v43 = vadd.f32 %v985_v36, %v6010_v32 }
 0x574   :  { %1321 = vmax.xlane.f32.xlu1 %v1320_v49 }
 0x575   :  { %1047 = vmatpush.msra.mxu2 %v6022_v8  ;;  %v996_v47 = vsel %vm989_vm15, %v6055_v43, -inf }
 0x576   :  { %v1308_v9 = vpop.f32.mrf.mxu3 }
 0x577   :  { %v1315_v50 = vmul.f32 0.35355338, %v1308_v9 }
 0x579   :  { %v1318_v51 = vadd.f32 %v1315_v50, %v6002_v20  ;;  %v987_v50 = vadd.f32 %v984_v13, %v6002_v20 }
 0x57b   :  { %v1323_v52 = vsel %vm989_vm15, %v1318_v51, -inf }
 0x57c   :  { %1324 = vmax.xlane.f32.xlu0 %v1323_v52  ;;  %v993_v52 = vsel %vm989_vm15, %v987_v50, -inf }
 0x57e   :  { %v1311_v53 = vpop.f32.mrf.mxu3 }
 0x57f   :  { %v1316_v54 = vmul.f32 0.35355338, %v1311_v53 }
 0x581   :  { %v1319_v5 = vadd.f32 %v1316_v54, %v6010_v32 }
 0x583   :  { %v1326_v55 = vsel %vm989_vm15, %v1319_v5, -inf }
 0x584   :  { %1327 = vmax.xlane.f32.xlu1 %v1326_v55  ;;  %5246 = vrot.lane.b32.xlu2 %v6019_v12, %s5620_s24 }
 0x58c   :  { %5251 = vrot.lane.b32.xlu2 %v6019_v12, %s5622_s26 }
 0x5cf   :  { %v1116_v56 = vpop.xlane.xlu1 %1115 }
 0x5d0   :  { %v1123_v57 = vsub.f32 %v1111_v21, %v1116_v56 }
 0x5d2   :  { %v1126_v58 = vmul.f32 1.442695, %v1123_v57 }
 0x5d4   :  { %5357 = vpow2.f32 %v1126_v58 }
 0x5d7   :  { %v1119_v59 = vpop.xlane.xlu0 %1118 }
 0x5d8   :  { %v1124_v60 = vsub.f32 %v1112_v28, %v1119_v59 }
 0x5da   :  { %v6034_v61 = vpop.eup %5357  ;;  %v1128_v62 = vmul.f32 1.442695, %v1124_v60 }
 0x5db   :  { %v1132_v63 = vsel %vm989_vm15, %v6034_v61, 0.0 }
 0x5dc   :  { %5359 = vpow2.f32 %v1128_v62  ;;  %1133 = vadd.xlane.f32.xlu0 %v1132_v63 }
 0x5df   :  { %v1122_v0 = vpop.xlane.xlu2 %1121 }
 0x5e0   :  { %v1125_v2 = vsub.f32 %v1113_v34, %v1122_v0 }
 0x5e2   :  { %v6038_v3 = vpop.eup %5359  ;;  %v1130_v4 = vmul.f32 1.442695, %v1125_v2 }
 0x5e3   :  { %v1135_v6 = vsel %vm989_vm15, %v6038_v3, 0.0 }
 0x5e4   :  { %5361 = vpow2.f32 %v1130_v4  ;;  %1136 = vadd.xlane.f32.xlu1 %v1135_v6 }
 0x5e7   :  { %v1322_v14 = vpop.xlane.xlu1 %1321  ;;  %v5247_v15 = vpop.permute.xlu2 %5246 }
 0x5e8   :  { %v1329_v17 = vsub.f32 %v1317_v1, %v1322_v14  ;;  %v5248_v21 = vunpack.i.l.bf16 %v5247_v15  ;;  %v5249_v25 = vunpack.i.h.bf16 %v5247_v15 }
 0x5ea   :  { %v6042_v23 = vpop.eup %5361  ;;  %v1332_v24 = vmul.f32 1.442695, %v1329_v17  ;;  %1181 = vmatpush.msrb.mxu0 %v5248_v21 }
 0x5eb   :  { %v1138_v27 = vsel %vm989_vm15, %v6042_v23, 0.0 }
 0x5ec   :  { %5363 = vpow2.f32 %v1332_v24  ;;  %1139 = vadd.xlane.f32.xlu1 %v1138_v27  ;;  %1182 = vmatpush.msrb.mxu0 %v5249_v25 }
 0x5ef   :  { %v1325_v42 = vpop.xlane.xlu0 %1324  ;;  %v5252_v57 = vpop.permute.xlu2 %5251 }
 0x5f0   :  { %1150 = vrot.lane.b32.xlu0 %v6022_v8, %s5620_s24  ;;  %v1330_v45 = vsub.f32 %v1318_v51, %v1325_v42  ;;  %v983_v51 = vmul.f32 0.35355338, %v5993_v7  ;;  %v5253_v60 = vunpack.i.l.bf16 %v5252_v57  ;;  %v5254_v62 = vunpack.i.h.bf16 %v5252_v57 }
 0x5f2   :  { %v5364_v28 = vpop.eup %5363  ;;  %v1334_v1 = vmul.f32 1.442695, %v1330_v45  ;;  %v986_v53 = vadd.f32 %v983_v51, %v6002_v20 }
 0x5f3   :  { %v1338_v19 = vsel %vm989_vm15, %v5364_v28, 0.0 }
 0x5f4   :  { %1339 = vadd.xlane.f32.xlu1 %v1338_v19  ;;  %v990_v54 = vsel %vm989_vm15, %v986_v53, -inf }
 0x5f7   :  { %v1328_v11 = vpop.xlane.xlu1 %1327 }
 0x5f8   :  { %v1331_v29 = vsub.f32 %v1319_v5, %v1328_v11  ;;  %v857_v5 = vpop.f32.mrf.mxu0 }
 0x5f9   :  { %v6069_v55 = vadd.f32 %v5898_v33, %v857_v5  ;;  %v806_v5 = vld [vmem:[%s6112_s3 + $0x10] sm:$0xff] }
 0x5fa   :  { %v1336_v30 = vmul.f32 1.442695, %v1331_v29 }
 0x5fc   :  { %5365 = vpow2.f32 %v1336_v30 }
 0x5fd   :  { %5367 = vpow2.f32 %v1334_v1 }
 0x600   :  { %v860_v42 = vpop.f32.mrf.mxu0 }
 0x602   :  { %v6049_v34 = vpop.eup %5365 }
 0x603   :  { %v1344_v40 = vsel %vm989_vm15, %v6049_v34, 0.0  ;;  %v5368_v49 = vpop.eup %5367 }
 0x604   :  { %1345 = vadd.xlane.f32.xlu2 %v1344_v40  ;;  %v1341_v9 = vsel %vm989_vm15, %v5368_v49, 0.0 }
 0x608   :  { %v863_v13 = vpop.f32.mrf.mxu0 }
 0x60c   :  { %997 = vmax.xlane.f32.xlu2 %v996_v47 }
 0x60d   :  { %1353 = vrot.lane.b32.xlu1 %v6022_v8, %s5622_s26 }
 0x61a   :  { %1342 = vadd.xlane.f32.xlu0 %v1341_v9 }
 0x622   :  { %994 = vmax.xlane.f32.xlu0 %v993_v52 }
 0x637   :  { %991 = vmax.xlane.f32.xlu1 %v990_v54 }
 0x64f   :  { %v1134_v10 = vpop.xlane.xlu0 %1133 }
 0x650   :  { %1609 = vrot.lane.b32.xlu1 %v6069_v55, %s5618_s22  ;;  %5369 = vrcp.f32 %v1134_v10 }
 0x656   :  { %v5370_v7 = vpop.eup %5369 }
 0x657   :  { %v1137_v56 = vpop.xlane.xlu1 %1136  ;;  %v1144_v58 = vmul.f32 %v5370_v7, %v6034_v61 }
 0x658   :  { %1441 = vrot.lane.b32.xlu1 %v5901_v35, %s5626_s28  ;;  %5371 = vrcp.f32 %v1137_v56 }
 0x65e   :  { %v5372_v0 = vpop.eup %5371 }
 0x65f   :  { %v1140_v63 = vpop.xlane.xlu1 %1139  ;;  %v1145_v2 = vmul.f32 %v5372_v0, %v6038_v3 }
 0x660   :  { %1439 = vrot.lane.b32.xlu1 %v5919_v44, %s5627_s29  ;;  %5373 = vrcp.f32 %v1140_v63 }
 0x662   :  { %v1151_v59 = vpop.permute.xlu0 %1150 }
 0x663   :  { %1183 = vmatpush.msrb.mxu0 %v1151_v59 }
 0x664   :  { %4931 = vmatmul.msk.f32.vlgmr.msrb.gmra.mxu0 %vm989_vm15, %v1144_v58 }
 0x665   :  { %1384 = vmatpush.msra.mxu0 %v5253_v60 }
 0x666   :  { %v5374_v4 = vpop.eup %5373 }
 0x667   :  { %1385 = vmatpush.msra.mxu0 %v5254_v62  ;;  %v1146_v6 = vmul.f32 %v5374_v4, %v6042_v23  ;;  %v1340_v14 = vpop.xlane.xlu1 %1339 }
 0x668   :  { %5375 = vrcp.f32 %v1340_v14 }
 0x66c   :  { %4932 = vmatmul.msk.f32.gmra.mxu0 %vm989_vm15, %v1145_v2 }
 0x66e   :  { %v5376_v61 = vpop.eup %5375 }
 0x66f   :  { %v1350_v15 = vmul.f32 %v5376_v61, %v5364_v28 }
 0x674   :  { %4933 = vmatmul.msk.f32.gmra.mxu0 %vm989_vm15, %v1146_v6 }
 0x677   :  { %v1346_v24 = vpop.xlane.xlu2 %1345 }
 0x67f   :  { %v1354_v17 = vpop.permute.xlu1 %1353  ;;  %v998_v36 = vpop.xlane.xlu2 %997 }
 0x680   :  { %1386 = vmatpush.msra.mxu0 %v1354_v17  ;;  %v1001_v47 = vsub.f32 %v6055_v43, %v998_v36  ;;  %v6101_v43 = vadd.f32 %v5898_v33, %v860_v42 }
 0x681   :  { %4946 = vmatmul.msk.f32.vlgmr.msra.gmra.mxu0 %vm989_vm15, %v1350_v15 }
 0x68d   :  { %v1343_v21 = vpop.xlane.xlu0 %1342 }
 0x68e   :  { %5377 = vrcp.f32 %v1343_v21  ;;  %v926_v21 = vpop.f32.mrf.mxu1 }
 0x68f   :  { %5379 = vrcp.f32 %v1346_v24 }
 0x694   :  { %v5378_v25 = vpop.eup %5377 }
 0x695   :  { %v995_v3 = vpop.xlane.xlu0 %994  ;;  %v1351_v27 = vmul.f32 %v5378_v25, %v5368_v49  ;;  %v5380_v11 = vpop.eup %5379  ;;  %v1006_v49 = vmul.f32 1.442695, %v1001_v47 }
 0x696   :  { %v1000_v19 = vsub.f32 %v987_v50, %v995_v3  ;;  %v1352_v29 = vmul.f32 %v5380_v11, %v6049_v34  ;;  %v6091_v50 = vadd.f32 %v5898_v33, %v863_v13  ;;  %v805_v33 = vld [vmem:[%s6112_s3 + $0x8] sm:$0xff]  ;;  %v929_v24 = vpop.f32.mrf.mxu1 }
 0x697   :  { %4947 = vmatmul.msk.f32.gmra.mxu0 %vm989_vm15, %v1351_v27  ;;  %1218 = vmatpush.msrb.mxu2 %v805_v33 }
 0x698   :  { %v1004_v23 = vmul.f32 1.442695, %v1000_v19  ;;  %v6146_v19 = vadd.f32 %v929_v24, %v6014_v37 }
 0x69a   :  { %5381 = vpow2.f32 %v1004_v23  ;;  %v6150_v23 = vadd.f32 %v926_v21, %v6014_v37 }
 0x69e   :  { %v932_v25 = vpop.f32.mrf.mxu1 }
 0x69f   :  { %4948 = vmatmul.msk.f32.gmra.mxu0 %vm989_vm15, %v1352_v29  ;;  %v6142_v3 = vadd.f32 %v932_v25, %v6014_v37 }
 0x6a0   :  { %v5382_v28 = vpop.eup %5381 }
 0x6a1   :  { %v1011_v30 = vsel %vm989_vm15, %v5382_v28, 0.0 }
 0x6a2   :  { %1012 = vadd.xlane.f32.xlu2 %v1011_v30 }
 0x6aa   :  { %v992_v40 = vpop.xlane.xlu1 %991 }
 0x6ab   :  { %v999_v45 = vsub.f32 %v986_v53, %v992_v40  ;;  %v6116_v53 = vld [vmem:[%s6112_s3] sm:$0xff] }
 0x6ac   :  { %1253 = vmatpush.msra.mxu1 %v6116_v53 }
 0x6ad   :  { %v1002_v1 = vmul.f32 1.442695, %v999_v45 }
 0x6af   :  { %5383 = vpow2.f32 %v1002_v1 }
 0x6b0   :  { %5385 = vpow2.f32 %v1006_v49 }
 0x6b5   :  { %v5384_v9 = vpop.eup %5383 }
 0x6b6   :  { %v1008_v34 = vsel %vm989_vm15, %v5384_v9, 0.0  ;;  %v5386_v52 = vpop.eup %5385 }
 0x6b7   :  { %1009 = vadd.xlane.f32.xlu0 %v1008_v34  ;;  %v1014_v51 = vsel %vm989_vm15, %v5386_v52, 0.0 }
 0x6ba   :  { %1613 = vrot.lane.b32.xlu2 %v6091_v50, %s5618_s22 }
 0x6bf   :  { %1015 = vadd.xlane.f32.xlu0 %v1014_v51 }
 0x6c2   :  { %1443 = vrot.lane.b32.xlu2 %v5906_v38, %s5626_s28  ;;  %v1610_v63 = vpop.permute.xlu1 %1609 }
 0x6ca   :  { %1437 = vrot.lane.b32.xlu2 %v5906_v38, %s5627_s29  ;;  %v1442_v6 = vpop.permute.xlu1 %1441 }
 0x6d2   :  { %v1440_v40 = vpop.permute.xlu1 %1439 }
 0x6d3   :  { %1611 = vrot.lane.b32.xlu0 %v6101_v43, %s5618_s22 }
 0x6db   :  { %1445 = vrot.lane.b32.xlu0 %v5919_v44, %s5626_s28 }
 0x6e1   :  { %v1185_v59 = vpop.f32.mrf.mxu0 }
 0x6e3   :  { %1435 = vrot.lane.b32.xlu0 %v5901_v35, %s5627_s29 }
 0x6e9   :  { %v1188_v2 = vpop.f32.mrf.mxu0 }
 0x6f1   :  { %v1191_v14 = vpop.f32.mrf.mxu0 }
 0x6fe   :  { %v1388_v61 = vpop.f32.mrf.mxu0 }
 0x714   :  { %v1391_v15 = vpop.f32.mrf.mxu0 }
 0x715   :  { %v1013_v54 = vpop.xlane.xlu2 %1012 }
 0x71c   :  { %v1394_v17 = vpop.f32.mrf.mxu0 }
 0x71d   :  { %v1614_v62 = vpop.permute.xlu2 %1613 }
 0x725   :  { %v1444_v4 = vpop.permute.xlu2 %1443 }
 0x72a   :  { %v1010_v38 = vpop.xlane.xlu0 %1009 }
 0x72b   :  { %5387 = vrcp.f32 %v1010_v38 }
 0x72c   :  { %5389 = vrcp.f32 %v1013_v54 }
 0x72d   :  { %v1438_v36 = vpop.permute.xlu2 %1437 }
 0x731   :  { %v5388_v44 = vpop.eup %5387 }
 0x732   :  { %v1020_v35 = vmul.f32 %v5388_v44, %v5384_v9  ;;  %v1016_v10 = vpop.xlane.xlu0 %1015  ;;  %v5390_v56 = vpop.eup %5389 }
 0x733   :  { %5391 = vrcp.f32 %v1016_v10  ;;  %v1021_v7 = vmul.f32 %v5390_v56, %v5382_v28 }
 0x734   :  { %4922 = vmatmul.msk.f32.vlgmr.msra.gmra.mxu2 %vm989_vm15, %v1020_v35 }
 0x735   :  { %1421 = vmatpush.msra.mxu2 %v806_v5 }
 0x739   :  { %v5392_v57 = vpop.eup %5391 }
 0x73a   :  { %v1022_v58 = vmul.f32 %v5392_v57, %v5386_v52 }
 0x73c   :  { %4923 = vmatmul.msk.f32.gmra.mxu2 %vm989_vm15, %v1021_v7 }
 0x744   :  { %4924 = vmatmul.msk.f32.gmra.mxu2 %vm989_vm15, %v1022_v58 }
 0x745   :  { %v1612_v60 = vpop.permute.xlu0 %1611 }
 0x74c   :  { %4934 = vmatmul.msk.f32.vlgmr.msrb.gmra.mxu2 %vm944_vm12, %v1185_v59 }
 0x74d   :  { %4964 = vmatpush.xpose.msk.msrb.mxu2 %vm944_vm12, %v1614_v62  ;;  %v1446_v0 = vpop.permute.xlu0 %1445 }
 0x74e   :  { %4952 = vmatpush.xpose.msk.msrb.mxu1 %vm944_vm12, %v1446_v0 }
 0x751   :  { %4965 = vmatpush.xpose.msk.msrb.mxu2 %vm944_vm12, %v1612_v60 }
 0x752   :  { %4953 = vmatpush.xpose.msk.msrb.mxu1 %vm944_vm12, %v1444_v4 }
 0x754   :  { %4935 = vmatmul.msk.f32.gmra.mxu2 %vm944_vm12, %v1188_v2 }
 0x755   :  { %4966 = vmatpush.xpose.msk.msrb.mxu2 %vm944_vm12, %v1610_v63  ;;  %v1436_v28 = vpop.permute.xlu0 %1435 }
 0x756   :  { %4954 = vmatpush.xpose.msk.msrb.mxu1 %vm944_vm12, %v1442_v6 }
 0x75c   :  { %4936 = vmatmul.msk.f32.gmra.mxu2 %vm944_vm12, %v1191_v14 }
 0x764   :  { %4949 = vmatmul.msk.f32.vlgmr.msra.gmra.mxu2 %vm944_vm12, %v1388_v61 }
 0x765   :  { %1887 = vmatpush.msra.mxu2 %v805_v33 }
 0x76c   :  { %4950 = vmatmul.msk.f32.gmra.mxu2 %vm944_vm12, %v1391_v15 }
 0x774   :  { %4951 = vmatmul.msk.f32.gmra.mxu2 %vm944_vm12, %v1394_v17 }
 0x77c   :  { %4967 = vmatmul.msk.f32.vlgmr.msrb.gmra.mxu2 %vm944_vm12, %v6069_v55 }
 0x77d   :  { %2090 = vmatpush.msrb.mxu2 %v806_v5 }
 0x784   :  { %4968 = vmatmul.msk.f32.gmra.mxu2 %vm944_vm12, %v6101_v43 }
 0x78c   :  { %4969 = vmatmul.msk.f32.gmra.mxu2 %vm944_vm12, %v6091_v50 }
 0x7b7   :  { %v1049_v27 = vpop.f32.mrf.mxu2 }
 0x7b8   :  { %4937 = vmatmul.msk.f32.vlgmr.msra.gmra.mxu1 %vm944_vm12, %v1049_v27 }
 0x7b9   :  { %1714 = vmatpush.msra.mxu1 %v6142_v3 }
 0x7bb   :  { %1715 = vmatpush.msra.mxu1 %v6146_v19 }
 0x7bd   :  { %1716 = vmatpush.msra.mxu1 %v6150_v23 }
 0x7bf   :  { %v1052_v11 = vpop.f32.mrf.mxu2 }
 0x7c0   :  { %4938 = vmatmul.msk.f32.gmra.mxu1 %vm944_vm12, %v1052_v11 }
 0x7c7   :  { %v1055_v29 = vpop.f32.mrf.mxu2 }
 0x7c8   :  { %4939 = vmatmul.msk.f32.gmra.mxu1 %vm944_vm12, %v1055_v29 }
 0x7cf   :  { %v6156_v30 = vpop.f32.mrf.mxu2 }
 0x7d0   :  { %4955 = vmatmul.msk.f32.vlgmr.msrb.gmra.mxu1 %vm944_vm12, %v1436_v28 }
 0x7d1   :  { %1922 = vmatpush.msrb.mxu1 %v6116_v53 }
 0x7d7   :  { %v6160_v37 = vpop.f32.mrf.mxu2 }
 0x7d8   :  { %4956 = vmatmul.msk.f32.gmra.mxu1 %vm944_vm12, %v1438_v36 }
 0x7df   :  { %v6163_v42 = vpop.f32.mrf.mxu2 }
 0x7e0   :  { %4957 = vmatmul.msk.f32.gmra.mxu1 %vm944_vm12, %v1440_v40 }
 0x7e7   :  { %v6166_v45 = vpop.f32.mrf.mxu2 }
 0x7ef   :  { %v6168_v47 = vpop.f32.mrf.mxu2 }
 0x7f7   :  { %v6170_v1 = vpop.f32.mrf.mxu2 }
 0x7ff   :  { %v1644_v49 = vpop.f32.mrf.mxu2 }
 0x800   :  { %v1653_v13 = vmul.f32 0.35355338, %v1644_v49 }
 0x802   :  { %v1656_v9 = vadd.f32 %v1653_v13, %v6002_v20 }
 0x804   :  { %v1659_v34 = vsel %vm989_vm15, %v1656_v9, -inf }
 0x805   :  { %1660 = vmax.xlane.f32.xlu0 %v1659_v34 }
 0x807   :  { %v1647_v52 = vpop.f32.mrf.mxu2 }
 0x808   :  { %v1654_v51 = vmul.f32 0.35355338, %v1647_v52 }
 0x80a   :  { %v1657_v33 = vadd.f32 %v1654_v51, %v6002_v20 }
 0x80c   :  { %v1662_v38 = vsel %vm989_vm15, %v1657_v33, -inf }
 0x80d   :  { %1663 = vmax.xlane.f32.xlu2 %v1662_v38 }
 0x80f   :  { %v1650_v53 = vpop.f32.mrf.mxu2 }
 0x810   :  { %v1655_v54 = vmul.f32 0.35355338, %v1650_v53 }
 0x812   :  { %v1658_v44 = vadd.f32 %v1655_v54, %v6010_v32 }
 0x814   :  { %v1665_v35 = vsel %vm989_vm15, %v1658_v44, -inf }
 0x815   :  { %1666 = vmax.xlane.f32.xlu1 %v1665_v35 }
 0x835   :  { %v6178_v5 = vpop.f32.mrf.mxu1 }
 0x83d   :  { %v6180_v10 = vpop.f32.mrf.mxu1 }
 0x845   :  { %v6182_v56 = vpop.f32.mrf.mxu1 }
 0x84d   :  { %v1476_v59 = vpop.f32.mrf.mxu1 }
 0x84e   :  { %v1485_v2 = vmul.f32 0.35355338, %v1476_v59 }
 0x850   :  { %v1488_v61 = vadd.f32 %v1485_v2, %v6002_v20 }
 0x852   :  { %v1491_v27 = vsel %vm989_vm15, %v1488_v61, -inf }
 0x855   :  { %v1479_v6 = vpop.f32.mrf.mxu1 }
 0x856   :  { %v1486_v24 = vmul.f32 0.35355338, %v1479_v6 }
 0x858   :  { %v1489_v11 = vadd.f32 %v1486_v24, %v6002_v20 }
 0x85a   :  { %v1494_v49 = vsel %vm989_vm15, %v1489_v11, -inf }
 0x85d   :  { %v1482_v29 = vpop.f32.mrf.mxu1 }
 0x85e   :  { %v1487_v36 = vmul.f32 0.35355338, %v1482_v29 }
 0x860   :  { %v1490_v13 = vadd.f32 %v1487_v36, %v6010_v32 }
 0x878   :  { %v1661_v7 = vpop.xlane.xlu0 %1660 }
 0x879   :  { %v1668_v57 = vsub.f32 %v1656_v9, %v1661_v7  ;;  %v1497_v9 = vsel %vm989_vm15, %v1490_v13, -inf }
 0x87b   :  { %v1671_v58 = vmul.f32 1.442695, %v1668_v57 }
 0x87d   :  { %5393 = vpow2.f32 %v1671_v58 }
 0x880   :  { %v1664_v60 = vpop.xlane.xlu2 %1663 }
 0x881   :  { %v1669_v62 = vsub.f32 %v1657_v33, %v1664_v60 }
 0x883   :  { %v5394_v63 = vpop.eup %5393  ;;  %v1673_v0 = vmul.f32 1.442695, %v1669_v62 }
 0x884   :  { %v1677_v4 = vsel %vm989_vm15, %v5394_v63, 0.0 }
 0x885   :  { %5395 = vpow2.f32 %v1673_v0  ;;  %1678 = vadd.xlane.f32.xlu0 %v1677_v4 }
 0x888   :  { %v1667_v14 = vpop.xlane.xlu1 %1666 }
 0x889   :  { %v1670_v15 = vsub.f32 %v1658_v44, %v1667_v14 }
 0x88b   :  { %v5396_v17 = vpop.eup %5395  ;;  %v1675_v21 = vmul.f32 1.442695, %v1670_v15 }
 0x88c   :  { %v1680_v25 = vsel %vm989_vm15, %v5396_v17, 0.0 }
 0x88d   :  { %5397 = vpow2.f32 %v1675_v21  ;;  %1681 = vadd.xlane.f32.xlu2 %v1680_v25  ;;  %1492 = vmax.xlane.f32.xlu0 %v1491_v27 }
 0x893   :  { %v5398_v28 = vpop.eup %5397 }
 0x894   :  { %v1683_v40 = vsel %vm989_vm15, %v5398_v28, 0.0 }
 0x895   :  { %1684 = vadd.xlane.f32.xlu1 %v1683_v40  ;;  %1495 = vmax.xlane.f32.xlu2 %v1494_v49 }
 0x89d   :  { %1498 = vmax.xlane.f32.xlu1 %v1497_v9 }
 0x8ad   :  { %5256 = vrot.lane.b32.xlu2 %v6019_v12, %s5627_s29 }
 0x8b5   :  { %1735 = vrot.lane.b32.xlu2 %v6101_v43, %s5619_s23 }
 0x8bd   :  { %1727 = vrot.lane.b32.xlu2 %v6069_v55, %s5620_s24 }
 0x8c5   :  { %1943 = vrot.lane.b32.xlu2 %v6091_v50, %s5621_s25 }
 0x8cd   :  { %1939 = vrot.lane.b32.xlu2 %v6069_v55, %s5621_s25 }
 0x8d5   :  { %2112 = vrot.lane.b32.xlu2 %v6101_v43, %s5626_s28 }
 0x8dd   :  { %2104 = vrot.lane.b32.xlu2 %v6069_v55, %s5627_s29 }
 0x8e5   :  { %2108 = vrot.lane.b32.xlu2 %v6091_v50, %s5627_s29 }
 0x8f8   :  { %v1679_v12 = vpop.xlane.xlu0 %1678 }
 0x8f9   :  { %5399 = vrcp.f32 %v1679_v12 }
 0x8ff   :  { %v5400_v34 = vpop.eup %5399 }
 0x900   :  { %v1689_v52 = vmul.f32 %v5400_v34, %v5394_v63  ;;  %v1682_v51 = vpop.xlane.xlu2 %1681  ;;  %v1493_v33 = vpop.xlane.xlu0 %1492 }
 0x901   :  { %5401 = vrcp.f32 %v1682_v51  ;;  %v1500_v38 = vsub.f32 %v1488_v61, %v1493_v33 }
 0x902   :  { %4970 = vmatmul.msk.f32.vlgmr.msra.gmra.mxu1 %vm989_vm15, %v1689_v52 }
 0x903   :  { %v1503_v53 = vmul.f32 1.442695, %v1500_v38 }
 0x905   :  { %5403 = vpow2.f32 %v1503_v53 }
 0x907   :  { %v5402_v54 = vpop.eup %5401 }
 0x908   :  { %v1685_v44 = vpop.xlane.xlu1 %1684  ;;  %v1496_v35 = vpop.xlane.xlu2 %1495  ;;  %v1690_v7 = vmul.f32 %v5402_v54, %v5396_v17  ;;  %v6255_v54 = vld [vmem:[%s6112_s3 + $0x18] sm:$0xff] }
 0x909   :  { %5405 = vrcp.f32 %v1685_v44  ;;  %v1501_v57 = vsub.f32 %v1489_v11, %v1496_v35  ;;  %1592 = vmatpush.msrb.mxu0 %v6255_v54 }
 0x90a   :  { %4971 = vmatmul.msk.f32.gmra.mxu1 %vm989_vm15, %v1690_v7 }
 0x90b   :  { %v5404_v58 = vpop.eup %5403  ;;  %v1505_v59 = vmul.f32 1.442695, %v1501_v57 }
 0x90c   :  { %v1509_v60 = vsel %vm989_vm15, %v5404_v58, 0.0 }
 0x90d   :  { %5407 = vpow2.f32 %v1505_v59  ;;  %1510 = vadd.xlane.f32.xlu0 %v1509_v60 }
 0x90f   :  { %v5406_v62 = vpop.eup %5405 }
 0x910   :  { %v5257_v63 = vpop.permute.xlu2 %5256  ;;  %v1499_v0 = vpop.xlane.xlu1 %1498  ;;  %v1691_v2 = vmul.f32 %v5406_v62, %v5398_v28 }
 0x911   :  { %v5258_v4 = vunpack.i.l.bf16 %v5257_v63  ;;  %v1502_v6 = vsub.f32 %v1490_v13, %v1499_v0  ;;  %v5259_v61 = vunpack.i.h.bf16 %v5257_v63 }
 0x912   :  { %4972 = vmatmul.msk.f32.gmra.mxu1 %vm989_vm15, %v1691_v2 }
 0x913   :  { %v5408_v14 = vpop.eup %5407  ;;  %v1507_v15 = vmul.f32 1.442695, %v1502_v6  ;;  %1555 = vmatpush.msrb.mxu3 %v5258_v4 }
 0x914   :  { %v1512_v17 = vsel %vm989_vm15, %v5408_v14, 0.0 }
 0x915   :  { %5409 = vpow2.f32 %v1507_v15  ;;  %1556 = vmatpush.msrb.mxu3 %v5259_v61  ;;  %1513 = vadd.xlane.f32.xlu1 %v1512_v17 }
 0x918   :  { %v1736_v11 = vpop.permute.xlu2 %1735 }
 0x91b   :  { %v5410_v21 = vpop.eup %5409 }
 0x91c   :  { %v1515_v24 = vsel %vm989_vm15, %v5410_v21, 0.0 }
 0x91d   :  { %1516 = vadd.xlane.f32.xlu1 %v1515_v24 }
 0x921   :  { %1524 = vrot.lane.b32.xlu0 %v6022_v8, %s5627_s29  ;;  %v6241_v8 = vpack.i.bf16 %v6146_v19, %v6142_v3  ;;  %v1728_v19 = vpop.permute.xlu2 %1727 }
 0x929   :  { %1733 = vrot.lane.b32.xlu0 %v6069_v55, %s5619_s23  ;;  %v1944_v12 = vpop.permute.xlu2 %1943 }
 0x931   :  { %1729 = vrot.lane.b32.xlu0 %v6101_v43, %s5620_s24  ;;  %v1940_v33 = vpop.permute.xlu2 %1939 }
 0x936   :  { %1737 = vrot.lane.b32.xlu1 %v6091_v50, %s5619_s23 }
 0x939   :  { %1731 = vrot.lane.b32.xlu0 %v6091_v50, %s5620_s24  ;;  %v2113_v35 = vpop.permute.xlu2 %2112 }
 0x93e   :  { %1941 = vrot.lane.b32.xlu1 %v6101_v43, %s5621_s25 }
 0x941   :  { %2114 = vrot.lane.b32.xlu0 %v6091_v50, %s5626_s28 }
 0x946   :  { %1933 = vrot.lane.b32.xlu1 %v6069_v55, %s5622_s26 }
 0x949   :  { %2110 = vrot.lane.b32.xlu0 %v6069_v55, %s5626_s28 }
 0x94e   :  { %1935 = vrot.lane.b32.xlu1 %v6101_v43, %s5622_s26 }
 0x951   :  { %2106 = vrot.lane.b32.xlu0 %v6101_v43, %s5627_s29 }
 0x956   :  { %1937 = vrot.lane.b32.xlu1 %v6091_v50, %s5622_s26 }
 0x95e   :  { %5261 = vrot.lane.b32.xlu1 %v6241_v8, %s5620_s24 }
 0x97f   :  { %v1718_v25 = vpop.f32.mrf.mxu1 }
 0x980   :  { %4985 = vmatmul.msk.f32.vlgmr.msrb.gmra.mxu1 %vm944_vm12, %v1718_v25  ;;  %v1511_v55 = vpop.xlane.xlu0 %1510 }
 0x981   :  { %5411 = vrcp.f32 %v1511_v55 }
 0x987   :  { %v1721_v27 = vpop.f32.mrf.mxu1  ;;  %v5412_v28 = vpop.eup %5411 }
 0x988   :  { %4986 = vmatmul.msk.f32.gmra.mxu1 %vm944_vm12, %v1721_v27  ;;  %v1514_v43 = vpop.xlane.xlu1 %1513  ;;  %v1521_v50 = vmul.f32 %v5412_v28, %v5404_v58  ;;  %v2105_v58 = vpop.permute.xlu2 %2104 }
 0x989   :  { %5413 = vrcp.f32 %v1514_v43 }
 0x98f   :  { %v1724_v29 = vpop.f32.mrf.mxu1  ;;  %v5414_v40 = vpop.eup %5413 }
 0x990   :  { %4987 = vmatmul.msk.f32.gmra.mxu1 %vm944_vm12, %v1724_v29  ;;  %v1517_v36 = vpop.xlane.xlu1 %1516  ;;  %v1522_v13 = vmul.f32 %v5414_v40, %v5408_v14  ;;  %v2109_v63 = vpop.permute.xlu2 %2108 }
 0x991   :  { %5415 = vrcp.f32 %v1517_v36 }
 0x993   :  { %v1525_v3 = vpop.permute.xlu0 %1524 }
 0x994   :  { %1557 = vmatpush.msrb.mxu3 %v1525_v3 }
 0x995   :  { %4958 = vmatmul.msk.f32.vlgmr.msrb.gmra.mxu3 %vm989_vm15, %v1521_v50 }
 0x997   :  { %v5416_v9 = vpop.eup %5415 }
 0x998   :  { %v1523_v52 = vmul.f32 %v5416_v9, %v5410_v21 }
 0x99b   :  { %v1734_v49 = vpop.permute.xlu0 %1733 }
 0x99d   :  { %4959 = vmatmul.msk.f32.gmra.mxu3 %vm989_vm15, %v1522_v13 }
 0x9a3   :  { %v1730_v34 = vpop.permute.xlu0 %1729 }
 0x9a5   :  { %4960 = vmatmul.msk.f32.gmra.mxu3 %vm989_vm15, %v1523_v52 }
 0x9a8   :  { %v1738_v51 = vpop.permute.xlu1 %1737 }
 0x9a9   :  { %4973 = vmatpush.xpose.msk.msra.mxu3 %vm944_vm12, %v1738_v51 }
 0x9ab   :  { %v1732_v38 = vpop.permute.xlu0 %1731 }
 0x9ad   :  { %4974 = vmatpush.xpose.msk.msra.mxu3 %vm944_vm12, %v1736_v11 }
 0x9b0   :  { %v1942_v53 = vpop.permute.xlu1 %1941 }
 0x9b1   :  { %4975 = vmatpush.xpose.msk.msra.mxu3 %vm944_vm12, %v1734_v49 }
 0x9b3   :  { %v2115_v44 = vpop.permute.xlu0 %2114 }
 0x9b4   :  { %4976 = vmatmul.msk.f32.vlgmr.msra.gmra.mxu3 %vm944_vm12, %v1728_v19  ;;  %5000 = vmatpush.xpose.msk.msra.mxu1 %vm944_vm12, %v2115_v44 }
 0x9b5   :  { %4988 = vmatpush.xpose.msk.msrb.mxu3 %vm944_vm12, %v1944_v12 }
 0x9b8   :  { %v1934_v7 = vpop.permute.xlu1 %1933  ;;  %5001 = vmatpush.xpose.msk.msra.mxu1 %vm944_vm12, %v2113_v35 }
 0x9b9   :  { %4989 = vmatpush.xpose.msk.msrb.mxu3 %vm944_vm12, %v1942_v53 }
 0x9bb   :  { %v2111_v57 = vpop.permute.xlu0 %2110 }
 0x9bc   :  { %4977 = vmatmul.msk.f32.gmra.mxu3 %vm944_vm12, %v1730_v34  ;;  %5002 = vmatpush.xpose.msk.msra.mxu1 %vm944_vm12, %v2111_v57 }
 0x9bd   :  { %4990 = vmatpush.xpose.msk.msrb.mxu3 %vm944_vm12, %v1940_v33 }
 0x9bf   :  { %5003 = vmatmul.msk.f32.vlgmr.msra.gmra.mxu1 %vm944_vm12, %v2105_v58 }
 0x9c0   :  { %v1936_v59 = vpop.permute.xlu1 %1935 }
 0x9c3   :  { %v2107_v60 = vpop.permute.xlu0 %2106 }
 0x9c4   :  { %4978 = vmatmul.msk.f32.gmra.mxu3 %vm944_vm12, %v1732_v38 }
 0x9c7   :  { %5004 = vmatmul.msk.f32.gmra.mxu1 %vm944_vm12, %v2107_v60 }
 0x9c8   :  { %v1938_v62 = vpop.permute.xlu1 %1937 }
 0x9cc   :  { %4991 = vmatmul.msk.f32.vlgmr.msrb.gmra.mxu3 %vm944_vm12, %v1934_v7 }
 0x9cf   :  { %5005 = vmatmul.msk.f32.gmra.mxu1 %vm944_vm12, %v2109_v63 }
 0x9d0   :  { %v5262_v0 = vpop.permute.xlu1 %5261 }
 0x9d1   :  { %v5263_v2 = vunpack.i.l.bf16 %v5262_v0  ;;  %v5264_v4 = vunpack.i.h.bf16 %v5262_v0 }
 0x9d3   :  { %1850 = vmatpush.msra.mxu0 %v5263_v2 }
 0x9d4   :  { %4992 = vmatmul.msk.f32.gmra.mxu3 %vm944_vm12, %v1936_v59 }
 0x9d5   :  { %1851 = vmatpush.msra.mxu0 %v5264_v4 }
 0x9dc   :  { %4993 = vmatmul.msk.f32.gmra.mxu3 %vm944_vm12, %v1938_v62 }
 0x9fd   :  { %v6285_v43 = vpop.f32.mrf.mxu1 }
 0xa05   :  { %v6289_v19 = vpop.f32.mrf.mxu1 }
 0xa0d   :  { %v6293_v34 = vpop.f32.mrf.mxu1 }
 0xa18   :  { %v1559_v6 = vpop.f32.mrf.mxu3 }
 0xa19   :  { %4961 = vmatmul.msk.f32.vlgmr.msrb.gmra.mxu0 %vm944_vm12, %v1559_v6 }
 0xa20   :  { %v1562_v14 = vpop.f32.mrf.mxu3 }
 0xa21   :  { %4962 = vmatmul.msk.f32.gmra.mxu0 %vm944_vm12, %v1562_v14 }
 0xa28   :  { %v1565_v61 = vpop.f32.mrf.mxu3 }
 0xa29   :  { %4963 = vmatmul.msk.f32.gmra.mxu0 %vm944_vm12, %v1565_v61 }
 0xa37   :  { %v1768_v15 = vpop.f32.mrf.mxu3 }
 0xa38   :  { %v1777_v17 = vmul.f32 0.35355338, %v1768_v15 }
 0xa3a   :  { %v1780_v21 = vadd.f32 %v1777_v17, %v6002_v20 }
 0xa3c   :  { %v1783_v24 = vsel %vm989_vm15, %v1780_v21, -inf  ;;  %v2145_v53 = vpop.f32.mrf.mxu1 }
 0xa3d   :  { %1784 = vmax.xlane.f32.xlu0 %v1783_v24  ;;  %v2154_v35 = vmul.f32 0.35355338, %v2145_v53 }
 0xa3f   :  { %v1771_v25 = vpop.f32.mrf.mxu3  ;;  %v2157_v57 = vadd.f32 %v2154_v35, %v6002_v20 }
 0xa40   :  { %v1778_v55 = vmul.f32 0.35355338, %v1771_v25 }
 0xa41   :  { %v2160_v58 = vsel %vm989_vm15, %v2157_v57, -inf }
 0xa42   :  { %v1781_v27 = vadd.f32 %v1778_v55, %v6002_v20 }
 0xa44   :  { %v1786_v11 = vsel %vm989_vm15, %v1781_v27, -inf  ;;  %v2148_v0 = vpop.f32.mrf.mxu1 }
 0xa45   :  { %1787 = vmax.xlane.f32.xlu1 %v1786_v11  ;;  %v2155_v14 = vmul.f32 0.35355338, %v2148_v0 }
 0xa47   :  { %v1774_v29 = vpop.f32.mrf.mxu3  ;;  %v6308_v17 = vadd.f32 %v2155_v14, %v6002_v20 }
 0xa48   :  { %v1779_v28 = vmul.f32 0.35355338, %v1774_v29 }
 0xa4a   :  { %v1782_v50 = vadd.f32 %v1779_v28, %v6010_v32 }
 0xa4c   :  { %v1789_v3 = vsel %vm989_vm15, %v1782_v50, -inf }
 0xa4d   :  { %1790 = vmax.xlane.f32.xlu2 %v1789_v3 }
 0xa4f   :  { %v1974_v36 = vpop.f32.mrf.mxu3 }
 0xa50   :  { %v1983_v40 = vmul.f32 0.35355338, %v1974_v36 }
 0xa52   :  { %v1986_v49 = vadd.f32 %v1983_v40, %v6002_v20 }
 0xa54   :  { %v1989_v13 = vsel %vm989_vm15, %v1986_v49, -inf }
 0xa55   :  { %1990 = vmax.xlane.f32.xlu0 %v1989_v13 }
 0xa57   :  { %v1977_v9 = vpop.f32.mrf.mxu3 }
 0xa58   :  { %v1984_v12 = vmul.f32 0.35355338, %v1977_v9 }
 0xa5a   :  { %v1987_v52 = vadd.f32 %v1984_v12, %v6002_v20 }
 0xa5c   :  { %v1992_v51 = vsel %vm989_vm15, %v1987_v52, -inf }
 0xa5d   :  { %1993 = vmax.xlane.f32.xlu2 %v1992_v51 }
 0xa5f   :  { %v1980_v33 = vpop.f32.mrf.mxu3 }
 0xa60   :  { %v1985_v38 = vmul.f32 0.35355338, %v1980_v33 }
 0xa62   :  { %v1988_v44 = vadd.f32 %v1985_v38, %v6010_v32 }
 0xa64   :  { %v1995_v7 = vsel %vm989_vm15, %v1988_v44, -inf }
 0xa65   :  { %1996 = vmax.xlane.f32.xlu1 %v1995_v7 }
 0xa6d   :  { %2161 = vmax.xlane.f32.xlu1 %v2160_v58 }
 0xa86   :  { %5271 = vrot.lane.b32.xlu1 %v6241_v8, %s5627_s29 }
 0xab0   :  { %v1785_v59 = vpop.xlane.xlu0 %1784 }
 0xab1   :  { %v1792_v60 = vsub.f32 %v1780_v21, %v1785_v59 }
 0xab3   :  { %v1795_v62 = vmul.f32 1.442695, %v1792_v60 }
 0xab5   :  { %5417 = vpow2.f32 %v1795_v62 }
 0xab8   :  { %v1788_v63 = vpop.xlane.xlu1 %1787 }
 0xab9   :  { %v1793_v2 = vsub.f32 %v1781_v27, %v1788_v63  ;;  %v2163_v27 = vsel %vm989_vm15, %v6308_v17, -inf }
 0xabb   :  { %v6303_v4 = vpop.eup %5417  ;;  %v1797_v6 = vmul.f32 1.442695, %v1793_v2  ;;  %v2151_v2 = vpop.f32.mrf.mxu1 }
 0xabc   :  { %v1801_v61 = vsel %vm989_vm15, %v6303_v4, 0.0 }
 0xabd   :  { %5419 = vpow2.f32 %v1797_v6  ;;  %1802 = vadd.xlane.f32.xlu0 %v1801_v61  ;;  %v2156_v6 = vmul.f32 0.35355338, %v2151_v2  ;;  %v1594_v61 = vpop.f32.mrf.mxu0 }
 0xabf   :  { %v6338_v14 = vadd.f32 %v2156_v6, %v6010_v32 }
 0xac0   :  { %v1791_v15 = vpop.xlane.xlu2 %1790 }
 0xac1   :  { %v1794_v24 = vsub.f32 %v1782_v50, %v1791_v15 }
 0xac3   :  { %v6310_v21 = vpop.eup %5419  ;;  %v1799_v25 = vmul.f32 1.442695, %v1794_v24 }
 0xac4   :  { %v1804_v55 = vsel %vm989_vm15, %v6310_v21, 0.0 }
 0xac5   :  { %5421 = vpow2.f32 %v1799_v25  ;;  %1805 = vadd.xlane.f32.xlu2 %v1804_v55  ;;  %2164 = vmax.xlane.f32.xlu0 %v2163_v27  ;;  %v6350_v25 = vld [vmem:[%s6276_s7] ss:$0 sm:$0xff] }
 0xac8   :  { %v1991_v11 = vpop.xlane.xlu0 %1990 }
 0xac9   :  { %v1998_v29 = vsub.f32 %v1986_v49, %v1991_v11 }
 0xacb   :  { %v6316_v28 = vpop.eup %5421  ;;  %v2001_v3 = vmul.f32 1.442695, %v1998_v29 }
 0xacc   :  { %v1807_v50 = vsel %vm989_vm15, %v6316_v28, 0.0 }
 0xacd   :  { %5423 = vpow2.f32 %v2001_v3  ;;  %1808 = vadd.xlane.f32.xlu2 %v1807_v50 }
 0xad0   :  { %v1994_v36 = vpop.xlane.xlu2 %1993 }
 0xad1   :  { %v1999_v40 = vsub.f32 %v1987_v52, %v1994_v36  ;;  %v1597_v36 = vpop.f32.mrf.mxu0 }
 0xad3   :  { %v6320_v13 = vpop.eup %5423  ;;  %v2003_v9 = vmul.f32 1.442695, %v1999_v40 }
 0xad4   :  { %v2007_v12 = vsel %vm989_vm15, %v6320_v13, 0.0 }
 0xad5   :  { %5425 = vpow2.f32 %v2003_v9  ;;  %2008 = vadd.xlane.f32.xlu2 %v2007_v12 }
 0xad8   :  { %v1997_v51 = vpop.xlane.xlu1 %1996 }
 0xad9   :  { %v2000_v49 = vsub.f32 %v1988_v44, %v1997_v51  ;;  %1819 = vrot.lane.b32.xlu0 %v6150_v23, %s5620_s24  ;;  %v1262_v51 = vadd.f32 %v6182_v56, %v6163_v42 }
 0xadb   :  { %v6326_v33 = vpop.eup %5425  ;;  %v2005_v38 = vmul.f32 1.442695, %v2000_v49 }
 0xadc   :  { %v2010_v53 = vsel %vm989_vm15, %v6326_v33, 0.0 }
 0xadd   :  { %5427 = vpow2.f32 %v2005_v38  ;;  %2011 = vadd.xlane.f32.xlu1 %v2010_v53  ;;  %v1600_v53 = vpop.f32.mrf.mxu0 }
 0xae0   :  { %v2162_v44 = vpop.xlane.xlu1 %2161 }
 0xae1   :  { %v2169_v7 = vsub.f32 %v2157_v57, %v2162_v44  ;;  %v1256_v57 = vadd.f32 %v6178_v5, %v6156_v30 }
 0xae3   :  { %v6330_v52 = vpop.eup %5427  ;;  %v2172_v58 = vmul.f32 1.442695, %v2169_v7  ;;  %v1432_v15 = vadd.f32 %v6166_v45, %v1256_v57 }
 0xae4   :  { %v2013_v35 = vsel %vm989_vm15, %v6330_v52, 0.0 }
 0xae5   :  { %2014 = vadd.xlane.f32.xlu1 %v2013_v35  ;;  %5429 = vpow2.f32 %v2172_v58  ;;  %v1603_v24 = vadd.f32 %v1594_v61, %v1432_v15 }
 0xae7   :  { %v2279_v55 = vadd.f32 %v6350_v25, %v1603_v24 }
 0xae9   :  { %v6354_v29 = vadd.f32 %v2279_v55, %v5878_v18 }
 0xaeb   :  { %v5430_v63 = vpop.eup %5429  ;;  %v2293_v30 = vsel %vm635_vm7, %v6354_v29, 0.0 }
 0xaec   :  { %v2178_v0 = vsel %vm989_vm15, %v5430_v63, 0.0 }
 0xaed   :  { %5266 = vrot.lane.b32.xlu2 %v6241_v8, %s5622_s26  ;;  %v2166_v8 = vsel %vm989_vm15, %v6338_v14, -inf }
 0xaf8   :  { %v5272_v59 = vpop.permute.xlu1 %5271 }
 0xaf9   :  { %v5273_v60 = vunpack.i.l.bf16 %v5272_v59  ;;  %v5274_v62 = vunpack.i.h.bf16 %v5272_v59 }
 0xafb   :  { %2224 = vmatpush.msra.mxu3 %v5273_v60 }
 0xafd   :  { %2225 = vmatpush.msra.mxu3 %v5274_v62 }
 0xb03   :  { %2179 = vadd.xlane.f32.xlu0 %v2178_v0 }
 0xb16   :  { %2167 = vmax.xlane.f32.xlu2 %v2166_v8  ;;  %v1259_v8 = vadd.f32 %v6180_v10, %v6160_v37 }
 0xb17   :  { %2193 = vrot.lane.b32.xlu0 %v6150_v23, %s5627_s29 }
 0xb18   :  { %v1433_v15 = vadd.f32 %v6168_v47, %v1259_v8 }
 0xb1a   :  { %v1604_v24 = vadd.f32 %v1597_v36, %v1433_v15  ;;  %v2451_v15 = vld [vmem:[%s6437_s20 + $0x8] sm:$0xff] }
 0xb1c   :  { %v2280_v37 = vadd.f32 %v6350_v25, %v1604_v24  ;;  %v2450_v24 = vld [vmem:[%s6437_s20] sm:$0xff] }
 0xb2e   :  { %2022 = vrot.lane.b32.xlu2 %v6150_v23, %s5622_s26 }
 0xb30   :  { %v1803_v27 = vpop.xlane.xlu0 %1802 }
 0xb31   :  { %5431 = vrcp.f32 %v1803_v27 }
 0xb37   :  { %v5432_v45 = vpop.eup %5431 }
 0xb38   :  { %v1806_v11 = vpop.xlane.xlu2 %1805  ;;  %v2165_v23 = vpop.xlane.xlu0 %2164  ;;  %v1813_v9 = vmul.f32 %v5432_v45, %v6303_v4  ;;  %v1434_v4 = vadd.f32 %v6170_v1, %v1262_v51 }
 0xb39   :  { %v2170_v5 = vsub.f32 %v6308_v17, %v2165_v23  ;;  %5433 = vrcp.f32 %v1806_v11 }
 0xb3a   :  { %v1605_v7 = vadd.f32 %v1600_v53, %v1434_v4 }
 0xb3b   :  { %v2174_v40 = vmul.f32 1.442695, %v2170_v5 }
 0xb3c   :  { %v6371_v56 = vadd.f32 %v6350_v25, %v1605_v7 }
 0xb3d   :  { %5435 = vpow2.f32 %v2174_v40 }
 0xb3e   :  { %v2299_v1 = vsel %vm635_vm7, %v6371_v56, 0.0 }
 0xb3f   :  { %v5434_v18 = vpop.eup %5433 }
 0xb40   :  { %v1809_v3 = vpop.xlane.xlu2 %1808  ;;  %v1814_v35 = vmul.f32 %v5434_v18, %v6310_v21 }
 0xb41   :  { %2294 = vadd.xlane.f32.xlu0 %v2293_v30  ;;  %5437 = vrcp.f32 %v1809_v3  ;;  %v2286_v3 = vadd.f32 %v2280_v37, %v5885_v26 }
 0xb43   :  { %v6363_v17 = vpop.eup %5435  ;;  %v2296_v30 = vsel %vm635_vm7, %v2286_v3, 0.0 }
 0xb44   :  { %v2181_v58 = vsel %vm989_vm15, %v6363_v17, 0.0 }
 0xb47   :  { %v5438_v42 = vpop.eup %5437 }
 0xb48   :  { %v2009_v50 = vpop.xlane.xlu2 %2008  ;;  %v1815_v59 = vmul.f32 %v5438_v42, %v6316_v28 }
 0xb4b   :  { %v1820_v12 = vpop.permute.xlu0 %1819 }
 0xb4c   :  { %1852 = vmatpush.msra.mxu0 %v1820_v12 }
 0xb4d   :  { %4979 = vmatmul.msk.f32.vlgmr.msra.gmra.mxu0 %vm989_vm15, %v1813_v9 }
 0xb50   :  { %v5267_v49 = vpop.permute.xlu2 %5266  ;;  %v2012_v28 = vpop.xlane.xlu1 %2011 }
 0xb51   :  { %v5268_v38 = vunpack.i.l.bf16 %v5267_v49  ;;  %v5269_v44 = vunpack.i.h.bf16 %v5267_v49 }
 0xb53   :  { %2053 = vmatpush.msrb.mxu0 %v5268_v38 }
 0xb55   :  { %4980 = vmatmul.msk.f32.gmra.mxu0 %vm989_vm15, %v1814_v35 }
 0xb56   :  { %2054 = vmatpush.msrb.mxu0 %v5269_v44 }
 0xb57   :  { %2182 = vadd.xlane.f32.xlu2 %v2181_v58 }
 0xb58   :  { %v2015_v10 = vpop.xlane.xlu1 %2014 }
 0xb5d   :  { %4981 = vmatmul.msk.f32.gmra.mxu0 %vm989_vm15, %v1815_v59 }
 0xb5f   :  { %2300 = vadd.xlane.f32.xlu2 %v2299_v1 }
 0xb76   :  { %v2180_v21 = vpop.xlane.xlu0 %2179 }
 0xb77   :  { %5439 = vrcp.f32 %v2180_v21 }
 0xb78   :  { %5441 = vrcp.f32 %v2009_v50 }
 0xb7d   :  { %v5440_v60 = vpop.eup %5439 }
 0xb7e   :  { %v2190_v62 = vmul.f32 %v5440_v60, %v5430_v63  ;;  %v5442_v61 = vpop.eup %5441 }
 0xb7f   :  { %v2019_v63 = vmul.f32 %v5442_v61, %v6320_v13  ;;  %v5630_v13 = vmov 32.0   ;;  %v2452_v61 = vld [vmem:[%s6437_s20 + $0x10] sm:$0xff] }
 0xb89   :  { %v2168_v0 = vpop.xlane.xlu2 %2167  ;;  %v2194_v2 = vpop.permute.xlu0 %2193 }
 0xb8a   :  { %v2171_v6 = vsub.f32 %v6338_v14, %v2168_v0  ;;  %2226 = vmatpush.msra.mxu3 %v2194_v2 }
 0xb8b   :  { %5006 = vmatmul.msk.f32.vlgmr.msra.gmra.mxu3 %vm989_vm15, %v2190_v62 }
 0xb8c   :  { %v2176_v57 = vmul.f32 1.442695, %v2171_v6 }
 0xb8e   :  { %5443 = vpow2.f32 %v2176_v57  ;;  %v2453_v57 = vld [vmem:[%s6437_s20 + $0x18] sm:$0xff] }
 0xb8f   :  { %5445 = vrcp.f32 %v2012_v28 }
 0xb90   :  { %5447 = vrcp.f32 %v2015_v10 }
 0xb91   :  { %v2023_v55 = vpop.permute.xlu2 %2022  ;;  %5449 = vrcp.f32 %v5630_v13  ;;  %v6451_v13 = vld [vmem:[%s6395_s12] ss:$0 sm:$0xff] }
 0xb92   :  { %2055 = vmatpush.msrb.mxu0 %v2023_v55 }
 0xb93   :  { %4994 = vmatmul.msk.f32.vlgmr.msrb.gmra.mxu0 %vm989_vm15, %v2019_v63 }
 0xb94   :  { %v5444_v14 = vpop.eup %5443  ;;  %2261 = vmatpush.msra.mxu0 %v6255_v54 }
 0xb95   :  { %v2184_v27 = vsel %vm989_vm15, %v5444_v14, 0.0  ;;  %v5446_v11 = vpop.eup %5445 }
 0xb96   :  { %2185 = vadd.xlane.f32.xlu1 %v2184_v27  ;;  %v2020_v47 = vmul.f32 %v5446_v11, %v6326_v33  ;;  %v5448_v23 = vpop.eup %5447 }
 0xb97   :  { %v5450_v54 = vpop.eup %5449  ;;  %v2021_v5 = vmul.f32 %v5448_v23, %v6330_v52  ;;  %v6454_v23 = vld [vmem:[%s6401_s16] ss:$0 sm:$0xff] }
 0xb98   :  { %v2312_v45 = vmul.f32 32.0, %v5450_v54  ;;  %vm2316_vm0 = vweird.f32 %v5450_v54 }
 0xb9a   :  { %v2313_v26 = vsub.f32 1.0, %v2312_v45 }
 0xb9b   :  { %4995 = vmatmul.msk.f32.gmra.mxu0 %vm989_vm15, %v2020_v47 }
 0xb9c   :  { %v2314_v33 = vmul.f32 %v5450_v54, %v2313_v26 }
 0xb9e   :  { %2297 = vadd.xlane.f32.xlu1 %v2296_v30  ;;  %v2315_v50 = vadd.f32 %v5450_v54, %v2314_v33 }
 0xba0   :  { %v6403_v52 = vsel %vm2316_vm0, %v5450_v54, %v2315_v50 }
 0xba3   :  { %4996 = vmatmul.msk.f32.gmra.mxu0 %vm989_vm15, %v2021_v5 }
 0xbb4   :  { %v2295_v36 = vpop.xlane.xlu0 %2294 }
 0xbb5   :  { %v2318_v40 = vmul.f32 %v6403_v52, %v2295_v36 }
 0xbb7   :  { %v6407_v9 = vsub.f32 %v6354_v29, %v2318_v40 }
 0xbb9   :  { %v2330_v12 = vmul.f32 %v6407_v9, %v6407_v9 }
 0xbbb   :  { %v2336_v18 = vsel %vm635_vm7, %v2330_v12, 0.0 }
 0xbbc   :  { %2337 = vadd.xlane.f32.xlu1 %v2336_v18 }
 0xbca   :  { %v2183_v51 = vpop.xlane.xlu2 %2182  ;;  %v1854_v49 = vpop.f32.mrf.mxu0 }
 0xbcb   :  { %5451 = vrcp.f32 %v2183_v51  ;;  %4982 = vmatmul.msk.f32.vlgmr.msra.gmra.mxu2 %vm944_vm12, %v1854_v49 }
 0xbcc   :  { %2488 = vmatpush.msra.mxu2 %v2453_v57 }
 0xbce   :  { %2489 = vmatpush.msra.mxu2 %v2452_v61 }
 0xbd0   :  { %2490 = vmatpush.msra.mxu2 %v2451_v15 }
 0xbd1   :  { %v5452_v38 = vpop.eup %5451 }
 0xbd2   :  { %v2301_v53 = vpop.xlane.xlu2 %2300  ;;  %v1857_v35 = vpop.f32.mrf.mxu0  ;;  %v2191_v4 = vmul.f32 %v5452_v38, %v6363_v17  ;;  %2491 = vmatpush.msra.mxu2 %v2450_v24 }
 0xbd3   :  { %v2320_v44 = vmul.f32 %v6403_v52, %v2301_v53  ;;  %4983 = vmatmul.msk.f32.gmra.mxu2 %vm944_vm12, %v1857_v35  ;;  %v2524_v35 = vld [vmem:[%s6470_s10 + $0x38] sm:$0xff] }
 0xbd4   :  { %5007 = vmatmul.msk.f32.gmra.mxu3 %vm989_vm15, %v2191_v4  ;;  %v2523_v4 = vld [vmem:[%s6470_s10 + $0x30] sm:$0xff]  ;;  %2556 = vmatpush.msrb.mxu1 %v2524_v35 }
 0xbd5   :  { %v6418_v29 = vsub.f32 %v6371_v56, %v2320_v44 }
 0xbd6   :  { %2557 = vmatpush.msrb.mxu1 %v2523_v4 }
 0xbd7   :  { %v2332_v7 = vmul.f32 %v6418_v29, %v6418_v29 }
 0xbd9   :  { %v2342_v58 = vsel %vm635_vm7, %v2332_v7, 0.0  ;;  %v2522_v7 = vld [vmem:[%s6470_s10 + $0x28] sm:$0xff] }
 0xbda   :  { %v1860_v42 = vpop.f32.mrf.mxu0  ;;  %2343 = vadd.xlane.f32.xlu1 %v2342_v58  ;;  %2558 = vmatpush.msrb.mxu1 %v2522_v7 }
 0xbdb   :  { %4984 = vmatmul.msk.f32.gmra.mxu2 %vm944_vm12, %v1860_v42 }
 0xc09   :  { %v2186_v59 = vpop.xlane.xlu1 %2185 }
 0xc0a   :  { %5453 = vrcp.f32 %v2186_v59 }
 0xc0e   :  { %v2228_v17 = vpop.f32.mrf.mxu3 }
 0xc0f   :  { %5009 = vmatmul.msk.f32.vlgmr.msra.gmra.mxu0 %vm944_vm12, %v2228_v17  ;;  %v2521_v17 = vld [vmem:[%s6470_s10 + $0x20] sm:$0xff] }
 0xc10   :  { %v5454_v1 = vpop.eup %5453  ;;  %v2057_v21 = vpop.f32.mrf.mxu0  ;;  %2559 = vmatpush.msrb.mxu1 %v2521_v17 }
 0xc11   :  { %v2298_v60 = vpop.xlane.xlu1 %2297  ;;  %4997 = vmatmul.msk.f32.vlgmr.msrb.gmra.mxu2 %vm944_vm12, %v2057_v21  ;;  %v2192_v56 = vmul.f32 %v5454_v1, %v5444_v14 }
 0xc12   :  { %v2319_v62 = vmul.f32 %v6403_v52, %v2298_v60 }
 0xc13   :  { %5008 = vmatmul.msk.f32.gmra.mxu3 %vm989_vm15, %v2192_v56 }
 0xc14   :  { %v6428_v0 = vsub.f32 %v2286_v3, %v2319_v62  ;;  %v2520_v62 = vld [vmem:[%s6470_s10 + $0x18] sm:$0xff] }
 0xc15   :  { %2560 = vmatpush.msrb.mxu1 %v2520_v62 }
 0xc16   :  { %v2331_v2 = vmul.f32 %v6428_v0, %v6428_v0 }
 0xc18   :  { %v2060_v6 = vpop.f32.mrf.mxu0  ;;  %v2339_v8 = vsel %vm635_vm7, %v2331_v2, 0.0 }
 0xc19   :  { %2340 = vadd.xlane.f32.xlu2 %v2339_v8  ;;  %4998 = vmatmul.msk.f32.gmra.mxu2 %vm944_vm12, %v2060_v6 }
 0xc20   :  { %v2063_v28 = vpop.f32.mrf.mxu0 }
 0xc21   :  { %4999 = vmatmul.msk.f32.gmra.mxu2 %vm944_vm12, %v2063_v28 }
 0xc2f   :  { %v2338_v63 = vpop.xlane.xlu1 %2337 }
 0xc30   :  { %v2354_v55 = vmul.f32 %v2338_v63, %v6403_v52 }
 0xc32   :  { %v2360_v14 = vadd.f32 1e-05, %v2354_v55 }
 0xc34   :  { %5455 = vrsqrt.f32 %v2360_v14  ;;  %vm2372_vm2 = vweird.f32 %v2360_v14 }
 0xc3a   :  { %v5456_v37 = vpop.eup %5455 }
 0xc3b   :  { %v2367_v10 = vmul.f32 %v5456_v37, %v2360_v14  ;;  %vm2373_vm1 = vweird.f32 %v5456_v37 }
 0xc3c   :  { %vm2374_vm3 = vmor %vm2372_vm2, %vm2373_vm1 }
 0xc3d   :  { %v2368_v27 = vmul.f32 %v5456_v37, %v2367_v10 }
 0xc3f   :  { %v2369_v11 = vmul.f32 0.5, %v2368_v27 }
 0xc41   :  { %v2370_v47 = vsub.f32 1.5, %v2369_v11 }
 0xc43   :  { %v2371_v3 = vmul.f32 %v5456_v37, %v2370_v47 }
 0xc45   :  { %v2375_v30 = vsel %vm2374_vm3, %v5456_v37, %v2371_v3 }
 0xc46   :  { %v2426_v54 = vmul.f32 %v2375_v30, %v6407_v9  ;;  %v2519_v30 = vld [vmem:[%s6470_s10 + $0x10] sm:$0xff] }
 0xc47   :  { %2561 = vmatpush.msrb.mxu1 %v2519_v30 }
 0xc48   :  { %v2435_v5 = vmul.f32 %v6451_v13, %v2426_v54 }
 0xc4a   :  { %v6459_v45 = vadd.f32 %v6454_v23, %v2435_v5 }
 0xc4c   :  { %5012 = vmatmul.msk.f32.vlgmr.msra.gmra.mxu2 %vm635_vm7, %v6459_v45 }
 0xc4d   :  { %v2344_v50 = vpop.xlane.xlu1 %2343 }
 0xc4e   :  { %v1889_v33 = vpop.f32.mrf.mxu2  ;;  %v2356_v36 = vmul.f32 %v2344_v50, %v6403_v52 }
 0xc4f   :  { %v1925_v44 = vadd.f32 %v6285_v43, %v1889_v33 }
 0xc50   :  { %v2362_v12 = vadd.f32 1e-05, %v2356_v36 }
 0xc52   :  { %5457 = vrsqrt.f32 %v2362_v12  ;;  %vm2392_vm9 = vweird.f32 %v2362_v12 }
 0xc56   :  { %v6465_v40 = vpop.f32.mrf.mxu2 }
 0xc57   :  { %v2231_v26 = vpop.f32.mrf.mxu3  ;;  %v1928_v36 = vadd.f32 %v6289_v19, %v6465_v40 }
 0xc58   :  { %5010 = vmatmul.msk.f32.gmra.mxu0 %vm944_vm12, %v2231_v26  ;;  %v5458_v51 = vpop.eup %5457  ;;  %v6508_v26 = vld [vmem:[%s6448_s4] ss:$0 sm:$0xff] }
 0xc59   :  { %v2387_v53 = vmul.f32 %v5458_v51, %v2362_v12  ;;  %vm2393_vm5 = vweird.f32 %v5458_v51 }
 0xc5a   :  { %vm2394_vm10 = vmor %vm2392_vm9, %vm2393_vm5 }
 0xc5b   :  { %v2388_v58 = vmul.f32 %v5458_v51, %v2387_v53 }
 0xc5d   :  { %v2389_v2 = vmul.f32 0.5, %v2388_v58 }
 0xc5e   :  { %v6472_v9 = vpop.f32.mrf.mxu2 }
 0xc5f   :  { %v2390_v57 = vsub.f32 1.5, %v2389_v2  ;;  %v1931_v4 = vadd.f32 %v6293_v34, %v6472_v9  ;;  %v6528_v2 = vld [vmem:[%s6505_s15] ss:$0 sm:$0xff] }
 0xc61   :  { %v2391_v63 = vmul.f32 %v5458_v51, %v2390_v57 }
 0xc63   :  { %v2395_v37 = vsel %vm2394_vm10, %v5458_v51, %v2391_v63 }
 0xc64   :  { %v2428_v27 = vmul.f32 %v2395_v37, %v6418_v29  ;;  %v2517_v29 = vld [vmem:[%s6470_s10] sm:$0xff] }
 0xc66   :  { %v2437_v47 = vmul.f32 %v6451_v13, %v2428_v27 }
 0xc68   :  { %v6495_v3 = vadd.f32 %v6454_v23, %v2437_v47 }
 0xc8c   :  { %v2341_v18 = vpop.xlane.xlu2 %2340  ;;  %v2263_v1 = vpop.f32.mrf.mxu0 }
 0xc8d   :  { %v2355_v49 = vmul.f32 %v2341_v18, %v6403_v52 }
 0xc8f   :  { %v2361_v38 = vadd.f32 1e-05, %v2355_v49 }
 0xc91   :  { %5459 = vrsqrt.f32 %v2361_v38  ;;  %vm2382_vm6 = vweird.f32 %v2361_v38 }
 0xc94   :  { %v2092_v42 = vpop.f32.mrf.mxu2 }
 0xc95   :  { %v2101_v59 = vadd.f32 %v2092_v42, %v1925_v44 }
 0xc96   :  { %v2234_v21 = vpop.f32.mrf.mxu3 }
 0xc97   :  { %v5460_v60 = vpop.eup %5459  ;;  %v2272_v56 = vadd.f32 %v2263_v1, %v2101_v59  ;;  %5011 = vmatmul.msk.f32.gmra.mxu0 %vm944_vm12, %v2234_v21 }
 0xc98   :  { %v2377_v6 = vmul.f32 %v5460_v60, %v2361_v38  ;;  %vm2383_vm4 = vweird.f32 %v5460_v60 }
 0xc99   :  { %v2282_v8 = vadd.f32 %v6350_v25, %v2272_v56  ;;  %vm2384_vm8 = vmor %vm2382_vm6, %vm2383_vm4 }
 0xc9a   :  { %v2378_v43 = vmul.f32 %v5460_v60, %v2377_v6 }
 0xc9b   :  { %v2288_v28 = vadd.f32 %v2282_v8, %v5914_v41 }
 0xc9c   :  { %v2379_v61 = vmul.f32 0.5, %v2378_v43  ;;  %v2095_v54 = vpop.f32.mrf.mxu2 }
 0xc9d   :  { %v2302_v15 = vsel %vm635_vm7, %v2288_v28, 0.0  ;;  %v2102_v18 = vadd.f32 %v2095_v54, %v1928_v36 }
 0xc9e   :  { %v2380_v24 = vsub.f32 1.5, %v2379_v61  ;;  %2303 = vadd.xlane.f32.xlu2 %v2302_v15 }
 0xca0   :  { %v2381_v55 = vmul.f32 %v5460_v60, %v2380_v24 }
 0xca2   :  { %v2385_v14 = vsel %vm2384_vm8, %v5460_v60, %v2381_v55 }
 0xca3   :  { %v2427_v41 = vmul.f32 %v2385_v14, %v6428_v0  ;;  %v2518_v0 = vld [vmem:[%s6470_s10 + $0x8] sm:$0xff] }
 0xca4   :  { %2562 = vmatpush.msrb.mxu1 %v2518_v0  ;;  %v2098_v5 = vpop.f32.mrf.mxu2 }
 0xca5   :  { %v2436_v10 = vmul.f32 %v6451_v13, %v2427_v41  ;;  %v2103_v19 = vadd.f32 %v2098_v5, %v1931_v4 }
 0xca6   :  { %2563 = vmatpush.msrb.mxu1 %v2517_v29 }
 0xca7   :  { %v6489_v11 = vadd.f32 %v6454_v23, %v2436_v10 }
 0xca9   :  { %5013 = vmatmul.msk.f32.gmra.mxu2 %vm635_vm7, %v6489_v11 }
 0xcb1   :  { %5014 = vmatmul.msk.f32.gmra.mxu2 %vm635_vm7, %v6495_v3 }
 0xccf   :  { %v2493_v33 = vpop.f32.mrf.mxu2 }
 0xcd0   :  { %v2494_v50 = vadd.f32 %v6508_v26, %v2493_v33 }
 0xcd2   :  { %v2511_v12 = vmax.f32 %v2494_v50, 0.0 }
 0xcd4   :  { %5018 = vmatmul.msk.f32.vlgmr.msrb.gmra.mxu1 %vm2529_vm11, %v2511_v12 }
 0xcd5   :  { %v2266_v51 = vpop.f32.mrf.mxu0 }
 0xcd6   :  { %v2273_v49 = vadd.f32 %v2266_v51, %v2102_v18 }
 0xcd8   :  { %v2283_v38 = vadd.f32 %v6350_v25, %v2273_v49 }
 0xcda   :  { %v2289_v53 = vadd.f32 %v2283_v38, %v5930_v48 }
 0xcdc   :  { %v2305_v35 = vsel %vm635_vm7, %v2289_v53, 0.0 }
 0xcdd   :  { %2306 = vadd.xlane.f32.xlu1 %v2305_v35 }
 0xd11   :  { %v2304_v44 = vpop.xlane.xlu2 %2303 }
 0xd12   :  { %v2321_v7 = vmul.f32 %v6403_v52, %v2304_v44 }
 0xd14   :  { %v2327_v40 = vsub.f32 %v2288_v28, %v2321_v7  ;;  %v2269_v58 = vpop.f32.mrf.mxu0 }
 0xd15   :  { %v2274_v42 = vadd.f32 %v2269_v58, %v2103_v19 }
 0xd16   :  { %v2333_v59 = vmul.f32 %v2327_v40, %v2327_v40 }
 0xd17   :  { %v2284_v17 = vadd.f32 %v6350_v25, %v2274_v42 }
 0xd18   :  { %v2345_v1 = vsel %vm635_vm7, %v2333_v59, 0.0 }
 0xd19   :  { %2346 = vadd.xlane.f32.xlu1 %v2345_v1  ;;  %v2308_v48 = vsel %vm635_vm7, %v2284_v17, 0.0 }
 0xd1a   :  { %2309 = vadd.xlane.f32.xlu2 %v2308_v48 }
 0xd2c   :  { %v2496_v21 = vpop.f32.mrf.mxu2 }
 0xd2d   :  { %v2497_v34 = vadd.f32 %v6508_v26, %v2496_v21 }
 0xd2f   :  { %v2512_v9 = vmax.f32 %v2497_v34, 0.0 }
 0xd31   :  { %5019 = vmatmul.msk.f32.gmra.mxu1 %vm2529_vm11, %v2512_v9 }
 0xd34   :  { %v2499_v60 = vpop.f32.mrf.mxu2 }
 0xd35   :  { %v2500_v56 = vadd.f32 %v6508_v26, %v2499_v60 }
 0xd37   :  { %v2513_v62 = vmax.f32 %v2500_v56, 0.0 }
 0xd39   :  { %5020 = vmatmul.msk.f32.gmra.mxu1 %vm2529_vm11, %v2513_v62 }
 0xd50   :  { %v2307_v25 = vpop.xlane.xlu1 %2306 }
 0xd51   :  { %v2322_v6 = vmul.f32 %v6403_v52, %v2307_v25  ;;  %v2565_v8 = vpop.f32.mrf.mxu1 }
 0xd52   :  { %v2566_v43 = vadd.f32 %v6528_v2, %v2565_v8 }
 0xd53   :  { %v6532_v28 = vsub.f32 %v2289_v53, %v2322_v6 }
 0xd54   :  { %v2583_v57 = vadd.f32 %v2566_v43, %v6459_v45 }
 0xd55   :  { %v2334_v61 = vmul.f32 %v6532_v28, %v6532_v28 }
 0xd56   :  { %v2591_v15 = vsel %vm635_vm7, %v2583_v57, 0.0 }
 0xd57   :  { %2592 = vadd.xlane.f32.xlu1 %v2591_v15  ;;  %v2348_v24 = vsel %vm635_vm7, %v2334_v61, 0.0 }
 0xd58   :  { %2349 = vadd.xlane.f32.xlu0 %v2348_v24 }
 0xd8c   :  { %v2347_v63 = vpop.xlane.xlu1 %2346 }
 0xd8d   :  { %v2357_v55 = vmul.f32 %v2347_v63, %v6403_v52  ;;  %v2310_v14 = vpop.xlane.xlu2 %2309 }
 0xd8e   :  { %v2323_v41 = vmul.f32 %v6403_v52, %v2310_v14 }
 0xd8f   :  { %v2363_v37 = vadd.f32 1e-05, %v2357_v55 }
 0xd90   :  { %v6541_v10 = vsub.f32 %v2284_v17, %v2323_v41 }
 0xd91   :  { %5461 = vrsqrt.f32 %v2363_v37  ;;  %vm2402_vm14 = vweird.f32 %v2363_v37 }
 0xd92   :  { %v2335_v45 = vmul.f32 %v6541_v10, %v6541_v10 }
 0xd94   :  { %v2351_v27 = vsel %vm635_vm7, %v2335_v45, 0.0 }
 0xd95   :  { %2352 = vadd.xlane.f32.xlu2 %v2351_v27 }
 0xd97   :  { %v5462_v47 = vpop.eup %5461 }
 0xd98   :  { %v2397_v30 = vmul.f32 %v5462_v47, %v2363_v37  ;;  %vm2403_vm13 = vweird.f32 %v5462_v47 }
 0xd99   :  { %vm2404_vm0 = vmor %vm2402_vm14, %vm2403_vm13 }
 0xd9a   :  { %v2398_v0 = vmul.f32 %v5462_v47, %v2397_v30 }
 0xd9c   :  { %v2399_v29 = vmul.f32 0.5, %v2398_v0 }
 0xd9e   :  { %v2400_v54 = vsub.f32 1.5, %v2399_v29 }
 0xda0   :  { %v2401_v5 = vmul.f32 %v5462_v47, %v2400_v54 }
 0xda2   :  { %v2405_v33 = vsel %vm2404_vm0, %v5462_v47, %v2401_v5 }
 0xda3   :  { %v2429_v50 = vmul.f32 %v2405_v33, %v2327_v40 }
 0xda5   :  { %v2438_v36 = vmul.f32 %v6451_v13, %v2429_v50 }
 0xda7   :  { %v6548_v12 = vadd.f32 %v6454_v23, %v2438_v36  ;;  %v6605_v36 = vld [vmem:[%s5825_s9 + $0x38] sm:$0xff] }
 0xda8   :  { %2792 = vmatpush.msrb.mxu3 %v6605_v36 }
 0xda9   :  { %5015 = vmatmul.msk.f32.gmra.mxu2 %vm635_vm7, %v6548_v12 }
 0xdae   :  { %v2568_v18 = vpop.f32.mrf.mxu1 }
 0xdaf   :  { %v2569_v51 = vadd.f32 %v6528_v2, %v2568_v18  ;;  %v6609_v18 = vld [vmem:[%s5825_s9 + $0x30] sm:$0xff] }
 0xdb0   :  { %2793 = vmatpush.msrb.mxu3 %v6609_v18 }
 0xdb1   :  { %v2584_v49 = vadd.f32 %v2569_v51, %v6489_v11  ;;  %v5275_v51 = vpack.i.bf16 %v6609_v18, %v6605_v36 }
 0xdb3   :  { %v2594_v38 = vsel %vm635_vm7, %v2584_v49, 0.0 }
 0xdb4   :  { %2595 = vadd.xlane.f32.xlu0 %v2594_v38  ;;  %v6618_v38 = vld [vmem:[%s5825_s9 + $0x20] sm:$0xff] }
 0xdb6   :  { %v2571_v53 = vpop.f32.mrf.mxu1 }
 0xdb7   :  { %v2572_v35 = vadd.f32 %v6528_v2, %v2571_v53 }
 0xdb9   :  { %v2585_v4 = vadd.f32 %v2572_v35, %v6495_v3 }
 0xdbb   :  { %v2597_v11 = vsel %vm635_vm7, %v2585_v4, 0.0 }
 0xdbc   :  { %2598 = vadd.xlane.f32.xlu2 %v2597_v11 }
 0xdca   :  { %v2593_v44 = vpop.xlane.xlu1 %2592 }
 0xdcb   :  { %v2609_v7 = vmul.f32 %v2593_v44, %v6403_v52  ;;  %v2350_v19 = vpop.xlane.xlu0 %2349 }
 0xdcc   :  { %v2358_v40 = vmul.f32 %v2350_v19, %v6403_v52 }
 0xdcd   :  { %v6570_v58 = vsub.f32 %v2583_v57, %v2609_v7 }
 0xdce   :  { %v2364_v42 = vadd.f32 1e-05, %v2358_v40 }
 0xdcf   :  { %v2621_v3 = vmul.f32 %v6570_v58, %v6570_v58 }
 0xdd0   :  { %5463 = vrsqrt.f32 %v2364_v42  ;;  %vm2412_vm2 = vweird.f32 %v2364_v42 }
 0xdd1   :  { %v2627_v59 = vsel %vm635_vm7, %v2621_v3, 0.0 }
 0xdd2   :  { %2628 = vadd.xlane.f32.xlu1 %v2627_v59  ;;  %v6626_v59 = vld [vmem:[%s6559_s30] ss:$0 sm:$0xff] }
 0xdd6   :  { %v5464_v17 = vpop.eup %5463 }
 0xdd7   :  { %v2407_v1 = vmul.f32 %v5464_v17, %v2364_v42  ;;  %vm2413_vm1 = vweird.f32 %v5464_v17 }
 0xdd8   :  { %vm2414_vm3 = vmor %vm2412_vm2, %vm2413_vm1 }
 0xdd9   :  { %v2408_v48 = vmul.f32 %v5464_v17, %v2407_v1  ;;  %v6629_v1 = vld [vmem:[%s6565_s6] ss:$0 sm:$0xff] }
 0xddb   :  { %v2409_v21 = vmul.f32 0.5, %v2408_v48 }
 0xddd   :  { %v2410_v34 = vsub.f32 1.5, %v2409_v21 }
 0xddf   :  { %v2411_v9 = vmul.f32 %v5464_v17, %v2410_v34 }
 0xde1   :  { %v2415_v60 = vsel %vm2414_vm3, %v5464_v17, %v2411_v9 }
 0xde2   :  { %v2430_v56 = vmul.f32 %v2415_v60, %v6532_v28 }
 0xde4   :  { %v2439_v62 = vmul.f32 %v6451_v13, %v2430_v56 }
 0xde6   :  { %v6578_v25 = vadd.f32 %v6454_v23, %v2439_v62 }
 0xde8   :  { %5016 = vmatmul.msk.f32.gmra.mxu2 %vm635_vm7, %v6578_v25 }
 0xe08   :  { %v2353_v6 = vpop.xlane.xlu2 %2352 }
 0xe09   :  { %v2359_v8 = vmul.f32 %v2353_v6, %v6403_v52 }
 0xe0b   :  { %v2365_v43 = vadd.f32 1e-05, %v2359_v8 }
 0xe0d   :  { %5465 = vrsqrt.f32 %v2365_v43  ;;  %vm2422_vm5 = vweird.f32 %v2365_v43 }
 0xe13   :  { %v5466_v57 = vpop.eup %5465 }
 0xe14   :  { %v2417_v61 = vmul.f32 %v5466_v57, %v2365_v43  ;;  %vm2423_vm4 = vweird.f32 %v5466_v57 }
 0xe15   :  { %vm2424_vm6 = vmor %vm2422_vm5, %vm2423_vm4 }
 0xe16   :  { %v2418_v15 = vmul.f32 %v5466_v57, %v2417_v61 }
 0xe18   :  { %v2419_v24 = vmul.f32 0.5, %v2418_v15 }
 0xe1a   :  { %v2420_v63 = vsub.f32 1.5, %v2419_v24 }
 0xe1c   :  { %v2421_v28 = vmul.f32 %v5466_v57, %v2420_v63 }
 0xe1e   :  { %v2425_v55 = vsel %vm2424_vm6, %v5466_v57, %v2421_v28 }
 0xe1f   :  { %v2431_v14 = vmul.f32 %v2425_v55, %v6541_v10 }
 0xe21   :  { %v2440_v41 = vmul.f32 %v6451_v13, %v2431_v14 }
 0xe23   :  { %v6586_v37 = vadd.f32 %v6454_v23, %v2440_v41 }
 0xe25   :  { %5017 = vmatmul.msk.f32.gmra.mxu2 %vm635_vm7, %v6586_v37 }
 0xe27   :  { %v2596_v45 = vpop.xlane.xlu0 %2595 }
 0xe28   :  { %v2610_v27 = vmul.f32 %v2596_v45, %v6403_v52 }
 0xe2a   :  { %v6591_v47 = vsub.f32 %v2584_v49, %v2610_v27  ;;  %v6615_v49 = vld [vmem:[%s5825_s9 + $0x28] sm:$0xff]  ;;  %s5639_s9 = smov 30  }
 0xe2b   :  { %v5280_v53 = vpack.i.bf16 %v6618_v38, %v6615_v49  ;;  %2794 = vmatpush.msrb.mxu3 %v6615_v49 }
 0xe2c   :  { %v2502_v30 = vpop.f32.mrf.mxu2  ;;  %v2622_v0 = vmul.f32 %v6591_v47, %v6591_v47 }
 0xe2d   :  { %v2503_v10 = vadd.f32 %v6508_v26, %v2502_v30  ;;  %2795 = vmatpush.msrb.mxu3 %v6618_v38 }
 0xe2e   :  { %v2630_v13 = vsel %vm635_vm7, %v2622_v0, 0.0 }
 0xe2f   :  { %v2514_v23 = vmax.f32 %v2503_v10, 0.0  ;;  %v2599_v29 = vpop.xlane.xlu2 %2598  ;;  %2631 = vadd.xlane.f32.xlu0 %v2630_v13 }
 0xe30   :  { %v2611_v54 = vmul.f32 %v2599_v29, %v6403_v52 }
 0xe31   :  { %5021 = vmatmul.msk.f32.gmra.mxu1 %vm2529_vm11, %v2514_v23 }
 0xe32   :  { %v6599_v5 = vsub.f32 %v2585_v4, %v2611_v54 }
 0xe34   :  { %v2623_v33 = vmul.f32 %v6599_v5, %v6599_v5 }
 0xe36   :  { %v2633_v50 = vsel %vm635_vm7, %v2623_v33, 0.0 }
 0xe37   :  { %2634 = vadd.xlane.f32.xlu2 %v2633_v50 }
 0xe45   :  { %v2629_v35 = vpop.xlane.xlu1 %2628 }
 0xe46   :  { %v2645_v4 = vmul.f32 %v2629_v35, %v6403_v52 }
 0xe48   :  { %v2651_v11 = vadd.f32 1e-05, %v2645_v4 }
 0xe4a   :  { %5467 = vrsqrt.f32 %v2651_v11  ;;  %vm2663_vm9 = vweird.f32 %v2651_v11 }
 0xe50   :  { %v5468_v44 = vpop.eup %5467 }
 0xe51   :  { %v2658_v7 = vmul.f32 %v5468_v44, %v2651_v11  ;;  %vm2664_vm8 = vweird.f32 %v5468_v44 }
 0xe52   :  { %vm2665_vm10 = vmor %vm2663_vm9, %vm2664_vm8 }
 0xe53   :  { %v2659_v19 = vmul.f32 %v5468_v44, %v2658_v7 }
 0xe55   :  { %v2660_v40 = vmul.f32 0.5, %v2659_v19 }
 0xe57   :  { %v2661_v42 = vsub.f32 1.5, %v2660_v40 }
 0xe59   :  { %v2662_v3 = vmul.f32 %v5468_v44, %v2661_v42 }
 0xe5b   :  { %v2666_v17 = vsel %vm2665_vm10, %v5468_v44, %v2662_v3 }
 0xe5c   :  { %v2717_v48 = vmul.f32 %v2666_v17, %v6570_v58 }
 0xe5e   :  { %v2726_v21 = vmul.f32 %v6626_v59, %v2717_v48 }
 0xe60   :  { %v6634_v34 = vadd.f32 %v6629_v1, %v2726_v21 }
 0xe62   :  { %v2753_v9 = vadd.f32 %v6634_v34, %v5876_v16 }
 0xe64   :  { %5033 = vmatmul.msk.f32.vlgmr.msrb.gmra.mxu3 %vm635_vm7, %v2753_v9 }
 0xe6b   :  { %v2505_v60 = vpop.f32.mrf.mxu2 }
 0xe6c   :  { %v2506_v56 = vadd.f32 %v6508_v26, %v2505_v60 }
 0xe6e   :  { %v2515_v62 = vmax.f32 %v2506_v56, 0.0 }
 0xe70   :  { %5022 = vmatmul.msk.f32.gmra.mxu1 %vm2529_vm11, %v2515_v62 }
 0xea2   :  { %v2632_v6 = vpop.xlane.xlu0 %2631 }
 0xea3   :  { %v2646_v8 = vmul.f32 %v2632_v6, %v6403_v52 }
 0xea5   :  { %v2652_v58 = vadd.f32 1e-05, %v2646_v8 }
 0xea7   :  { %5469 = vrsqrt.f32 %v2652_v58  ;;  %vm2673_vm14 = vweird.f32 %v2652_v58 }
 0xea8   :  { %v2508_v43 = vpop.f32.mrf.mxu2 }
 0xea9   :  { %v2509_v57 = vadd.f32 %v6508_v26, %v2508_v43  ;;  %v6673_v43 = vld [vmem:[%s5849_s21 + $0x1] ss:$0 sm:$0xff] }
 0xeaa   :  { %v2635_v61 = vpop.xlane.xlu2 %2634 }
 0xeab   :  { %v2516_v15 = vmax.f32 %v2509_v57, 0.0  ;;  %v2647_v16 = vmul.f32 %v2635_v61, %v6403_v52 }
 0xead   :  { %v5470_v24 = vpop.eup %5469  ;;  %v2653_v63 = vadd.f32 1e-05, %v2647_v16  ;;  %5023 = vmatmul.msk.f32.gmra.mxu1 %vm2529_vm11, %v2516_v15 }
 0xeae   :  { %v2668_v28 = vmul.f32 %v5470_v24, %v2652_v58  ;;  %v2574_v55 = vpop.f32.mrf.mxu1  ;;  %vm2674_vm13 = vweird.f32 %v5470_v24 }
 0xeaf   :  { %5471 = vrsqrt.f32 %v2653_v63  ;;  %v2575_v14 = vadd.f32 %v6528_v2, %v2574_v55  ;;  %vm2675_vm0 = vmor %vm2673_vm14, %vm2674_vm13  ;;  %vm2683_vm2 = vweird.f32 %v2653_v63 }
 0xeb0   :  { %v2669_v41 = vmul.f32 %v5470_v24, %v2668_v28 }
 0xeb1   :  { %v2586_v45 = vadd.f32 %v2575_v14, %v6548_v12 }
 0xeb2   :  { %v2670_v27 = vmul.f32 0.5, %v2669_v41 }
 0xeb3   :  { %v2600_v30 = vsel %vm635_vm7, %v2586_v45, 0.0 }
 0xeb4   :  { %v2671_v26 = vsub.f32 1.5, %v2670_v27  ;;  %2601 = vadd.xlane.f32.xlu1 %v2600_v30 }
 0xeb5   :  { %v5472_v0 = vpop.eup %5471 }
 0xeb6   :  { %v2672_v10 = vmul.f32 %v5470_v24, %v2671_v26  ;;  %v2678_v13 = vmul.f32 %v5472_v0, %v2653_v63  ;;  %vm2684_vm1 = vweird.f32 %v5472_v0 }
 0xeb7   :  { %vm2685_vm3 = vmor %vm2683_vm2, %vm2684_vm1 }
 0xeb8   :  { %v2676_v23 = vsel %vm2675_vm0, %v5470_v24, %v2672_v10  ;;  %v2679_v29 = vmul.f32 %v5472_v0, %v2678_v13 }
 0xeb9   :  { %v2718_v54 = vmul.f32 %v2676_v23, %v6591_v47 }
 0xeba   :  { %v2680_v33 = vmul.f32 0.5, %v2679_v29 }
 0xebb   :  { %v2727_v50 = vmul.f32 %v6626_v59, %v2718_v54 }
 0xebc   :  { %v2681_v35 = vsub.f32 1.5, %v2680_v33 }
 0xebd   :  { %v6651_v12 = vadd.f32 %v6629_v1, %v2727_v50 }
 0xebe   :  { %v2682_v4 = vmul.f32 %v5472_v0, %v2681_v35 }
 0xebf   :  { %v2754_v11 = vadd.f32 %v6651_v12, %v5883_v22 }
 0xec0   :  { %v2686_v44 = vsel %vm2685_vm3, %v5472_v0, %v2682_v4 }
 0xec1   :  { %v2719_v7 = vmul.f32 %v2686_v44, %v6599_v5  ;;  %5034 = vmatmul.msk.f32.gmra.mxu3 %vm635_vm7, %v2754_v11 }
 0xec3   :  { %v2728_v47 = vmul.f32 %v6626_v59, %v2719_v7 }
 0xec5   :  { %v6659_v19 = vadd.f32 %v6629_v1, %v2728_v47 }
 0xec7   :  { %v2755_v40 = vadd.f32 %v6659_v19, %v5892_v31 }
 0xec9   :  { %5035 = vmatmul.msk.f32.gmra.mxu3 %vm635_vm7, %v2755_v40 }
 0xeed   :  { %v2577_v42 = vpop.f32.mrf.mxu1 }
 0xeee   :  { %v2578_v3 = vadd.f32 %v6528_v2, %v2577_v42 }
 0xef0   :  { %v2587_v22 = vadd.f32 %v2578_v3, %v6578_v25  ;;  %v2797_v25 = vpop.f32.mrf.mxu3 }
 0xef1   :  { %v6700_v28 = vadd.f32 %v6673_v43, %v2797_v25 }
 0xef2   :  { %v2603_v5 = vsel %vm635_vm7, %v2587_v22, 0.0 }
 0xef3   :  { %2604 = vadd.xlane.f32.xlu0 %v2603_v5 }
 0xf27   :  { %v2602_v17 = vpop.xlane.xlu1 %2601 }
 0xf28   :  { %v2612_v48 = vmul.f32 %v2602_v17, %v6403_v52 }
 0xf2a   :  { %v2618_v21 = vsub.f32 %v2586_v45, %v2612_v48  ;;  %v2580_v9 = vpop.f32.mrf.mxu1 }
 0xf2b   :  { %v2581_v60 = vadd.f32 %v6528_v2, %v2580_v9 }
 0xf2c   :  { %v2624_v56 = vmul.f32 %v2618_v21, %v2618_v21 }
 0xf2d   :  { %v2588_v62 = vadd.f32 %v2581_v60, %v6586_v37 }
 0xf2e   :  { %v2636_v6 = vsel %vm635_vm7, %v2624_v56, 0.0 }
 0xf2f   :  { %2637 = vadd.xlane.f32.xlu1 %v2636_v6  ;;  %v2606_v8 = vsel %vm635_vm7, %v2588_v62, 0.0 }
 0xf30   :  { %2607 = vadd.xlane.f32.xlu2 %v2606_v8 }
 0xf44   :  { %v2800_v58 = vpop.f32.mrf.mxu3 }
 0xf45   :  { %v6681_v2 = vadd.f32 %v6673_v43, %v2800_v58 }
 0xf4c   :  { %v2803_v57 = vpop.f32.mrf.mxu3 }
 0xf4d   :  { %v6676_v61 = vadd.f32 %v6673_v43, %v2803_v57 }
 0xf4f   :  { %3018 = vrot.lane.b32.xlu1 %v6676_v61, %s5619_s23 }
 0xf57   :  { %3010 = vrot.lane.b32.xlu1 %v6681_v2, %s5620_s24 }
 0xf5f   :  { %3222 = vrot.lane.b32.xlu1 %v6681_v2, %s5621_s25 }
 0xf66   :  { %v2605_v37 = vpop.xlane.xlu0 %2604 }
 0xf67   :  { %v2613_v15 = vmul.f32 %v2605_v37, %v6403_v52  ;;  %3216 = vrot.lane.b32.xlu1 %v6681_v2, %s5622_s26 }
 0xf69   :  { %v6690_v16 = vsub.f32 %v2587_v22, %v2613_v15 }
 0xf6b   :  { %v2625_v24 = vmul.f32 %v6690_v16, %v6690_v16 }
 0xf6d   :  { %v2639_v63 = vsel %vm635_vm7, %v2625_v24, 0.0 }
 0xf6e   :  { %2640 = vadd.xlane.f32.xlu0 %v2639_v63 }
 0xf6f   :  { %5281 = vrot.lane.b32.xlu1 %v5280_v53, %s5623_s27 }
 0xf77   :  { %2890 = vrot.lane.b32.xlu1 %v6700_v28, %s5618_s22 }
 0xf7f   :  { %2831 = vrot.lane.b32.xlu1 %v6673_v43, %s5623_s27 }
 0xf82   :  { %3016 = vrot.lane.b32.xlu0 %v6681_v2, %s5619_s23 }
 0xf8a   :  { %3008 = vrot.lane.b32.xlu0 %v6700_v28, %s5620_s24 }
 0xf92   :  { %3012 = vrot.lane.b32.xlu0 %v6676_v61, %s5620_s24 }
 0xf9a   :  { %3214 = vrot.lane.b32.xlu0 %v6700_v28, %s5622_s26 }
 0xfa2   :  { %5276 = vrot.lane.b32.xlu0 %v5275_v51, %s5623_s27  ;;  %v2638_v49 = vpop.xlane.xlu1 %2637 }
 0xfa3   :  { %v2648_v38 = vmul.f32 %v2638_v49, %v6403_v52  ;;  %v2608_v53 = vpop.xlane.xlu2 %2607 }
 0xfa4   :  { %v2614_v55 = vmul.f32 %v2608_v53, %v6403_v52 }
 0xfa5   :  { %v2654_v14 = vadd.f32 1e-05, %v2648_v38 }
 0xfa6   :  { %v6720_v41 = vsub.f32 %v2588_v62, %v2614_v55 }
 0xfa7   :  { %5473 = vrsqrt.f32 %v2654_v14  ;;  %vm2693_vm5 = vweird.f32 %v2654_v14 }
 0xfa8   :  { %v2626_v45 = vmul.f32 %v6720_v41, %v6720_v41 }
 0xfaa   :  { %2892 = vrot.lane.b32.xlu0 %v6681_v2, %s5618_s22  ;;  %v2642_v27 = vsel %vm635_vm7, %v2626_v45, 0.0 }
 0xfab   :  { %2643 = vadd.xlane.f32.xlu2 %v2642_v27 }
 0xfad   :  { %v5474_v36 = vpop.eup %5473 }
 0xfae   :  { %v2688_v18 = vmul.f32 %v5474_v36, %v2654_v14  ;;  %vm2694_vm4 = vweird.f32 %v5474_v36 }
 0xfaf   :  { %vm2695_vm6 = vmor %vm2693_vm5, %vm2694_vm4 }
 0xfb0   :  { %v2689_v51 = vmul.f32 %v5474_v36, %v2688_v18 }
 0xfb2   :  { %v2690_v30 = vmul.f32 0.5, %v2689_v51 }
 0xfb4   :  { %v2691_v26 = vsub.f32 1.5, %v2690_v30 }
 0xfb6   :  { %v2692_v0 = vmul.f32 %v5474_v36, %v2691_v26 }
 0xfb8   :  { %v2696_v10 = vsel %vm2695_vm6, %v5474_v36, %v2692_v0 }
 0xfb9   :  { %v2720_v13 = vmul.f32 %v2696_v10, %v2618_v21 }
 0xfbb   :  { %v2729_v23 = vmul.f32 %v6626_v59, %v2720_v13 }
 0xfbd   :  { %v6729_v29 = vadd.f32 %v6629_v1, %v2729_v23 }
 0xfbf   :  { %v2756_v54 = vadd.f32 %v6729_v29, %v5912_v39 }
 0xfc1   :  { %5036 = vmatmul.msk.f32.gmra.mxu3 %vm635_vm7, %v2756_v54  ;;  %v3019_v33 = vpop.permute.xlu1 %3018 }
 0xfc2   :  { %5054 = vmatpush.xpose.msk.msra.mxu3 %vm944_vm12, %v3019_v33 }
 0xfc3   :  { %3014 = vrot.lane.b32.xlu2 %v6700_v28, %s5619_s23 }
 0xfc9   :  { %v3011_v22 = vpop.permute.xlu1 %3010 }
 0xfcb   :  { %3224 = vrot.lane.b32.xlu2 %v6676_v61, %s5621_s25 }
 0xfd1   :  { %v3223_v60 = vpop.permute.xlu1 %3222 }
 0xfd3   :  { %3220 = vrot.lane.b32.xlu2 %v6700_v28, %s5621_s25 }
 0xfd9   :  { %v3217_v62 = vpop.permute.xlu1 %3216 }
 0xfdb   :  { %3218 = vrot.lane.b32.xlu2 %v6676_v61, %s5622_s26 }
 0xfe1   :  { %v2641_v50 = vpop.xlane.xlu0 %2640  ;;  %v5282_v57 = vpop.permute.xlu1 %5281 }
 0xfe2   :  { %v2649_v39 = vmul.f32 %v2641_v50, %v6403_v52  ;;  %v5283_v37 = vunpack.i.l.bf16 %v5282_v57  ;;  %v5284_v15 = vunpack.i.h.bf16 %v5282_v57 }
 0xfe3   :  { %2894 = vrot.lane.b32.xlu2 %v6676_v61, %s5618_s22 }
 0xfe4   :  { %v2655_v35 = vadd.f32 1e-05, %v2649_v39 }
 0xfe6   :  { %5475 = vrsqrt.f32 %v2655_v35  ;;  %vm2703_vm9 = vweird.f32 %v2655_v35 }
 0xfec   :  { %v5476_v4 = vpop.eup %5475 }
 0xfed   :  { %v2698_v11 = vmul.f32 %v5476_v4, %v2655_v35  ;;  %vm2704_vm8 = vweird.f32 %v5476_v4 }
 0xfee   :  { %vm2705_vm10 = vmor %vm2703_vm9, %vm2704_vm8 }
 0xfef   :  { %v2699_v44 = vmul.f32 %v5476_v4, %v2698_v11 }
 0xff1   :  { %v2700_v7 = vmul.f32 0.5, %v2699_v44 }
 0xff3   :  { %v2701_v47 = vsub.f32 1.5, %v2700_v7 }
 0xff4   :  { %v3017_v40 = vpop.permute.xlu0 %3016 }
 0xff5   :  { %v2702_v42 = vmul.f32 %v5476_v4, %v2701_v47  ;;  %5055 = vmatpush.xpose.msk.msra.mxu3 %vm944_vm12, %v3017_v40 }
 0xff7   :  { %v2706_v3 = vsel %vm2705_vm10, %v5476_v4, %v2702_v42 }
 0xff8   :  { %v2721_v5 = vmul.f32 %v2706_v3, %v6690_v16 }
 0xffa   :  { %v2730_v17 = vmul.f32 %v6626_v59, %v2721_v5 }
 0xffc   :  { %v3009_v48 = vpop.permute.xlu0 %3008  ;;  %v6750_v21 = vadd.f32 %v6629_v1, %v2730_v17 }
 0xffe   :  { %v2757_v9 = vadd.f32 %v6750_v21, %v5928_v46 }
0x1000   :  { %5037 = vmatmul.msk.f32.gmra.mxu3 %vm635_vm7, %v2757_v9 }
0x1004   :  { %v3013_v56 = vpop.permute.xlu0 %3012 }
0x100c   :  { %v3215_v6 = vpop.permute.xlu0 %3214 }
0x1014   :  { %v5277_v8 = vpop.permute.xlu0 %5276 }
0x1015   :  { %v5279_v25 = vunpack.i.h.bf16 %v5277_v8  ;;  %v5278_v58 = vunpack.i.l.bf16 %v5277_v8 }
0x1017   :  { %2864 = vmatpush.msrb.mxu0 %v5278_v58 }
0x1019   :  { %2865 = vmatpush.msrb.mxu0 %v5279_v25 }
0x101b   :  { %2866 = vmatpush.msrb.mxu0 %v5283_v37 }
0x101d   :  { %2867 = vmatpush.msrb.mxu0 %v5284_v15 }
0x101e   :  { %v2644_v16 = vpop.xlane.xlu2 %2643  ;;  %5039 = vmatmul.msk.f32.vlgmr.msrb.gmra.mxu0 %vm635_vm7, %v6634_v34 }
0x101f   :  { %v2650_v46 = vmul.f32 %v2644_v16, %v6403_v52 }
0x1021   :  { %v2656_v24 = vadd.f32 1e-05, %v2650_v46 }
0x1023   :  { %5477 = vrsqrt.f32 %v2656_v24  ;;  %vm2713_vm14 = vweird.f32 %v2656_v24 }
0x1026   :  { %v3015_v63 = vpop.permute.xlu2 %3014  ;;  %5040 = vmatmul.msk.f32.gmra.mxu0 %vm635_vm7, %v6651_v12 }
0x1027   :  { %5056 = vmatpush.xpose.msk.msra.mxu3 %vm944_vm12, %v3015_v63 }
0x1029   :  { %v5478_v49 = vpop.eup %5477 }
0x102a   :  { %v2708_v38 = vmul.f32 %v5478_v49, %v2656_v24  ;;  %vm2714_vm13 = vweird.f32 %v5478_v49 }
0x102b   :  { %vm2715_vm0 = vmor %vm2713_vm14, %vm2714_vm13 }
0x102c   :  { %v2709_v53 = vmul.f32 %v5478_v49, %v2708_v38 }
0x102e   :  { %v2710_v55 = vmul.f32 0.5, %v2709_v53  ;;  %v3225_v14 = vpop.permute.xlu2 %3224  ;;  %5041 = vmatmul.msk.f32.gmra.mxu0 %vm635_vm7, %v6659_v19 }
0x102f   :  { %5069 = vmatpush.xpose.msk.msrb.mxu3 %vm944_vm12, %v3225_v14 }
0x1030   :  { %v2711_v45 = vsub.f32 1.5, %v2710_v55 }
0x1032   :  { %v2712_v27 = vmul.f32 %v5478_v49, %v2711_v45 }
0x1033   :  { %5070 = vmatpush.xpose.msk.msrb.mxu3 %vm944_vm12, %v3223_v60 }
0x1034   :  { %v2716_v36 = vsel %vm2715_vm0, %v5478_v49, %v2712_v27 }
0x1035   :  { %v2722_v18 = vmul.f32 %v2716_v36, %v6720_v41 }
0x1036   :  { %v3221_v51 = vpop.permute.xlu2 %3220  ;;  %5042 = vmatmul.msk.f32.gmra.mxu0 %vm635_vm7, %v6729_v29 }
0x1037   :  { %v2731_v30 = vmul.f32 %v6626_v59, %v2722_v18  ;;  %5071 = vmatpush.xpose.msk.msrb.mxu3 %vm944_vm12, %v3221_v51  ;;  %v2893_v59 = vpop.permute.xlu0 %2892 }
0x1039   :  { %v6771_v26 = vadd.f32 %v6629_v1, %v2731_v30 }
0x103b   :  { %v2758_v0 = vadd.f32 %v6771_v26, %v5892_v31  ;;  %v2891_v31 = vpop.permute.xlu1 %2890 }
0x103d   :  { %5038 = vmatmul.msk.f32.gmra.mxu3 %vm635_vm7, %v2758_v0 }
0x103e   :  { %v3219_v10 = vpop.permute.xlu2 %3218  ;;  %5043 = vmatmul.msk.f32.gmra.mxu0 %vm635_vm7, %v6750_v21 }
0x1043   :  { %v6795_v23 = vpop.permute.xlu1 %2831 }
0x1044   :  { %v6801_v35 = vpop.f32.mrf.mxu3 }
0x1045   :  { %5057 = vmatmul.msk.f32.vlgmr.msra.gmra.mxu3 %vm944_vm12, %v3009_v48 }
0x1046   :  { %v2895_v41 = vpop.permute.xlu2 %2894  ;;  %5044 = vmatmul.msk.f32.gmra.mxu0 %vm635_vm7, %v6771_v26 }
0x1047   :  { %5045 = vmatpush.xpose.msk.msrb.mxu2 %vm944_vm12, %v2895_v41 }
0x104b   :  { %5046 = vmatpush.xpose.msk.msrb.mxu2 %vm944_vm12, %v2893_v59 }
0x104d   :  { %5058 = vmatmul.msk.f32.gmra.mxu3 %vm944_vm12, %v3011_v22 }
0x104f   :  { %5047 = vmatpush.xpose.msk.msrb.mxu2 %vm944_vm12, %v2891_v31 }
0x1052   :  { %5048 = vmatmul.msk.f32.vlgmr.msrb.gmra.mxu2 %vm944_vm12, %v6700_v28 }
0x1055   :  { %5059 = vmatmul.msk.f32.gmra.mxu3 %vm944_vm12, %v3013_v56 }
0x105a   :  { %5049 = vmatmul.msk.f32.gmra.mxu2 %vm944_vm12, %v6681_v2 }
0x105d   :  { %5072 = vmatmul.msk.f32.vlgmr.msrb.gmra.mxu3 %vm944_vm12, %v3215_v6 }
0x1062   :  { %5050 = vmatmul.msk.f32.gmra.mxu2 %vm944_vm12, %v6676_v61 }
0x1065   :  { %5073 = vmatmul.msk.f32.gmra.mxu3 %vm944_vm12, %v3217_v62 }
0x106d   :  { %5074 = vmatmul.msk.f32.gmra.mxu3 %vm944_vm12, %v3219_v10 }
0x1083   :  { %v6807_v11 = vpop.f32.mrf.mxu3 }
0x109b   :  { %v2869_v1 = vpop.f32.mrf.mxu0 }
0x109c   :  { %v6804_v4 = vadd.f32 %v2869_v1, %v6795_v23 }
0x10a3   :  { %v2872_v13 = vpop.f32.mrf.mxu0 }
0x10a4   :  { %v2873_v33 = vadd.f32 %v2872_v13, %v6795_v23 }
0x10ab   :  { %v2875_v54 = vpop.f32.mrf.mxu0 }
0x10ac   :  { %v2876_v50 = vadd.f32 %v2875_v54, %v6795_v23 }
0x10ae   :  { %2995 = vmatpush.msra.mxu1 %v2876_v50  ;;  %v6799_v39 = vpack.i.bf16 %v2873_v33, %v2876_v50 }
0x10b0   :  { %2996 = vmatpush.msra.mxu1 %v2873_v33 }
0x10b2   :  { %2997 = vmatpush.msra.mxu1 %v6804_v4 }
0x10c0   :  { %v6809_v44 = vpop.f32.mrf.mxu3 }
0x10c8   :  { %v3049_v7 = vpop.f32.mrf.mxu3 }
0x10c9   :  { %v3058_v47 = vmul.f32 0.35355338, %v3049_v7 }
0x10cb   :  { %v3061_v40 = vadd.f32 %v3058_v47, %v6002_v20 }
0x10cd   :  { %v3064_v42 = vsel %vm989_vm15, %v3061_v40, -inf }
0x10ce   :  { %3065 = vmax.xlane.f32.xlu2 %v3064_v42 }
0x10d0   :  { %v3052_v3 = vpop.f32.mrf.mxu3 }
0x10d1   :  { %v3059_v22 = vmul.f32 0.35355338, %v3052_v3 }
0x10d3   :  { %v3062_v5 = vadd.f32 %v3059_v22, %v6002_v20 }
0x10d5   :  { %v3067_v17 = vsel %vm989_vm15, %v3062_v5, -inf  ;;  %v2925_v54 = vpop.f32.mrf.mxu2 }
0x10d6   :  { %3068 = vmax.xlane.f32.xlu0 %v3067_v17 }
0x10d8   :  { %v3055_v48 = vpop.f32.mrf.mxu3 }
0x10d9   :  { %v3060_v9 = vmul.f32 0.35355338, %v3055_v48 }
0x10db   :  { %v3063_v60 = vadd.f32 %v3060_v9, %v6010_v32 }
0x10dd   :  { %v3070_v56 = vsel %vm989_vm15, %v3063_v60, -inf  ;;  %v2928_v7 = vpop.f32.mrf.mxu2 }
0x10de   :  { %3071 = vmax.xlane.f32.xlu1 %v3070_v56 }
0x10e0   :  { %v3255_v62 = vpop.f32.mrf.mxu3 }
0x10e1   :  { %v3264_v6 = vmul.f32 0.35355338, %v3255_v62 }
0x10e3   :  { %v3267_v8 = vadd.f32 %v3264_v6, %v6002_v20 }
0x10e5   :  { %v3270_v25 = vsel %vm989_vm15, %v3267_v8, -inf  ;;  %v2931_v17 = vpop.f32.mrf.mxu2 }
0x10e6   :  { %3271 = vmax.xlane.f32.xlu2 %v3270_v25  ;;  %v2936_v9 = vmul.f32 0.35355338, %v2931_v17 }
0x10e8   :  { %v3258_v58 = vpop.f32.mrf.mxu3  ;;  %v6850_v62 = vadd.f32 %v2936_v9, %v6010_v32 }
0x10e9   :  { %v3265_v57 = vmul.f32 0.35355338, %v3258_v58 }
0x10eb   :  { %v3268_v37 = vadd.f32 %v3265_v57, %v6002_v20  ;;  %v2935_v57 = vmul.f32 0.35355338, %v2928_v7 }
0x10ed   :  { %v3273_v15 = vsel %vm989_vm15, %v3268_v37, -inf }
0x10ee   :  { %3274 = vmax.xlane.f32.xlu0 %v3273_v15 }
0x10f0   :  { %v3261_v16 = vpop.f32.mrf.mxu3 }
0x10f1   :  { %v3266_v46 = vmul.f32 0.35355338, %v3261_v16  ;;  %v2938_v16 = vadd.f32 %v2935_v57, %v6002_v20  ;;  %v6887_v57 = vadd.f32 %v6673_v43, %v6809_v44  ;;  %v6901_v44 = vadd.f32 %v6673_v43, %v6801_v35 }
0x10f3   :  { %v3269_v24 = vadd.f32 %v3266_v46, %v6010_v32  ;;  %v2943_v46 = vsel %vm989_vm15, %v2938_v16, -inf }
0x10f5   :  { %v3276_v63 = vsel %vm989_vm15, %v3269_v24, -inf }
0x10f6   :  { %3277 = vmax.xlane.f32.xlu2 %v3276_v63 }
0x10f7   :  { %5286 = vrot.lane.b32.xlu1 %v6799_v39, %s5620_s24 }
0x10ff   :  { %5291 = vrot.lane.b32.xlu1 %v6799_v39, %s5622_s26 }
0x1141   :  { %v3066_v49 = vpop.xlane.xlu2 %3065 }
0x1142   :  { %v3073_v38 = vsub.f32 %v3061_v40, %v3066_v49  ;;  %v6863_v49 = vadd.f32 %v6673_v43, %v6807_v11 }
0x1144   :  { %v3076_v53 = vmul.f32 1.442695, %v3073_v38 }
0x1146   :  { %5479 = vpow2.f32 %v3076_v53 }
0x1149   :  { %v3069_v55 = vpop.xlane.xlu0 %3068 }
0x114a   :  { %v3074_v14 = vsub.f32 %v3062_v5, %v3069_v55 }
0x114c   :  { %v6827_v45 = vpop.eup %5479  ;;  %v3078_v27 = vmul.f32 1.442695, %v3074_v14 }
0x114d   :  { %v3082_v36 = vsel %vm989_vm15, %v6827_v45, 0.0 }
0x114e   :  { %5481 = vpow2.f32 %v3078_v27  ;;  %3083 = vadd.xlane.f32.xlu0 %v3082_v36 }
0x1151   :  { %v3072_v18 = vpop.xlane.xlu1 %3071 }
0x1152   :  { %v3075_v51 = vsub.f32 %v3063_v60, %v3072_v18 }
0x1154   :  { %v6831_v30 = vpop.eup %5481  ;;  %v3080_v0 = vmul.f32 1.442695, %v3075_v51 }
0x1155   :  { %v3085_v10 = vsel %vm989_vm15, %v6831_v30, 0.0 }
0x1156   :  { %5483 = vpow2.f32 %v3080_v0  ;;  %3086 = vadd.xlane.f32.xlu2 %v3085_v10 }
0x1159   :  { %v3272_v41 = vpop.xlane.xlu2 %3271 }
0x115a   :  { %v3279_v59 = vsub.f32 %v3267_v8, %v3272_v41  ;;  %v2946_v8 = vsel %vm989_vm15, %v6850_v62, -inf }
0x115c   :  { %v6835_v31 = vpop.eup %5483  ;;  %v3282_v1 = vmul.f32 1.442695, %v3279_v59 }
0x115d   :  { %v3088_v13 = vsel %vm989_vm15, %v6835_v31, 0.0 }
0x115e   :  { %5485 = vpow2.f32 %v3282_v1  ;;  %3089 = vadd.xlane.f32.xlu2 %v3088_v13 }
0x1161   :  { %v3275_v56 = vpop.xlane.xlu0 %3274 }
0x1162   :  { %3100 = vrot.lane.b32.xlu0 %v6804_v4, %s5620_s24  ;;  %v3280_v6 = vsub.f32 %v3268_v37, %v3275_v56  ;;  %v2934_v37 = vmul.f32 0.35355338, %v2925_v54 }
0x1164   :  { %v6841_v33 = vpop.eup %5485  ;;  %v3284_v25 = vmul.f32 1.442695, %v3280_v6 }
0x1165   :  { %v3288_v50 = vsel %vm989_vm15, %v6841_v33, 0.0 }
0x1166   :  { %3289 = vadd.xlane.f32.xlu2 %v3288_v50 }
0x1169   :  { %v3278_v47 = vpop.xlane.xlu2 %3277  ;;  %v5287_v40 = vpop.permute.xlu1 %5286 }
0x116a   :  { %v3281_v42 = vsub.f32 %v3269_v24, %v3278_v47  ;;  %v5288_v3 = vunpack.i.l.bf16 %v5287_v40  ;;  %v5289_v5 = vunpack.i.h.bf16 %v5287_v40  ;;  %v2937_v24 = vadd.f32 %v2934_v37, %v6002_v20 }
0x116c   :  { %v3286_v22 = vmul.f32 1.442695, %v3281_v42  ;;  %3131 = vmatpush.msra.mxu0 %v5288_v3  ;;  %v2940_v63 = vsel %vm989_vm15, %v2937_v24, -inf }
0x116e   :  { %5487 = vpow2.f32 %v3286_v22  ;;  %3132 = vmatpush.msra.mxu0 %v5289_v5 }
0x116f   :  { %5489 = vpow2.f32 %v3284_v25 }
0x1171   :  { %v5292_v27 = vpop.permute.xlu1 %5291 }
0x1172   :  { %v5293_v18 = vunpack.i.l.bf16 %v5292_v27  ;;  %v5294_v51 = vunpack.i.h.bf16 %v5292_v27 }
0x1174   :  { %v6845_v48 = vpop.eup %5487 }
0x1175   :  { %v3294_v60 = vsel %vm989_vm15, %v6845_v48, 0.0  ;;  %v5490_v58 = vpop.eup %5489 }
0x1176   :  { %3295 = vadd.xlane.f32.xlu1 %v3294_v60  ;;  %v3291_v15 = vsel %vm989_vm15, %v5490_v58, 0.0 }
0x117e   :  { %2947 = vmax.xlane.f32.xlu1 %v2946_v8  ;;  %3303 = vrot.lane.b32.xlu2 %v6804_v4, %s5622_s26 }
0x118c   :  { %3292 = vadd.xlane.f32.xlu0 %v3291_v15  ;;  %v5030_v15 = vld [vmem:[%s6112_s3 + $0x28] sm:$0xff] }
0x118d   :  { %3168 = vmatpush.msra.mxu2 %v5030_v15 }
0x1194   :  { %2944 = vmax.xlane.f32.xlu0 %v2943_v46 }
0x11a7   :  { %2941 = vmax.xlane.f32.xlu2 %v2940_v63 }
0x11bf   :  { %3561 = vrot.lane.b32.xlu2 %v6863_v49, %s5618_s22 }
0x11c1   :  { %v3084_v38 = vpop.xlane.xlu0 %3083 }
0x11c2   :  { %5491 = vrcp.f32 %v3084_v38 }
0x11c7   :  { %3391 = vrot.lane.b32.xlu2 %v6700_v28, %s5626_s28 }
0x11c8   :  { %v5492_v55 = vpop.eup %5491 }
0x11c9   :  { %v3087_v53 = vpop.xlane.xlu2 %3086  ;;  %v3094_v36 = vmul.f32 %v5492_v55, %v6827_v45  ;;  %v5029_v55 = vld [vmem:[%s6112_s3 + $0x20] sm:$0xff] }
0x11ca   :  { %5493 = vrcp.f32 %v3087_v53  ;;  %3203 = vmatpush.msrb.mxu1 %v5029_v55 }
0x11cf   :  { %3389 = vrot.lane.b32.xlu2 %v6676_v61, %s5627_s29 }
0x11d0   :  { %v5494_v0 = vpop.eup %5493 }
0x11d1   :  { %v3090_v14 = vpop.xlane.xlu2 %3089  ;;  %v3095_v41 = vmul.f32 %v5494_v0, %v6831_v30 }
0x11d2   :  { %5495 = vrcp.f32 %v3090_v14 }
0x11d4   :  { %v3101_v11 = vpop.permute.xlu0 %3100 }
0x11d5   :  { %3133 = vmatpush.msra.mxu0 %v3101_v11 }
0x11d6   :  { %5060 = vmatmul.msk.f32.vlgmr.msra.gmra.mxu0 %vm989_vm15, %v3094_v36 }
0x11d7   :  { %3334 = vmatpush.msrb.mxu0 %v5293_v18 }
0x11d8   :  { %v5496_v59 = vpop.eup %5495 }
0x11d9   :  { %3335 = vmatpush.msrb.mxu0 %v5294_v51  ;;  %v3290_v10 = vpop.xlane.xlu2 %3289  ;;  %v3096_v45 = vmul.f32 %v5496_v59, %v6835_v31 }
0x11da   :  { %5497 = vrcp.f32 %v3290_v10 }
0x11de   :  { %5061 = vmatmul.msk.f32.gmra.mxu0 %vm989_vm15, %v3095_v41 }
0x11e0   :  { %v5498_v13 = vpop.eup %5497 }
0x11e1   :  { %v3304_v1 = vpop.permute.xlu2 %3303  ;;  %v3300_v54 = vmul.f32 %v5498_v13, %v6841_v33 }
0x11e2   :  { %3336 = vmatpush.msrb.mxu0 %v3304_v1 }
0x11e6   :  { %5062 = vmatmul.msk.f32.gmra.mxu0 %vm989_vm15, %v3096_v45 }
0x11e9   :  { %v3296_v7 = vpop.xlane.xlu1 %3295 }
0x11ee   :  { %5075 = vmatmul.msk.f32.vlgmr.msrb.gmra.mxu0 %vm989_vm15, %v3300_v54 }
0x11f1   :  { %v2948_v17 = vpop.xlane.xlu1 %2947 }
0x11f2   :  { %v2951_v56 = vsub.f32 %v6850_v62, %v2948_v17 }
0x11f4   :  { %v2956_v8 = vmul.f32 1.442695, %v2951_v56 }
0x11ff   :  { %v3293_v50 = vpop.xlane.xlu0 %3292 }
0x1200   :  { %5499 = vrcp.f32 %v3293_v50 }
0x1201   :  { %5501 = vrcp.f32 %v3296_v7 }
0x1206   :  { %v5500_v47 = vpop.eup %5499 }
0x1207   :  { %v2945_v30 = vpop.xlane.xlu0 %2944  ;;  %v3301_v40 = vmul.f32 %v5500_v47, %v5490_v58  ;;  %v5502_v22 = vpop.eup %5501 }
0x1208   :  { %v2950_v42 = vsub.f32 %v2938_v16, %v2945_v30  ;;  %v3302_v31 = vmul.f32 %v5502_v22, %v6845_v48  ;;  %v6895_v16 = vpop.f32.mrf.mxu0 }
0x1209   :  { %5076 = vmatmul.msk.f32.gmra.mxu0 %vm989_vm15, %v3301_v40 }
0x120a   :  { %v2954_v3 = vmul.f32 1.442695, %v2950_v42 }
0x120c   :  { %5503 = vpow2.f32 %v2954_v3  ;;  %v6950_v3 = vadd.f32 %v6895_v16, %v6795_v23 }
0x1210   :  { %v2881_v46 = vpop.f32.mrf.mxu0 }
0x1211   :  { %5077 = vmatmul.msk.f32.gmra.mxu0 %vm989_vm15, %v3302_v31  ;;  %v6945_v42 = vadd.f32 %v2881_v46, %v6795_v23 }
0x1212   :  { %v5504_v33 = vpop.eup %5503 }
0x1213   :  { %v2961_v5 = vsel %vm989_vm15, %v5504_v33, 0.0 }
0x1214   :  { %2962 = vadd.xlane.f32.xlu1 %v2961_v5 }
0x1218   :  { %v2884_v37 = vpop.f32.mrf.mxu0 }
0x1219   :  { %v6939_v47 = vadd.f32 %v2884_v37, %v6795_v23 }
0x121a   :  { %v2942_v9 = vpop.xlane.xlu2 %2941 }
0x121b   :  { %v2949_v60 = vsub.f32 %v2937_v24, %v2942_v9  ;;  %v5031_v24 = vld [vmem:[%s6112_s3 + $0x30] sm:$0xff] }
0x121c   :  { %3371 = vmatpush.msrb.mxu2 %v5031_v24 }
0x121d   :  { %v2952_v6 = vmul.f32 1.442695, %v2949_v60 }
0x121f   :  { %5505 = vpow2.f32 %v2952_v6 }
0x1220   :  { %5507 = vpow2.f32 %v2956_v8 }
0x1222   :  { %v3562_v11 = vpop.permute.xlu2 %3561 }
0x1225   :  { %v5506_v25 = vpop.eup %5505 }
0x1226   :  { %v2958_v58 = vsel %vm989_vm15, %v5506_v25, 0.0  ;;  %v5508_v48 = vpop.eup %5507 }
0x1227   :  { %2959 = vadd.xlane.f32.xlu0 %v2958_v58  ;;  %v2964_v62 = vsel %vm989_vm15, %v5508_v48, 0.0 }
0x122a   :  { %v3392_v13 = vpop.permute.xlu2 %3391 }
0x122d   :  { %3563 = vrot.lane.b32.xlu1 %v6887_v57, %s5618_s22 }
0x122f   :  { %2965 = vadd.xlane.f32.xlu0 %v2964_v62 }
0x1235   :  { %3393 = vrot.lane.b32.xlu1 %v6681_v2, %s5626_s28 }
0x123d   :  { %3387 = vrot.lane.b32.xlu1 %v6681_v2, %s5627_s29 }
0x1243   :  { %3559 = vrot.lane.b32.xlu0 %v6901_v44, %s5618_s22 }
0x124b   :  { %3395 = vrot.lane.b32.xlu0 %v6676_v61, %s5626_s28 }
0x1253   :  { %3385 = vrot.lane.b32.xlu0 %v6700_v28, %s5627_s29  ;;  %v3135_v63 = vpop.f32.mrf.mxu0 }
0x1254   :  { %5063 = vmatmul.msk.f32.vlgmr.msra.gmra.mxu2 %vm944_vm12, %v3135_v63 }
0x125b   :  { %v3138_v2 = vpop.f32.mrf.mxu0 }
0x125c   :  { %5064 = vmatmul.msk.f32.gmra.mxu2 %vm944_vm12, %v3138_v2 }
0x1263   :  { %v3141_v43 = vpop.f32.mrf.mxu0 }
0x1264   :  { %5065 = vmatmul.msk.f32.gmra.mxu2 %vm944_vm12, %v3141_v43 }
0x126b   :  { %v3338_v35 = vpop.f32.mrf.mxu0 }
0x126c   :  { %5078 = vmatmul.msk.f32.vlgmr.msrb.gmra.mxu2 %vm944_vm12, %v3338_v35 }
0x1286   :  { %v3341_v38 = vpop.f32.mrf.mxu0 }
0x1287   :  { %5079 = vmatmul.msk.f32.gmra.mxu2 %vm944_vm12, %v3341_v38  ;;  %v2963_v28 = vpop.xlane.xlu1 %2962 }
0x128e   :  { %v3344_v61 = vpop.f32.mrf.mxu0 }
0x128f   :  { %5080 = vmatmul.msk.f32.gmra.mxu2 %vm944_vm12, %v3344_v61 }
0x129a   :  { %v2960_v53 = vpop.xlane.xlu0 %2959 }
0x129b   :  { %5509 = vrcp.f32 %v2960_v53 }
0x129c   :  { %5511 = vrcp.f32 %v2963_v28 }
0x129f   :  { %v3564_v14 = vpop.permute.xlu1 %3563 }
0x12a0   :  { %5093 = vmatpush.xpose.msk.msra.mxu2 %vm944_vm12, %v3564_v14 }
0x12a1   :  { %v5510_v27 = vpop.eup %5509 }
0x12a2   :  { %v2970_v36 = vmul.f32 %v5510_v27, %v5506_v25  ;;  %v2966_v18 = vpop.xlane.xlu0 %2965  ;;  %v5512_v51 = vpop.eup %5511 }
0x12a3   :  { %5513 = vrcp.f32 %v2966_v18  ;;  %v2971_v0 = vmul.f32 %v5512_v51, %v5504_v33 }
0x12a4   :  { %5051 = vmatmul.msk.f32.vlgmr.msra.gmra.mxu1 %vm989_vm15, %v2970_v36  ;;  %5094 = vmatpush.xpose.msk.msra.mxu2 %vm944_vm12, %v3562_v11 }
0x12a7   :  { %v3394_v45 = vpop.permute.xlu1 %3393 }
0x12a9   :  { %v5514_v10 = vpop.eup %5513 }
0x12aa   :  { %v2972_v41 = vmul.f32 %v5514_v10, %v5508_v48  ;;  %v3390_v48 = vpop.permute.xlu2 %3389 }
0x12ac   :  { %5052 = vmatmul.msk.f32.gmra.mxu1 %vm989_vm15, %v2971_v0 }
0x12af   :  { %v3388_v56 = vpop.permute.xlu1 %3387 }
0x12b4   :  { %5053 = vmatmul.msk.f32.gmra.mxu1 %vm989_vm15, %v2972_v41 }
0x12b5   :  { %v3560_v59 = vpop.permute.xlu0 %3559 }
0x12b6   :  { %5095 = vmatpush.xpose.msk.msra.mxu2 %vm944_vm12, %v3560_v59 }
0x12b9   :  { %5096 = vmatmul.msk.f32.vlgmr.msra.gmra.mxu2 %vm944_vm12, %v6901_v44 }
0x12ba   :  { %3837 = vmatpush.msrb.mxu2 %v5030_v15 }
0x12bc   :  { %4040 = vmatpush.msra.mxu2 %v5031_v24 }
0x12bd   :  { %v3396_v1 = vpop.permute.xlu0 %3395 }
0x12be   :  { %5081 = vmatpush.xpose.msk.msra.mxu1 %vm944_vm12, %v3396_v1 }
0x12c1   :  { %5097 = vmatmul.msk.f32.gmra.mxu2 %vm944_vm12, %v6863_v49 }
0x12c2   :  { %5082 = vmatpush.xpose.msk.msra.mxu1 %vm944_vm12, %v3394_v45 }
0x12c5   :  { %v3386_v17 = vpop.permute.xlu0 %3385 }
0x12c6   :  { %5083 = vmatpush.xpose.msk.msra.mxu1 %vm944_vm12, %v3392_v13 }
0x12c9   :  { %5098 = vmatmul.msk.f32.gmra.mxu2 %vm944_vm12, %v6887_v57 }
0x12d7   :  { %v6932_v54 = vpop.f32.mrf.mxu2 }
0x12df   :  { %v6934_v50 = vpop.f32.mrf.mxu2 }
0x12e7   :  { %v6936_v7 = vpop.f32.mrf.mxu2 }
0x12ef   :  { %v6941_v40 = vpop.f32.mrf.mxu2 }
0x130a   :  { %v6954_v31 = vpop.f32.mrf.mxu2 }
0x1312   :  { %v6958_v5 = vpop.f32.mrf.mxu2 }
0x1321   :  { %v2999_v30 = vpop.f32.mrf.mxu1 }
0x1322   :  { %5066 = vmatmul.msk.f32.vlgmr.msrb.gmra.mxu1 %vm944_vm12, %v2999_v30 }
0x1323   :  { %3664 = vmatpush.msrb.mxu1 %v6939_v47 }
0x1325   :  { %3665 = vmatpush.msrb.mxu1 %v6945_v42 }
0x1327   :  { %3666 = vmatpush.msrb.mxu1 %v6950_v3 }
0x1329   :  { %v3002_v22 = vpop.f32.mrf.mxu1 }
0x132a   :  { %5067 = vmatmul.msk.f32.gmra.mxu1 %vm944_vm12, %v3002_v22 }
0x1331   :  { %v3005_v33 = vpop.f32.mrf.mxu1 }
0x1332   :  { %5068 = vmatmul.msk.f32.gmra.mxu1 %vm944_vm12, %v3005_v33 }
0x133a   :  { %5084 = vmatmul.msk.f32.vlgmr.msra.gmra.mxu1 %vm944_vm12, %v3386_v17 }
0x133b   :  { %3872 = vmatpush.msra.mxu1 %v5029_v55 }
0x133c   :  { %v3594_v23 = vpop.f32.mrf.mxu2 }
0x133d   :  { %v3603_v9 = vmul.f32 0.35355338, %v3594_v23 }
0x133f   :  { %v3606_v60 = vadd.f32 %v3603_v9, %v6002_v20 }
0x1341   :  { %v3609_v6 = vsel %vm989_vm15, %v3606_v60, -inf }
0x1342   :  { %3610 = vmax.xlane.f32.xlu0 %v3609_v6  ;;  %5085 = vmatmul.msk.f32.gmra.mxu1 %vm944_vm12, %v3388_v56 }
0x1344   :  { %v3597_v8 = vpop.f32.mrf.mxu2 }
0x1345   :  { %v3604_v25 = vmul.f32 0.35355338, %v3597_v8 }
0x1347   :  { %v3607_v58 = vadd.f32 %v3604_v25, %v6002_v20 }
0x1349   :  { %v3612_v15 = vsel %vm989_vm15, %v3607_v58, -inf }
0x134a   :  { %3613 = vmax.xlane.f32.xlu1 %v3612_v15  ;;  %5086 = vmatmul.msk.f32.gmra.mxu1 %vm944_vm12, %v3390_v48 }
0x134c   :  { %v3600_v62 = vpop.f32.mrf.mxu2 }
0x134d   :  { %v3605_v16 = vmul.f32 0.35355338, %v3600_v62 }
0x134f   :  { %v3608_v46 = vadd.f32 %v3605_v16, %v6010_v32 }
0x1351   :  { %v3615_v37 = vsel %vm989_vm15, %v3608_v46, -inf }
0x1352   :  { %3616 = vmax.xlane.f32.xlu2 %v3615_v37 }
0x139f   :  { %v6969_v24 = vpop.f32.mrf.mxu1 }
0x13a7   :  { %v6971_v63 = vpop.f32.mrf.mxu1 }
0x13af   :  { %v6973_v2 = vpop.f32.mrf.mxu1 }
0x13b5   :  { %v3611_v43 = vpop.xlane.xlu0 %3610 }
0x13b6   :  { %v3618_v35 = vsub.f32 %v3606_v60, %v3611_v43 }
0x13b7   :  { %v3426_v61 = vpop.f32.mrf.mxu1 }
0x13b8   :  { %v3621_v38 = vmul.f32 1.442695, %v3618_v35  ;;  %v3435_v27 = vmul.f32 0.35355338, %v3426_v61 }
0x13ba   :  { %5515 = vpow2.f32 %v3621_v38  ;;  %v3438_v18 = vadd.f32 %v3435_v27, %v6002_v20 }
0x13bc   :  { %v3441_v45 = vsel %vm989_vm15, %v3438_v18, -inf }
0x13bd   :  { %v3614_v28 = vpop.xlane.xlu1 %3613 }
0x13be   :  { %v3619_v53 = vsub.f32 %v3607_v58, %v3614_v28 }
0x13bf   :  { %v3429_v11 = vpop.f32.mrf.mxu1 }
0x13c0   :  { %v5516_v55 = vpop.eup %5515  ;;  %v3623_v14 = vmul.f32 1.442695, %v3619_v53  ;;  %v3436_v59 = vmul.f32 0.35355338, %v3429_v11 }
0x13c1   :  { %v3627_v36 = vsel %vm989_vm15, %v5516_v55, 0.0 }
0x13c2   :  { %5517 = vpow2.f32 %v3623_v14  ;;  %3628 = vadd.xlane.f32.xlu0 %v3627_v36  ;;  %v3439_v13 = vadd.f32 %v3436_v59, %v6002_v20 }
0x13c4   :  { %v3444_v23 = vsel %vm989_vm15, %v3439_v13, -inf }
0x13c5   :  { %v3617_v51 = vpop.xlane.xlu2 %3616 }
0x13c6   :  { %v3620_v0 = vsub.f32 %v3608_v46, %v3617_v51 }
0x13c7   :  { %v3432_v30 = vpop.f32.mrf.mxu1 }
0x13c8   :  { %v5518_v10 = vpop.eup %5517  ;;  %v3625_v41 = vmul.f32 1.442695, %v3620_v0  ;;  %v3437_v33 = vmul.f32 0.35355338, %v3432_v30 }
0x13c9   :  { %v3630_v1 = vsel %vm989_vm15, %v5518_v10, 0.0 }
0x13ca   :  { %5519 = vpow2.f32 %v3625_v41  ;;  %3631 = vadd.xlane.f32.xlu1 %v3630_v1  ;;  %3442 = vmax.xlane.f32.xlu0 %v3441_v45  ;;  %v3440_v9 = vadd.f32 %v3437_v33, %v6010_v32 }
0x13cc   :  { %v3447_v60 = vsel %vm989_vm15, %v3440_v9, -inf }
0x13d0   :  { %v5520_v22 = vpop.eup %5519 }
0x13d1   :  { %v3633_v17 = vsel %vm989_vm15, %v5520_v22, 0.0 }
0x13d2   :  { %3634 = vadd.xlane.f32.xlu2 %v3633_v17  ;;  %3445 = vmax.xlane.f32.xlu1 %v3444_v23 }
0x13da   :  { %3448 = vmax.xlane.f32.xlu2 %v3447_v60 }
0x13eb   :  { %5296 = vrot.lane.b32.xlu1 %v6799_v39, %s5627_s29 }
0x13f3   :  { %3685 = vrot.lane.b32.xlu1 %v6863_v49, %s5619_s23 }
0x13fb   :  { %3677 = vrot.lane.b32.xlu1 %v6901_v44, %s5620_s24 }
0x1403   :  { %3681 = vrot.lane.b32.xlu1 %v6887_v57, %s5620_s24 }
0x140b   :  { %4064 = vrot.lane.b32.xlu1 %v6887_v57, %s5626_s28 }
0x1413   :  { %4060 = vrot.lane.b32.xlu1 %v6901_v44, %s5626_s28 }
0x141b   :  { %3887 = vrot.lane.b32.xlu1 %v6887_v57, %s5622_s26 }
0x1435   :  { %v3629_v56 = vpop.xlane.xlu0 %3628 }
0x1436   :  { %5521 = vrcp.f32 %v3629_v56 }
0x143c   :  { %v5522_v39 = vpop.eup %5521 }
0x143d   :  { %v3639_v6 = vmul.f32 %v5522_v39, %v5516_v55  ;;  %v3632_v8 = vpop.xlane.xlu1 %3631  ;;  %v3443_v25 = vpop.xlane.xlu0 %3442 }
0x143e   :  { %5523 = vrcp.f32 %v3632_v8  ;;  %v3450_v58 = vsub.f32 %v3438_v18, %v3443_v25 }
0x143f   :  { %5099 = vmatmul.msk.f32.vlgmr.msrb.gmra.mxu1 %vm989_vm15, %v3639_v6 }
0x1440   :  { %v3453_v48 = vmul.f32 1.442695, %v3450_v58 }
0x1442   :  { %5525 = vpow2.f32 %v3453_v48 }
0x1444   :  { %v5524_v15 = vpop.eup %5523 }
0x1445   :  { %v3635_v62 = vpop.xlane.xlu2 %3634  ;;  %v3446_v16 = vpop.xlane.xlu1 %3445  ;;  %v3640_v46 = vmul.f32 %v5524_v15, %v5518_v10 }
0x1446   :  { %5527 = vrcp.f32 %v3635_v62  ;;  %v3451_v37 = vsub.f32 %v3439_v13, %v3446_v16 }
0x1447   :  { %5100 = vmatmul.msk.f32.gmra.mxu1 %vm989_vm15, %v3640_v46 }
0x1448   :  { %v5526_v43 = vpop.eup %5525  ;;  %v3455_v35 = vmul.f32 1.442695, %v3451_v37 }
0x1449   :  { %v3459_v38 = vsel %vm989_vm15, %v5526_v43, 0.0 }
0x144a   :  { %5529 = vpow2.f32 %v3455_v35  ;;  %3460 = vadd.xlane.f32.xlu0 %v3459_v38 }
0x144c   :  { %v5528_v61 = vpop.eup %5527 }
0x144d   :  { %v3449_v28 = vpop.xlane.xlu2 %3448  ;;  %v3641_v53 = vmul.f32 %v5528_v61, %v5520_v22  ;;  %v7055_v61 = vld [vmem:[%s6112_s3 + $0x38] sm:$0xff] }
0x144e   :  { %v3452_v55 = vsub.f32 %v3440_v9, %v3449_v28  ;;  %3542 = vmatpush.msra.mxu0 %v7055_v61 }
0x144f   :  { %5101 = vmatmul.msk.f32.gmra.mxu1 %vm989_vm15, %v3641_v53 }
0x1450   :  { %v5530_v14 = vpop.eup %5529  ;;  %v3457_v27 = vmul.f32 1.442695, %v3452_v55 }
0x1451   :  { %v3462_v36 = vsel %vm989_vm15, %v5530_v14, 0.0 }
0x1452   :  { %5531 = vpow2.f32 %v3457_v27  ;;  %3463 = vadd.xlane.f32.xlu2 %v3462_v36 }
0x1458   :  { %v5532_v11 = vpop.eup %5531 }
0x1459   :  { %v3465_v18 = vsel %vm989_vm15, %v5532_v11, 0.0 }
0x145a   :  { %3466 = vadd.xlane.f32.xlu2 %v3465_v18 }
0x145d   :  { %v5297_v51 = vpop.permute.xlu1 %5296 }
0x145e   :  { %v5298_v0 = vunpack.i.l.bf16 %v5297_v51  ;;  %3474 = vrot.lane.b32.xlu0 %v6804_v4, %s5627_s29  ;;  %v5299_v10 = vunpack.i.h.bf16 %v5297_v51 }
0x1460   :  { %3505 = vmatpush.msra.mxu3 %v5298_v0 }
0x1462   :  { %3506 = vmatpush.msra.mxu3 %v5299_v10 }
0x1465   :  { %v3686_v41 = vpop.permute.xlu1 %3685 }
0x1466   :  { %3683 = vrot.lane.b32.xlu0 %v6901_v44, %s5619_s23 }
0x146d   :  { %v3678_v59 = vpop.permute.xlu1 %3677 }
0x146e   :  { %3679 = vrot.lane.b32.xlu0 %v6863_v49, %s5620_s24 }
0x1472   :  { %3687 = vrot.lane.b32.xlu2 %v6887_v57, %s5619_s23  ;;  %s4856_s23 = sld [smem:[%s7422_s0 + %s5639_s9]]  }
0x1475   :  { %v3682_v1 = vpop.permute.xlu1 %3681 }
0x1476   :  { %3891 = vrot.lane.b32.xlu0 %v6863_v49, %s5621_s25 }
0x147a   :  { %3893 = vrot.lane.b32.xlu2 %v6887_v57, %s5621_s25 }
0x147d   :  { %v4065_v4 = vpop.permute.xlu1 %4064 }
0x147e   :  { %3883 = vrot.lane.b32.xlu0 %v6901_v44, %s5622_s26  ;;  %5129 = vmatpush.xpose.msk.msrb.mxu1 %vm944_vm12, %v4065_v4 }
0x1482   :  { %3889 = vrot.lane.b32.xlu2 %v6901_v44, %s5621_s25 }
0x1485   :  { %v4061_v16 = vpop.permute.xlu1 %4060 }
0x1486   :  { %3885 = vrot.lane.b32.xlu0 %v6863_v49, %s5622_s26 }
0x148a   :  { %4062 = vrot.lane.b32.xlu2 %v6863_v49, %s5626_s28  ;;  %s5641_s28 = smov 32  }
0x148d   :  { %v3888_v38 = vpop.permute.xlu1 %3887 }
0x148e   :  { %4056 = vrot.lane.b32.xlu0 %v6863_v49, %s5627_s29 }
0x1492   :  { %4054 = vrot.lane.b32.xlu2 %v6901_v44, %s5627_s29 }
0x149a   :  { %4058 = vrot.lane.b32.xlu2 %v6887_v57, %s5627_s29 }
0x14bc   :  { %v3668_v45 = vpop.f32.mrf.mxu1 }
0x14bd   :  { %5114 = vmatmul.msk.f32.vlgmr.msra.gmra.mxu1 %vm944_vm12, %v3668_v45  ;;  %v3461_v13 = vpop.xlane.xlu0 %3460 }
0x14be   :  { %5533 = vrcp.f32 %v3461_v13 }
0x14c4   :  { %v3671_v30 = vpop.f32.mrf.mxu1  ;;  %v5534_v17 = vpop.eup %5533 }
0x14c5   :  { %5115 = vmatmul.msk.f32.gmra.mxu1 %vm944_vm12, %v3671_v30  ;;  %v3464_v22 = vpop.xlane.xlu2 %3463  ;;  %v3471_v23 = vmul.f32 %v5534_v17, %v5526_v43  ;;  %v7071_v17 = vpack.i.bf16 %v6945_v42, %v6939_v47 }
0x14c6   :  { %5535 = vrcp.f32 %v3464_v22 }
0x14cc   :  { %v3674_v33 = vpop.f32.mrf.mxu1  ;;  %v5536_v57 = vpop.eup %5535 }
0x14cd   :  { %5116 = vmatmul.msk.f32.gmra.mxu1 %vm944_vm12, %v3674_v33  ;;  %v3467_v49 = vpop.xlane.xlu2 %3466  ;;  %v3472_v56 = vmul.f32 %v5536_v57, %v5530_v14 }
0x14ce   :  { %5537 = vrcp.f32 %v3467_v49 }
0x14d0   :  { %v3475_v44 = vpop.permute.xlu0 %3474 }
0x14d1   :  { %3507 = vmatpush.msra.mxu3 %v3475_v44 }
0x14d2   :  { %5087 = vmatmul.msk.f32.vlgmr.msra.gmra.mxu3 %vm989_vm15, %v3471_v23 }
0x14d4   :  { %v5538_v39 = vpop.eup %5537 }
0x14d5   :  { %v3688_v9 = vpop.permute.xlu2 %3687  ;;  %v3473_v25 = vmul.f32 %v5538_v39, %v5532_v11 }
0x14d6   :  { %5102 = vmatpush.xpose.msk.msrb.mxu3 %vm944_vm12, %v3688_v9 }
0x14d8   :  { %v3684_v60 = vpop.permute.xlu0 %3683 }
0x14da   :  { %5088 = vmatmul.msk.f32.gmra.mxu3 %vm989_vm15, %v3472_v56 }
0x14db   :  { %5103 = vmatpush.xpose.msk.msrb.mxu3 %vm944_vm12, %v3686_v41 }
0x14dd   :  { %v3894_v6 = vpop.permute.xlu2 %3893 }
0x14df   :  { %5104 = vmatpush.xpose.msk.msrb.mxu3 %vm944_vm12, %v3684_v60 }
0x14e0   :  { %v3680_v8 = vpop.permute.xlu0 %3679 }
0x14e2   :  { %5089 = vmatmul.msk.f32.gmra.mxu3 %vm989_vm15, %v3473_v25 }
0x14e3   :  { %5117 = vmatpush.xpose.msk.msra.mxu3 %vm944_vm12, %v3894_v6 }
0x14e5   :  { %v3890_v58 = vpop.permute.xlu2 %3889 }
0x14e8   :  { %v3892_v48 = vpop.permute.xlu0 %3891 }
0x14e9   :  { %5118 = vmatpush.xpose.msk.msra.mxu3 %vm944_vm12, %v3892_v48  ;;  %v3206_v48 = vadd.f32 %v6969_v24, %v6932_v54 }
0x14ea   :  { %5105 = vmatmul.msk.f32.vlgmr.msrb.gmra.mxu3 %vm944_vm12, %v3678_v59 }
0x14ed   :  { %5119 = vmatpush.xpose.msk.msra.mxu3 %vm944_vm12, %v3890_v58  ;;  %v4063_v15 = vpop.permute.xlu2 %4062 }
0x14ee   :  { %5130 = vmatpush.xpose.msk.msrb.mxu1 %vm944_vm12, %v4063_v15  ;;  %v3382_v15 = vadd.f32 %v6941_v40, %v3206_v48 }
0x14f0   :  { %v3884_v62 = vpop.permute.xlu0 %3883 }
0x14f2   :  { %5106 = vmatmul.msk.f32.gmra.mxu3 %vm944_vm12, %v3680_v8  ;;  %5131 = vmatpush.xpose.msk.msrb.mxu1 %vm944_vm12, %v4061_v16 }
0x14f5   :  { %v4055_v46 = vpop.permute.xlu2 %4054 }
0x14f6   :  { %5132 = vmatmul.msk.f32.vlgmr.msrb.gmra.mxu1 %vm944_vm12, %v4055_v46  ;;  %v3209_v46 = vadd.f32 %v6971_v63, %v6934_v50 }
0x14f8   :  { %v3886_v37 = vpop.permute.xlu0 %3885 }
0x14fa   :  { %5107 = vmatmul.msk.f32.gmra.mxu3 %vm944_vm12, %v3682_v1 }
0x14fd   :  { %v4059_v35 = vpop.permute.xlu2 %4058 }
0x1500   :  { %v4057_v43 = vpop.permute.xlu0 %4056 }
0x1501   :  { %5133 = vmatmul.msk.f32.gmra.mxu1 %vm944_vm12, %v4057_v43 }
0x1502   :  { %5120 = vmatmul.msk.f32.vlgmr.msra.gmra.mxu3 %vm944_vm12, %v3884_v62 }
0x1509   :  { %5134 = vmatmul.msk.f32.gmra.mxu1 %vm944_vm12, %v4059_v35 }
0x150a   :  { %5121 = vmatmul.msk.f32.gmra.mxu3 %vm944_vm12, %v3886_v37  ;;  %v3383_v37 = vadd.f32 %v6954_v31, %v3209_v46 }
0x1512   :  { %5122 = vmatmul.msk.f32.gmra.mxu3 %vm944_vm12, %v3888_v38 }
0x153a   :  { %v7080_v57 = vpop.f32.mrf.mxu1 }
0x1542   :  { %v7082_v9 = vpop.f32.mrf.mxu1 }
0x154a   :  { %v7086_v47 = vpop.f32.mrf.mxu1 }
0x1555   :  { %v3509_v28 = vpop.f32.mrf.mxu3 }
0x1556   :  { %5090 = vmatmul.msk.f32.vlgmr.msra.gmra.mxu0 %vm944_vm12, %v3509_v28 }
0x155d   :  { %v3512_v53 = vpop.f32.mrf.mxu3 }
0x155e   :  { %5091 = vmatmul.msk.f32.gmra.mxu0 %vm944_vm12, %v3512_v53 }
0x1565   :  { %v3515_v55 = vpop.f32.mrf.mxu3 }
0x1566   :  { %5092 = vmatmul.msk.f32.gmra.mxu0 %vm944_vm12, %v3515_v55 }
0x156d   :  { %v3718_v14 = vpop.f32.mrf.mxu3 }
0x156e   :  { %v3727_v27 = vmul.f32 0.35355338, %v3718_v14 }
0x1570   :  { %v3730_v36 = vadd.f32 %v3727_v27, %v6002_v20 }
0x1572   :  { %v3733_v11 = vsel %vm989_vm15, %v3730_v36, -inf }
0x1573   :  { %3734 = vmax.xlane.f32.xlu1 %v3733_v11  ;;  %v4095_v39 = vpop.f32.mrf.mxu1 }
0x1574   :  { %v4104_v6 = vmul.f32 0.35355338, %v4095_v39 }
0x1575   :  { %v3721_v18 = vpop.f32.mrf.mxu3 }
0x1576   :  { %v3728_v51 = vmul.f32 0.35355338, %v3721_v18  ;;  %v7094_v25 = vadd.f32 %v4104_v6, %v6002_v20 }
0x1578   :  { %v3731_v0 = vadd.f32 %v3728_v51, %v6002_v20  ;;  %v4110_v58 = vsel %vm989_vm15, %v7094_v25, -inf }
0x157a   :  { %v3736_v10 = vsel %vm989_vm15, %v3731_v0, -inf }
0x157b   :  { %3737 = vmax.xlane.f32.xlu0 %v3736_v10 }
0x157d   :  { %v3724_v41 = vpop.f32.mrf.mxu3 }
0x157e   :  { %v3729_v59 = vmul.f32 0.35355338, %v3724_v41  ;;  %v4098_v14 = vpop.f32.mrf.mxu1 }
0x157f   :  { %v4105_v27 = vmul.f32 0.35355338, %v4098_v14 }
0x1580   :  { %v3732_v1 = vadd.f32 %v3729_v59, %v6010_v32 }
0x1581   :  { %v7110_v50 = vadd.f32 %v4105_v27, %v6002_v20 }
0x1582   :  { %v3739_v4 = vsel %vm989_vm15, %v3732_v1, -inf }
0x1583   :  { %3740 = vmax.xlane.f32.xlu2 %v3739_v4  ;;  %v4113_v10 = vsel %vm989_vm15, %v7110_v50, -inf }
0x1585   :  { %v3924_v45 = vpop.f32.mrf.mxu3 }
0x1586   :  { %v3933_v13 = vmul.f32 0.35355338, %v3924_v45  ;;  %v4101_v6 = vpop.f32.mrf.mxu1 }
0x1588   :  { %v3936_v30 = vadd.f32 %v3933_v13, %v6002_v20 }
0x158a   :  { %v3939_v22 = vsel %vm989_vm15, %v3936_v30, -inf }
0x158b   :  { %3940 = vmax.xlane.f32.xlu1 %v3939_v22 }
0x158d   :  { %v3927_v33 = vpop.f32.mrf.mxu3 }
0x158e   :  { %v3934_v49 = vmul.f32 0.35355338, %v3927_v33 }
0x158f   :  { %5301 = vrot.lane.b32.xlu0 %v7071_v17, %s5620_s24 }
0x1590   :  { %v7076_v23 = vadd.f32 %v3934_v49, %v6002_v20 }
0x1592   :  { %v3942_v44 = vsel %vm989_vm15, %v7076_v23, -inf }
0x1593   :  { %3943 = vmax.xlane.f32.xlu2 %v3942_v44 }
0x1595   :  { %v3930_v42 = vpop.f32.mrf.mxu3 }
0x1596   :  { %v3935_v60 = vmul.f32 0.35355338, %v3930_v42 }
0x1598   :  { %v7089_v56 = vadd.f32 %v3935_v60, %v6010_v32 }
0x159a   :  { %v3945_v8 = vsel %vm989_vm15, %v7089_v56, -inf }
0x15a4   :  { %3769 = vrot.lane.b32.xlu1 %v6950_v3, %s5620_s24  ;;  %s5640_s24 = smov 31  }
0x15a5   :  { %s7354_s27 = sld [smem:[%s7422_s0 + %s5640_s24]]  }
0x15b9   :  { %3946 = vmax.xlane.f32.xlu0 %v3945_v8 }
0x15c1   :  { %4111 = vmax.xlane.f32.xlu0 %v4110_v58  ;;  %v4106_v58 = vmul.f32 0.35355338, %v4101_v6 }
0x15d3   :  { %v3544_v62 = vpop.f32.mrf.mxu0 }
0x15d4   :  { %v7101_v16 = vadd.f32 %v3544_v62, %v3382_v15 }
0x15db   :  { %v3547_v43 = vpop.f32.mrf.mxu0 }
0x15dc   :  { %v7106_v35 = vadd.f32 %v3547_v43, %v3383_v37 }
0x15e6   :  { %v3735_v38 = vpop.xlane.xlu1 %3734 }
0x15e7   :  { %v3742_v28 = vsub.f32 %v3730_v36, %v3735_v38 }
0x15e9   :  { %v3745_v53 = vmul.f32 1.442695, %v3742_v28 }
0x15eb   :  { %5539 = vpow2.f32 %v3745_v53 }
0x15ee   :  { %v3738_v55 = vpop.xlane.xlu0 %3737 }
0x15ef   :  { %v3743_v54 = vsub.f32 %v3731_v0, %v3738_v55 }
0x15f1   :  { %v5540_v24 = vpop.eup %5539  ;;  %v3747_v40 = vmul.f32 1.442695, %v3743_v54 }
0x15f2   :  { %v3751_v11 = vsel %vm989_vm15, %v5540_v24, 0.0 }
0x15f3   :  { %5541 = vpow2.f32 %v3747_v40  ;;  %3752 = vadd.xlane.f32.xlu1 %v3751_v11 }
0x15f6   :  { %v3741_v31 = vpop.xlane.xlu2 %3740 }
0x15f7   :  { %v3744_v63 = vsub.f32 %v3732_v1, %v3741_v31 }
0x15f9   :  { %v5542_v18 = vpop.eup %5541  ;;  %v3749_v51 = vmul.f32 1.442695, %v3744_v63 }
0x15fa   :  { %v3754_v36 = vsel %vm989_vm15, %v5542_v18, 0.0 }
0x15fb   :  { %5543 = vpow2.f32 %v3749_v51  ;;  %3755 = vadd.xlane.f32.xlu2 %v3754_v36  ;;  %4114 = vmax.xlane.f32.xlu1 %v4113_v10  ;;  %v3550_v36 = vpop.f32.mrf.mxu0 }
0x15fe   :  { %v3941_v0 = vpop.xlane.xlu1 %3940 }
0x15ff   :  { %v3948_v41 = vsub.f32 %v3936_v30, %v3941_v0 }
0x1601   :  { %v5544_v59 = vpop.eup %5543  ;;  %v3951_v4 = vmul.f32 1.442695, %v3948_v41  ;;  %v5302_v45 = vpop.permute.xlu0 %5301 }
0x1602   :  { %v5303_v13 = vunpack.i.l.bf16 %v5302_v45  ;;  %v3757_v20 = vsel %vm989_vm15, %v5544_v59, 0.0  ;;  %v5304_v1 = vunpack.i.h.bf16 %v5302_v45 }
0x1603   :  { %5545 = vpow2.f32 %v3951_v4  ;;  %3758 = vadd.xlane.f32.xlu2 %v3757_v20  ;;  %v7153_v20 = vld [vmem:[%s6276_s7 + $0x1] ss:$0 sm:$0xff]  ;;  %s7384_s7 = sld [smem:[%s7422_s0 + %s5641_s28]]  }
0x1604   :  { %3800 = vmatpush.msrb.mxu0 %v5303_v13 }
0x1606   :  { %3801 = vmatpush.msrb.mxu0 %v5304_v1  ;;  %v3944_v49 = vpop.xlane.xlu2 %3943 }
0x1607   :  { %v3949_v44 = vsub.f32 %v7076_v23, %v3944_v49 }
0x1609   :  { %v7116_v22 = vpop.eup %5545  ;;  %v3953_v42 = vmul.f32 1.442695, %v3949_v44 }
0x160a   :  { %v3957_v33 = vsel %vm989_vm15, %v7116_v22, 0.0 }
0x160b   :  { %3958 = vadd.xlane.f32.xlu0 %v3957_v33  ;;  %5547 = vpow2.f32 %v3953_v42 }
0x1611   :  { %v7128_v8 = vpop.eup %5547 }
0x1612   :  { %v3960_v15 = vsel %vm989_vm15, %v7128_v8, 0.0 }
0x1614   :  { %5311 = vrot.lane.b32.xlu1 %v7071_v17, %s5627_s29 }
0x1616   :  { %v3770_v30 = vpop.permute.xlu1 %3769 }
0x1617   :  { %3802 = vmatpush.msrb.mxu0 %v3770_v30 }
0x161b   :  { %5306 = vrot.lane.b32.xlu2 %v7071_v17, %s5622_s26  ;;  %v4109_v17 = vadd.f32 %v4106_v58, %v6010_v32  ;;  %v4230_v58 = vadd.f32 %v7153_v20, %v7101_v16 }
0x161d   :  { %v4116_v62 = vsel %vm989_vm15, %v4109_v17, -inf }
0x161f   :  { %4143 = vrot.lane.b32.xlu0 %v6950_v3, %s5627_s29 }
0x162c   :  { %v3947_v60 = vpop.xlane.xlu0 %3946 }
0x162d   :  { %v3950_v39 = vsub.f32 %v7089_v56, %v3947_v60 }
0x162f   :  { %v3955_v48 = vmul.f32 1.442695, %v3950_v39 }
0x1631   :  { %5549 = vpow2.f32 %v3955_v48 }
0x1634   :  { %v4112_v32 = vpop.xlane.xlu0 %4111 }
0x1635   :  { %v4119_v28 = vsub.f32 %v7094_v25, %v4112_v32 }
0x1637   :  { %v7134_v23 = vpop.eup %5549  ;;  %v4122_v54 = vmul.f32 1.442695, %v4119_v28 }
0x1638   :  { %v3963_v56 = vsel %vm989_vm15, %v7134_v23, 0.0 }
0x163e   :  { %3961 = vadd.xlane.f32.xlu1 %v3960_v15 }
0x1644   :  { %4117 = vmax.xlane.f32.xlu2 %v4116_v62 }
0x1649   :  { %3964 = vadd.xlane.f32.xlu0 %v3963_v56  ;;  %v4231_v56 = vadd.f32 %v7153_v20, %v7106_v35 }
0x165c   :  { %3972 = vrot.lane.b32.xlu2 %v6950_v3, %s5622_s26 }
0x1666   :  { %v3753_v46 = vpop.xlane.xlu1 %3752 }
0x1667   :  { %5551 = vrcp.f32 %v3753_v46 }
0x166d   :  { %v5552_v37 = vpop.eup %5551 }
0x166e   :  { %v3763_v43 = vmul.f32 %v5552_v37, %v5540_v24  ;;  %v3756_v38 = vpop.xlane.xlu2 %3755  ;;  %v4115_v40 = vpop.xlane.xlu1 %4114  ;;  %v7176_v37 = vadd.f32 %v4231_v56, %v6651_v12 }
0x166f   :  { %5553 = vrcp.f32 %v3756_v38  ;;  %v4120_v3 = vsub.f32 %v7110_v50, %v4115_v40 }
0x1670   :  { %5108 = vmatmul.msk.f32.vlgmr.msrb.gmra.mxu0 %vm989_vm15, %v3763_v43 }
0x1671   :  { %v4124_v31 = vmul.f32 1.442695, %v4120_v3 }
0x1675   :  { %v5554_v53 = vpop.eup %5553 }
0x1676   :  { %v3759_v55 = vpop.xlane.xlu2 %3758  ;;  %v3764_v14 = vmul.f32 %v5554_v53, %v5542_v18  ;;  %v3212_v18 = vadd.f32 %v6973_v2, %v6936_v7 }
0x1677   :  { %5555 = vrcp.f32 %v3759_v55 }
0x1678   :  { %5109 = vmatmul.msk.f32.gmra.mxu0 %vm989_vm15, %v3764_v14  ;;  %5557 = vpow2.f32 %v4122_v54  ;;  %v3384_v10 = vadd.f32 %v6958_v5, %v3212_v18 }
0x1679   :  { %5559 = vpow2.f32 %v4124_v31 }
0x167d   :  { %v5556_v27 = vpop.eup %5555 }
0x167e   :  { %v5307_v24 = vpop.permute.xlu2 %5306  ;;  %v3765_v11 = vmul.f32 %v5556_v27, %v5544_v59  ;;  %v7145_v51 = vpop.eup %5557  ;;  %v3555_v59 = vadd.f32 %v3550_v36, %v3384_v10 }
0x167f   :  { %v5308_v63 = vunpack.i.l.bf16 %v5307_v24  ;;  %v5309_v25 = vunpack.i.h.bf16 %v5307_v24  ;;  %v4128_v50 = vsel %vm989_vm15, %v7145_v51, 0.0  ;;  %v5560_v4 = vpop.eup %5559  ;;  %v3959_v45 = vpop.xlane.xlu0 %3958 }
0x1680   :  { %5110 = vmatmul.msk.f32.gmra.mxu0 %vm989_vm15, %v3765_v11  ;;  %v4232_v7 = vadd.f32 %v7153_v20, %v3555_v59  ;;  %v4131_v2 = vsel %vm989_vm15, %v5560_v4, 0.0  ;;  %5561 = vrcp.f32 %v3959_v45 }
0x1681   :  { %4003 = vmatpush.msra.mxu0 %v5308_v63 }
0x1682   :  { %v4238_v1 = vadd.f32 %v4232_v7, %v6659_v19 }
0x1683   :  { %4004 = vmatpush.msra.mxu0 %v5309_v25 }
0x1684   :  { %v4252_v5 = vsel %vm635_vm7, %v4238_v1, 0.0 }
0x1685   :  { %4129 = vadd.xlane.f32.xlu2 %v4128_v50 }
0x1686   :  { %v5312_v0 = vpop.permute.xlu1 %5311  ;;  %v5562_v60 = vpop.eup %5561 }
0x1687   :  { %v5313_v41 = vunpack.i.l.bf16 %v5312_v0  ;;  %v5314_v13 = vunpack.i.h.bf16 %v5312_v0  ;;  %v3969_v39 = vmul.f32 %v5562_v60, %v7116_v22  ;;  %v7167_v22 = vadd.f32 %v4230_v58, %v6634_v34 }
0x1688   :  { %v4249_v34 = vsel %vm635_vm7, %v7176_v37, 0.0 }
0x1689   :  { %4174 = vmatpush.msrb.mxu3 %v5313_v41 }
0x168b   :  { %4175 = vmatpush.msrb.mxu3 %v5314_v13 }
0x168d   :  { %4132 = vadd.xlane.f32.xlu2 %v4131_v2 }
0x1691   :  { %v4144_v33 = vpop.permute.xlu0 %4143 }
0x1692   :  { %4176 = vmatpush.msrb.mxu3 %v4144_v33 }
0x1695   :  { %4253 = vadd.xlane.f32.xlu2 %v4252_v5 }
0x16b1   :  { %v3962_v42 = vpop.xlane.xlu1 %3961 }
0x16b7   :  { %v4118_v30 = vpop.xlane.xlu2 %4117 }
0x16b8   :  { %v4121_v49 = vsub.f32 %v4109_v17, %v4118_v30 }
0x16ba   :  { %v4126_v44 = vmul.f32 1.442695, %v4121_v49 }
0x16bc   :  { %5563 = vpow2.f32 %v4126_v44  ;;  %v3965_v48 = vpop.xlane.xlu0 %3964 }
0x16bd   :  { %5565 = vrcp.f32 %v3962_v42 }
0x16be   :  { %5567 = vrcp.f32 %v3965_v48 }
0x16bf   :  { %v3973_v6 = vpop.permute.xlu2 %3972 }
0x16c0   :  { %4005 = vmatpush.msra.mxu0 %v3973_v6 }
0x16c1   :  { %5123 = vmatmul.msk.f32.vlgmr.msra.gmra.mxu0 %vm989_vm15, %v3969_v39 }
0x16c2   :  { %v5564_v19 = vpop.eup %5563  ;;  %4211 = vmatpush.msrb.mxu0 %v7055_v61  ;;  %v4246_v61 = vsel %vm635_vm7, %v7167_v22, 0.0 }
0x16c3   :  { %v4134_v15 = vsel %vm989_vm15, %v5564_v19, 0.0  ;;  %v5566_v17 = vpop.eup %5565 }
0x16c4   :  { %4135 = vadd.xlane.f32.xlu1 %v4134_v15  ;;  %v3970_v62 = vmul.f32 %v5566_v17, %v7128_v8  ;;  %v5568_v16 = vpop.eup %5567 }
0x16c5   :  { %v3971_v46 = vmul.f32 %v5568_v16, %v7134_v23 }
0x16c9   :  { %5124 = vmatmul.msk.f32.gmra.mxu0 %vm989_vm15, %v3970_v62 }
0x16cc   :  { %4247 = vadd.xlane.f32.xlu1 %v4246_v61 }
0x16d1   :  { %5125 = vmatmul.msk.f32.gmra.mxu0 %vm989_vm15, %v3971_v46 }
0x16d4   :  { %4250 = vadd.xlane.f32.xlu1 %v4249_v34 }
0x16ed   :  { %v3804_v8 = vpop.f32.mrf.mxu0 }
0x16ee   :  { %5111 = vmatmul.msk.f32.vlgmr.msrb.gmra.mxu2 %vm944_vm12, %v3804_v8 }
0x16f5   :  { %v3807_v35 = vpop.f32.mrf.mxu0 }
0x16f6   :  { %5112 = vmatmul.msk.f32.gmra.mxu2 %vm944_vm12, %v3807_v35 }
0x16f8   :  { %v4130_v43 = vpop.xlane.xlu2 %4129 }
0x16f9   :  { %5569 = vrcp.f32 %v4130_v43 }
0x16fd   :  { %v3810_v38 = vpop.f32.mrf.mxu0 }
0x16fe   :  { %5113 = vmatmul.msk.f32.gmra.mxu2 %vm944_vm12, %v3810_v38 }
0x16ff   :  { %v5570_v23 = vpop.eup %5569 }
0x1700   :  { %v4140_v12 = vmul.f32 %v5570_v23, %v7145_v51  ;;  %v4133_v32 = vpop.xlane.xlu2 %4132  ;;  %v5146_v23 = vld [vmem:[%s6437_s20 + $0x30] sm:$0xff] }
0x1701   :  { %5571 = vrcp.f32 %v4133_v32  ;;  %v5145_v32 = vld [vmem:[%s6437_s20 + $0x28] sm:$0xff] }
0x1702   :  { %5135 = vmatmul.msk.f32.vlgmr.msrb.gmra.mxu3 %vm989_vm15, %v4140_v12 }
0x1707   :  { %v5572_v28 = vpop.eup %5571 }
0x1708   :  { %v4254_v53 = vpop.xlane.xlu2 %4253  ;;  %v4141_v55 = vmul.f32 %v5572_v28, %v5560_v4 }
0x1709   :  { %v4266_v14 = vmul.f32 %v4254_v53, %v6403_v52  ;;  %v5144_v53 = vld [vmem:[%s6437_s20 + $0x20] sm:$0xff] }
0x170a   :  { %5136 = vmatmul.msk.f32.gmra.mxu3 %vm989_vm15, %v4141_v55 }
0x170b   :  { %v7188_v54 = vsub.f32 %v4238_v1, %v4266_v14 }
0x170d   :  { %v4278_v40 = vmul.f32 %v7188_v54, %v7188_v54 }
0x170f   :  { %v4288_v3 = vsel %vm635_vm7, %v4278_v40, 0.0 }
0x1710   :  { %4289 = vadd.xlane.f32.xlu0 %v4288_v3 }
0x1737   :  { %v4136_v27 = vpop.xlane.xlu1 %4135 }
0x1738   :  { %5573 = vrcp.f32 %v4136_v27 }
0x173e   :  { %v5574_v24 = vpop.eup %5573  ;;  %v4007_v11 = vpop.f32.mrf.mxu0 }
0x173f   :  { %5126 = vmatmul.msk.f32.vlgmr.msra.gmra.mxu2 %vm944_vm12, %v4007_v11  ;;  %v4142_v31 = vmul.f32 %v5574_v24, %v5564_v19  ;;  %v4248_v49 = vpop.xlane.xlu1 %4247 }
0x1740   :  { %v4264_v60 = vmul.f32 %v4248_v49, %v6403_v52 }
0x1741   :  { %5137 = vmatmul.msk.f32.gmra.mxu3 %vm989_vm15, %v4142_v31 }
0x1742   :  { %v4270_v6 = vsub.f32 %v7167_v22, %v4264_v60 }
0x1746   :  { %v4010_v63 = vpop.f32.mrf.mxu0 }
0x1747   :  { %5127 = vmatmul.msk.f32.gmra.mxu2 %vm944_vm12, %v4010_v63  ;;  %v4251_v17 = vpop.xlane.xlu1 %4250 }
0x1748   :  { %v4265_v61 = vmul.f32 %v4251_v17, %v6403_v52 }
0x174a   :  { %v7216_v16 = vsub.f32 %v7176_v37, %v4265_v61  ;;  %v5147_v37 = vld [vmem:[%s6437_s20 + $0x38] sm:$0xff] }
0x174b   :  { %4436 = vmatpush.msrb.mxu2 %v5147_v37 }
0x174d   :  { %4437 = vmatpush.msrb.mxu2 %v5146_v23 }
0x174e   :  { %v4013_v51 = vpop.f32.mrf.mxu0 }
0x174f   :  { %5128 = vmatmul.msk.f32.gmra.mxu2 %vm944_vm12, %v4013_v51 }
0x1750   :  { %4438 = vmatpush.msrb.mxu2 %v5145_v32  ;;  %v5158_v32 = vld [vmem:[%s6470_s10 + $0x58] sm:$0xff] }
0x1752   :  { %4439 = vmatpush.msrb.mxu2 %v5144_v53 }
0x1771   :  { %v3839_v36 = vpop.f32.mrf.mxu2 }
0x1772   :  { %v3875_v59 = vadd.f32 %v7080_v57, %v3839_v36 }
0x1779   :  { %v3842_v10 = vpop.f32.mrf.mxu2 }
0x177a   :  { %v3878_v1 = vadd.f32 %v7082_v9, %v3842_v10  ;;  %v4276_v9 = vmul.f32 %v4270_v6, %v4270_v6  ;;  %v7243_v10 = vld [vmem:[%s6401_s16 + $0x1] ss:$0 sm:$0xff] }
0x1781   :  { %v3845_v0 = vpop.f32.mrf.mxu2 }
0x1782   :  { %v3881_v48 = vadd.f32 %v7086_v47, %v3845_v0  ;;  %v4277_v47 = vmul.f32 %v7216_v16, %v7216_v16 }
0x1784   :  { %v4285_v34 = vsel %vm635_vm7, %v4277_v47, 0.0 }
0x1785   :  { %v4178_v25 = vpop.f32.mrf.mxu3 }
0x1786   :  { %5138 = vmatmul.msk.f32.vlgmr.msrb.gmra.mxu0 %vm944_vm12, %v4178_v25 }
0x178d   :  { %v4181_v18 = vpop.f32.mrf.mxu3 }
0x178e   :  { %5139 = vmatmul.msk.f32.gmra.mxu0 %vm944_vm12, %v4181_v18 }
0x17c2   :  { %v4042_v41 = vpop.f32.mrf.mxu2 }
0x17c3   :  { %v4051_v4 = vadd.f32 %v4042_v41, %v3875_v59  ;;  %v4290_v59 = vpop.xlane.xlu0 %4289 }
0x17c4   :  { %v4184_v50 = vpop.f32.mrf.mxu3 }
0x17c5   :  { %5140 = vmatmul.msk.f32.gmra.mxu0 %vm944_vm12, %v4184_v50  ;;  %v7240_v50 = vld [vmem:[%s6395_s12 + $0x1] ss:$0 sm:$0xff]  ;;  %s5642_s12 = smov 33  }
0x17ca   :  { %v4045_v2 = vpop.f32.mrf.mxu2 }
0x17cb   :  { %v4052_v5 = vadd.f32 %v4045_v2, %v3878_v1 }
0x17d2   :  { %v4048_v58 = vpop.f32.mrf.mxu2 }
0x17d3   :  { %v4053_v15 = vadd.f32 %v4048_v58, %v3881_v48 }
0x1803   :  { %v4213_v45 = vpop.f32.mrf.mxu0 }
0x1804   :  { %v4222_v13 = vadd.f32 %v4213_v45, %v4051_v4  ;;  %v4302_v4 = vmul.f32 %v4290_v59, %v6403_v52 }
0x1806   :  { %v4233_v7 = vadd.f32 %v7153_v20, %v4222_v13  ;;  %v4308_v45 = vadd.f32 1e-05, %v4302_v4 }
0x1808   :  { %v4239_v33 = vadd.f32 %v4233_v7, %v6729_v29  ;;  %v4282_v29 = vsel %vm635_vm7, %v4276_v9, 0.0  ;;  %vm4338_vm6 = vweird.f32 %v4308_v45 }
0x180a   :  { %v4255_v30 = vsel %vm635_vm7, %v4239_v33, 0.0 }
0x180b   :  { %v4216_v44 = vpop.f32.mrf.mxu0  ;;  %4256 = vadd.xlane.f32.xlu1 %v4255_v30 }
0x180c   :  { %v4223_v42 = vadd.f32 %v4216_v44, %v4052_v5 }
0x180e   :  { %v4234_v57 = vadd.f32 %v7153_v20, %v4223_v42 }
0x1810   :  { %v4240_v39 = vadd.f32 %v4234_v57, %v6750_v21 }
0x1812   :  { %v4258_v19 = vsel %vm635_vm7, %v4240_v39, 0.0 }
0x1813   :  { %4259 = vadd.xlane.f32.xlu2 %v4258_v19 }
0x181b   :  { %4283 = vadd.xlane.f32.xlu2 %v4282_v29 }
0x1842   :  { %v4219_v62 = vpop.f32.mrf.mxu0 }
0x1843   :  { %v4224_v56 = vadd.f32 %v4219_v62, %v4053_v15 }
0x1845   :  { %v4235_v21 = vadd.f32 %v7153_v20, %v4224_v56 }
0x1847   :  { %v4241_v22 = vadd.f32 %v4235_v21, %v6771_v26 }
0x1849   :  { %v4261_v46 = vsel %vm635_vm7, %v4241_v22, 0.0 }
0x184a   :  { %4262 = vadd.xlane.f32.xlu1 %v4261_v46 }
0x1852   :  { %4286 = vadd.xlane.f32.xlu1 %v4285_v34 }
0x187e   :  { %v4257_v8 = vpop.xlane.xlu1 %4256 }
0x187f   :  { %v4267_v20 = vmul.f32 %v4257_v8, %v6403_v52  ;;  %v5162_v8 = vld [vmem:[%s6470_s10 + $0x78] sm:$0xff] }
0x1880   :  { %4505 = vmatpush.msra.mxu1 %v5162_v8  ;;  %v5336_v8 = vld [vmem:[%s6505_s15 + $0x1] ss:$0 sm:$0xff] }
0x1881   :  { %v7223_v35 = vsub.f32 %v4239_v33, %v4267_v20  ;;  %v5161_v20 = vld [vmem:[%s6470_s10 + $0x70] sm:$0xff] }
0x1882   :  { %4506 = vmatpush.msra.mxu1 %v5161_v20 }
0x1883   :  { %v4279_v26 = vmul.f32 %v7223_v35, %v7223_v35 }
0x1885   :  { %v4291_v43 = vsel %vm635_vm7, %v4279_v26, 0.0  ;;  %v5160_v26 = vld [vmem:[%s6470_s10 + $0x68] sm:$0xff] }
0x1886   :  { %v4260_v38 = vpop.xlane.xlu2 %4259  ;;  %4292 = vadd.xlane.f32.xlu2 %v4291_v43  ;;  %4507 = vmatpush.msra.mxu1 %v5160_v26 }
0x1887   :  { %v4268_v12 = vmul.f32 %v4260_v38, %v6403_v52  ;;  %v5159_v38 = vld [vmem:[%s6470_s10 + $0x60] sm:$0xff] }
0x1888   :  { %4508 = vmatpush.msra.mxu1 %v5159_v38 }
0x1889   :  { %v7232_v28 = vsub.f32 %v4240_v39, %v4268_v12 }
0x188a   :  { %4509 = vmatpush.msra.mxu1 %v5158_v32 }
0x188b   :  { %v4280_v55 = vmul.f32 %v7232_v28, %v7232_v28 }
0x188d   :  { %v4294_v14 = vsel %vm635_vm7, %v4280_v55, 0.0 }
0x188e   :  { %v4284_v40 = vpop.xlane.xlu2 %4283  ;;  %4295 = vadd.xlane.f32.xlu1 %v4294_v14 }
0x188f   :  { %v4300_v3 = vmul.f32 %v4284_v40, %v6403_v52 }
0x1891   :  { %v4306_v27 = vadd.f32 1e-05, %v4300_v3 }
0x1893   :  { %5575 = vrsqrt.f32 %v4306_v27  ;;  %vm4318_vm15 = vweird.f32 %v4306_v27 }
0x1894   :  { %5577 = vrsqrt.f32 %v4308_v45 }
0x1899   :  { %v5576_v24 = vpop.eup %5575 }
0x189a   :  { %v4313_v11 = vmul.f32 %v5576_v24, %v4306_v27  ;;  %vm4319_vm12 = vweird.f32 %v5576_v24  ;;  %v5578_v30 = vpop.eup %5577 }
0x189b   :  { %vm4320_vm1 = vmor %vm4318_vm15, %vm4319_vm12  ;;  %v4333_v42 = vmul.f32 %v5578_v30, %v4308_v45  ;;  %vm4339_vm3 = vweird.f32 %v5578_v30 }
0x189c   :  { %v4314_v31 = vmul.f32 %v5576_v24, %v4313_v11  ;;  %vm4340_vm8 = vmor %vm4338_vm6, %vm4339_vm3  ;;  %v5157_v11 = vld [vmem:[%s6470_s10 + $0x50] sm:$0xff] }
0x189d   :  { %v4334_v60 = vmul.f32 %v5578_v30, %v4333_v42  ;;  %4510 = vmatpush.msra.mxu1 %v5157_v11 }
0x189e   :  { %v4315_v63 = vmul.f32 0.5, %v4314_v31 }
0x189f   :  { %v4335_v39 = vmul.f32 0.5, %v4334_v60 }
0x18a0   :  { %v4316_v51 = vsub.f32 1.5, %v4315_v63 }
0x18a1   :  { %v4336_v9 = vsub.f32 1.5, %v4335_v39 }
0x18a2   :  { %v4317_v25 = vmul.f32 %v5576_v24, %v4316_v51 }
0x18a3   :  { %v4337_v48 = vmul.f32 %v5578_v30, %v4336_v9 }
0x18a4   :  { %v4321_v18 = vsel %vm4320_vm1, %v5576_v24, %v4317_v25  ;;  %v5156_v25 = vld [vmem:[%s6470_s10 + $0x48] sm:$0xff] }
0x18a5   :  { %v4372_v36 = vmul.f32 %v4321_v18, %v4270_v6  ;;  %v4341_v56 = vsel %vm4340_vm8, %v5578_v30, %v4337_v48  ;;  %4511 = vmatpush.msra.mxu1 %v5156_v25 }
0x18a6   :  { %v4374_v21 = vmul.f32 %v4341_v56, %v7188_v54 }
0x18a7   :  { %v4381_v0 = vmul.f32 %v7240_v50, %v4372_v36  ;;  %v5155_v36 = vld [vmem:[%s6470_s10 + $0x40] sm:$0xff] }
0x18a8   :  { %v4383_v46 = vmul.f32 %v7240_v50, %v4374_v21  ;;  %4512 = vmatpush.msra.mxu1 %v5155_v36 }
0x18a9   :  { %v7247_v41 = vadd.f32 %v7243_v10, %v4381_v0 }
0x18aa   :  { %v7269_v47 = vadd.f32 %v7243_v10, %v4383_v46 }
0x18ab   :  { %5149 = vmatmul.msk.f32.vlgmr.msrb.gmra.mxu2 %vm635_vm7, %v7247_v41 }
0x18bd   :  { %v4263_v13 = vpop.xlane.xlu1 %4262 }
0x18be   :  { %v4269_v7 = vmul.f32 %v4263_v13, %v6403_v52 }
0x18c0   :  { %v7253_v2 = vsub.f32 %v4241_v22, %v4269_v7 }
0x18c2   :  { %v4281_v1 = vmul.f32 %v7253_v2, %v7253_v2 }
0x18c4   :  { %v4297_v33 = vsel %vm635_vm7, %v4281_v1, 0.0 }
0x18c5   :  { %4298 = vadd.xlane.f32.xlu0 %v4297_v33  ;;  %v4287_v5 = vpop.xlane.xlu1 %4286  ;;  %v5335_v33 = vld [vmem:[%s6448_s4 + $0x1] ss:$0 sm:$0xff]  ;;  %s4859_s4 = sld [smem:[%s7422_s0 + %s5642_s12]]  }
0x18c6   :  { %v4301_v49 = vmul.f32 %v4287_v5, %v6403_v52 }
0x18c8   :  { %v4307_v44 = vadd.f32 1e-05, %v4301_v49 }
0x18ca   :  { %5579 = vrsqrt.f32 %v4307_v44  ;;  %vm4328_vm4 = vweird.f32 %v4307_v44 }
0x18d0   :  { %v5580_v57 = vpop.eup %5579 }
0x18d1   :  { %v4323_v6 = vmul.f32 %v5580_v57, %v4307_v44  ;;  %vm4329_vm2 = vweird.f32 %v5580_v57 }
0x18d2   :  { %vm4330_vm5 = vmor %vm4328_vm4, %vm4329_vm2 }
0x18d3   :  { %v4324_v19 = vmul.f32 %v5580_v57, %v4323_v6 }
0x18d5   :  { %v4325_v29 = vmul.f32 0.5, %v4324_v19 }
0x18d7   :  { %v4326_v58 = vsub.f32 1.5, %v4325_v29 }
0x18d9   :  { %v4327_v15 = vmul.f32 %v5580_v57, %v4326_v58 }
0x18db   :  { %v4331_v17 = vsel %vm4330_vm5, %v5580_v57, %v4327_v15 }
0x18dc   :  { %v4373_v62 = vmul.f32 %v4331_v17, %v7216_v16 }
0x18de   :  { %v4382_v61 = vmul.f32 %v7240_v50, %v4373_v62 }
0x18e0   :  { %v7263_v22 = vadd.f32 %v7243_v10, %v4382_v61 }
0x18e2   :  { %5150 = vmatmul.msk.f32.gmra.mxu2 %vm635_vm7, %v7263_v22 }
0x18ea   :  { %5151 = vmatmul.msk.f32.gmra.mxu2 %vm635_vm7, %v7269_v47 }
0x18f9   :  { %v4293_v16 = vpop.xlane.xlu2 %4292 }
0x18fa   :  { %v4303_v34 = vmul.f32 %v4293_v16, %v6403_v52 }
0x18fc   :  { %v4309_v54 = vadd.f32 1e-05, %v4303_v34 }
0x18fe   :  { %5581 = vrsqrt.f32 %v4309_v54  ;;  %vm4348_vm10 = vweird.f32 %v4309_v54 }
0x1901   :  { %v4296_v37 = vpop.xlane.xlu1 %4295 }
0x1902   :  { %v4304_v43 = vmul.f32 %v4296_v37, %v6403_v52 }
0x1904   :  { %v5582_v23 = vpop.eup %5581  ;;  %v4310_v12 = vadd.f32 1e-05, %v4304_v43 }
0x1905   :  { %v4343_v53 = vmul.f32 %v5582_v23, %v4309_v54  ;;  %vm4349_vm9 = vweird.f32 %v5582_v23 }
0x1906   :  { %5583 = vrsqrt.f32 %v4310_v12  ;;  %vm4350_vm13 = vmor %vm4348_vm10, %vm4349_vm9  ;;  %vm4358_vm0 = vweird.f32 %v4310_v12 }
0x1907   :  { %v4344_v55 = vmul.f32 %v5582_v23, %v4343_v53 }
0x1909   :  { %v4345_v14 = vmul.f32 0.5, %v4344_v55 }
0x190b   :  { %v4346_v40 = vsub.f32 1.5, %v4345_v14 }
0x190c   :  { %v5584_v3 = vpop.eup %5583 }
0x190d   :  { %v4347_v27 = vmul.f32 %v5582_v23, %v4346_v40  ;;  %v4353_v24 = vmul.f32 %v5584_v3, %v4310_v12  ;;  %vm4359_vm14 = vweird.f32 %v5584_v3 }
0x190e   :  { %vm4360_vm12 = vmor %vm4358_vm0, %vm4359_vm14 }
0x190f   :  { %v4351_v31 = vsel %vm4350_vm13, %v5582_v23, %v4347_v27  ;;  %v4354_v63 = vmul.f32 %v5584_v3, %v4353_v24 }
0x1910   :  { %v4375_v51 = vmul.f32 %v4351_v31, %v7223_v35 }
0x1911   :  { %v4355_v18 = vmul.f32 0.5, %v4354_v63 }
0x1912   :  { %v4384_v0 = vmul.f32 %v7240_v50, %v4375_v51 }
0x1913   :  { %v4356_v59 = vsub.f32 1.5, %v4355_v18 }
0x1914   :  { %v7286_v4 = vadd.f32 %v7243_v10, %v4384_v0 }
0x1915   :  { %v4357_v45 = vmul.f32 %v5584_v3, %v4356_v59 }
0x1916   :  { %5152 = vmatmul.msk.f32.gmra.mxu2 %vm635_vm7, %v7286_v4 }
0x1917   :  { %v4361_v35 = vsel %vm4360_vm12, %v5584_v3, %v4357_v45 }
0x1918   :  { %v4376_v13 = vmul.f32 %v4361_v35, %v7232_v28 }
0x191a   :  { %v4385_v7 = vmul.f32 %v7240_v50, %v4376_v13 }
0x191c   :  { %v7293_v1 = vadd.f32 %v7243_v10, %v4385_v7 }
0x191e   :  { %5153 = vmatmul.msk.f32.gmra.mxu2 %vm635_vm7, %v7293_v1 }
0x192e   :  { %v4441_v5 = vpop.f32.mrf.mxu2 }
0x192f   :  { %v4442_v30 = vadd.f32 %v5335_v33, %v4441_v5 }
0x1931   :  { %v4459_v49 = vmax.f32 %v4442_v30, 0.0 }
0x1933   :  { %5164 = vmatmul.msk.f32.vlgmr.msra.gmra.mxu1 %vm2529_vm11, %v4459_v49 }
0x1938   :  { %v4299_v44 = vpop.xlane.xlu0 %4298 }
0x1939   :  { %v4305_v42 = vmul.f32 %v4299_v44, %v6403_v52 }
0x193b   :  { %v4311_v60 = vadd.f32 1e-05, %v4305_v42 }
0x193d   :  { %5585 = vrsqrt.f32 %v4311_v60  ;;  %vm4368_vm1 = vweird.f32 %v4311_v60 }
0x1943   :  { %v5586_v28 = vpop.eup %5585 }
0x1944   :  { %v4363_v57 = vmul.f32 %v5586_v28, %v4311_v60  ;;  %vm4369_vm15 = vweird.f32 %v5586_v28 }
0x1945   :  { %vm4370_vm2 = vmor %vm4368_vm1, %vm4369_vm15 }
0x1946   :  { %v4364_v39 = vmul.f32 %v5586_v28, %v4363_v57 }
0x1948   :  { %v4365_v6 = vmul.f32 0.5, %v4364_v39 }
0x194a   :  { %v4366_v19 = vsub.f32 1.5, %v4365_v6 }
0x194c   :  { %v4367_v9 = vmul.f32 %v5586_v28, %v4366_v19 }
0x194e   :  { %v4371_v29 = vsel %vm4370_vm2, %v5586_v28, %v4367_v9 }
0x194f   :  { %v4377_v58 = vmul.f32 %v4371_v29, %v7253_v2  ;;  %v4695_v29 = vld [vmem:[%s4856_s23 + $0x18] sm:$0xff] }
0x1950   :  { %4730 = vmatpush.msra.mxu3 %v4695_v29 }
0x1951   :  { %v4386_v48 = vmul.f32 %v7240_v50, %v4377_v58 }
0x1953   :  { %v4395_v15 = vadd.f32 %v7243_v10, %v4386_v48 }
0x1955   :  { %5154 = vmatmul.msk.f32.gmra.mxu2 %vm635_vm7, %v4395_v15 }
0x1965   :  { %v4444_v17 = vpop.f32.mrf.mxu2 }
0x1966   :  { %v4445_v62 = vadd.f32 %v5335_v33, %v4444_v17 }
0x1968   :  { %v4460_v56 = vmax.f32 %v4445_v62, 0.0  ;;  %v4693_v62 = vld [vmem:[%s4856_s23 + $0x8] sm:$0xff] }
0x196a   :  { %5165 = vmatmul.msk.f32.gmra.mxu1 %vm2529_vm11, %v4460_v56 }
0x196d   :  { %v4447_v61 = vpop.f32.mrf.mxu2 }
0x196e   :  { %v4448_v21 = vadd.f32 %v5335_v33, %v4447_v61  ;;  %v4692_v61 = vld [vmem:[%s4856_s23] sm:$0xff] }
0x1970   :  { %v4461_v46 = vmax.f32 %v4448_v21, 0.0 }
0x1972   :  { %5166 = vmatmul.msk.f32.gmra.mxu1 %vm2529_vm11, %v4461_v46 }
0x1999   :  { %v4450_v16 = vpop.f32.mrf.mxu2 }
0x199a   :  { %v4451_v34 = vadd.f32 %v5335_v33, %v4450_v16 }
0x199c   :  { %v4462_v2 = vmax.f32 %v4451_v34, 0.0 }
0x199e   :  { %5167 = vmatmul.msk.f32.gmra.mxu1 %vm2529_vm11, %v4462_v2 }
0x19a1   :  { %v4453_v50 = vpop.f32.mrf.mxu2 }
0x19a2   :  { %v4454_v10 = vadd.f32 %v5335_v33, %v4453_v50 }
0x19a4   :  { %v4463_v54 = vmax.f32 %v4454_v10, 0.0 }
0x19a6   :  { %5168 = vmatmul.msk.f32.gmra.mxu1 %vm2529_vm11, %v4463_v54 }
0x19b0   :  { %v4514_v20 = vpop.f32.mrf.mxu1 }
0x19b1   :  { %v4515_v26 = vadd.f32 %v5336_v8, %v4514_v20 }
0x19b3   :  { %v4532_v37 = vadd.f32 %v4515_v26, %v7247_v41 }
0x19b5   :  { %v4542_v43 = vsel %vm635_vm7, %v4532_v37, 0.0 }
0x19b6   :  { %4543 = vadd.xlane.f32.xlu2 %v4542_v43 }
0x19d8   :  { %v4456_v38 = vpop.f32.mrf.mxu2 }
0x19d9   :  { %v4457_v23 = vadd.f32 %v5335_v33, %v4456_v38  ;;  %v7360_v38 = vld [vmem:[%s6565_s6 + $0x1] ss:$0 sm:$0xff] }
0x19db   :  { %v4464_v12 = vmax.f32 %v4457_v23, 0.0 }
0x19dd   :  { %5169 = vmatmul.msk.f32.gmra.mxu1 %vm2529_vm11, %v4464_v12 }
0x19e7   :  { %v4517_v32 = vpop.f32.mrf.mxu1 }
0x19e8   :  { %v4518_v53 = vadd.f32 %v5336_v8, %v4517_v32 }
0x19ea   :  { %v4533_v55 = vadd.f32 %v4518_v53, %v7263_v22 }
0x19ec   :  { %v4545_v14 = vsel %vm635_vm7, %v4533_v55, 0.0 }
0x19ed   :  { %4546 = vadd.xlane.f32.xlu1 %v4545_v14 }
0x19ef   :  { %v4520_v40 = vpop.f32.mrf.mxu1 }
0x19f0   :  { %v4521_v3 = vadd.f32 %v5336_v8, %v4520_v40 }
0x19f2   :  { %v4534_v27 = vadd.f32 %v4521_v3, %v7269_v47 }
0x19f4   :  { %v4548_v41 = vsel %vm635_vm7, %v4534_v27, 0.0 }
0x19f5   :  { %4549 = vadd.xlane.f32.xlu0 %v4548_v41 }
0x1a1b   :  { %v4523_v24 = vpop.f32.mrf.mxu1 }
0x1a1c   :  { %v4524_v11 = vadd.f32 %v5336_v8, %v4523_v24 }
0x1a1e   :  { %v4535_v31 = vadd.f32 %v4524_v11, %v7286_v4 }
0x1a20   :  { %v4551_v63 = vsel %vm635_vm7, %v4535_v31, 0.0 }
0x1a21   :  { %4552 = vadd.xlane.f32.xlu2 %v4551_v63 }
0x1a23   :  { %v4526_v51 = vpop.f32.mrf.mxu1 }
0x1a24   :  { %v4527_v25 = vadd.f32 %v5336_v8, %v4526_v51 }
0x1a26   :  { %v4536_v22 = vadd.f32 %v4527_v25, %v7293_v1 }
0x1a28   :  { %v4554_v18 = vsel %vm635_vm7, %v4536_v22, 0.0 }
0x1a29   :  { %v4544_v36 = vpop.xlane.xlu2 %4543  ;;  %4555 = vadd.xlane.f32.xlu1 %v4554_v18 }
0x1a2a   :  { %v4560_v47 = vmul.f32 %v4544_v36, %v6403_v52 }
0x1a2c   :  { %v4566_v0 = vsub.f32 %v4532_v37, %v4560_v47  ;;  %v7357_v37 = vld [vmem:[%s6559_s30 + $0x1] ss:$0 sm:$0xff] }
0x1a2e   :  { %v4572_v59 = vmul.f32 %v4566_v0, %v4566_v0 }
0x1a30   :  { %v4578_v45 = vsel %vm635_vm7, %v4572_v59, 0.0 }
0x1a31   :  { %4579 = vadd.xlane.f32.xlu2 %v4578_v45 }
0x1a5a   :  { %v4529_v35 = vpop.f32.mrf.mxu1 }
0x1a5b   :  { %v4530_v4 = vadd.f32 %v5336_v8, %v4529_v35 }
0x1a5d   :  { %v4537_v13 = vadd.f32 %v4530_v4, %v4395_v15  ;;  %v4694_v15 = vld [vmem:[%s4856_s23 + $0x10] sm:$0xff] }
0x1a5e   :  { %4731 = vmatpush.msra.mxu3 %v4694_v15 }
0x1a5f   :  { %v4557_v7 = vsel %vm635_vm7, %v4537_v13, 0.0 }
0x1a60   :  { %4558 = vadd.xlane.f32.xlu0 %v4557_v7  ;;  %v4547_v33 = vpop.xlane.xlu1 %4546  ;;  %4732 = vmatpush.msra.mxu3 %v4693_v62  ;;  %v4762_v62 = vld [vmem:[%s7384_s7 + $0x18] sm:$0xff] }
0x1a61   :  { %v4561_v1 = vmul.f32 %v4547_v33, %v6403_v52 }
0x1a62   :  { %4733 = vmatpush.msra.mxu3 %v4692_v61 }
0x1a63   :  { %v7324_v5 = vsub.f32 %v4533_v55, %v4561_v1 }
0x1a65   :  { %v4573_v30 = vmul.f32 %v7324_v5, %v7324_v5 }
0x1a67   :  { %v4581_v49 = vsel %vm635_vm7, %v4573_v30, 0.0 }
0x1a68   :  { %v4550_v44 = vpop.xlane.xlu0 %4549  ;;  %4582 = vadd.xlane.f32.xlu1 %v4581_v49 }
0x1a69   :  { %v4562_v42 = vmul.f32 %v4550_v44, %v6403_v52 }
0x1a6b   :  { %v7330_v60 = vsub.f32 %v4534_v27, %v4562_v42 }
0x1a6d   :  { %v4574_v28 = vmul.f32 %v7330_v60, %v7330_v60 }
0x1a6f   :  { %v4584_v57 = vsel %vm635_vm7, %v4574_v28, 0.0 }
0x1a70   :  { %4585 = vadd.xlane.f32.xlu0 %v4584_v57 }
0x1a94   :  { %v4553_v39 = vpop.xlane.xlu2 %4552 }
0x1a95   :  { %v4563_v6 = vmul.f32 %v4553_v39, %v6403_v52  ;;  %v4766_v39 = vld [vmem:[%s7384_s7 + $0x38] sm:$0xff] }
0x1a96   :  { %4797 = vmatpush.msra.mxu0 %v4766_v39 }
0x1a97   :  { %v7339_v19 = vsub.f32 %v4535_v31, %v4563_v6  ;;  %v4765_v6 = vld [vmem:[%s7384_s7 + $0x30] sm:$0xff] }
0x1a98   :  { %4798 = vmatpush.msra.mxu0 %v4765_v6  ;;  %v5340_v6 = vld [vmem:[%s4859_s4] ss:$0 sm:$0xff] }
0x1a99   :  { %v4575_v9 = vmul.f32 %v7339_v19, %v7339_v19 }
0x1a9b   :  { %v4587_v58 = vsel %vm635_vm7, %v4575_v9, 0.0  ;;  %v4764_v9 = vld [vmem:[%s7384_s7 + $0x28] sm:$0xff] }
0x1a9c   :  { %4588 = vadd.xlane.f32.xlu2 %v4587_v58  ;;  %v4556_v48 = vpop.xlane.xlu1 %4555  ;;  %4799 = vmatpush.msra.mxu0 %v4764_v9 }
0x1a9d   :  { %v4564_v17 = vmul.f32 %v4556_v48, %v6403_v52  ;;  %v4763_v48 = vld [vmem:[%s7384_s7 + $0x20] sm:$0xff] }
0x1a9e   :  { %4800 = vmatpush.msra.mxu0 %v4763_v48 }
0x1a9f   :  { %v7345_v56 = vsub.f32 %v4536_v22, %v4564_v17 }
0x1aa0   :  { %4801 = vmatpush.msra.mxu0 %v4762_v62 }
0x1aa1   :  { %v4576_v21 = vmul.f32 %v7345_v56, %v7345_v56 }
0x1aa3   :  { %v4590_v46 = vsel %vm635_vm7, %v4576_v21, 0.0 }
0x1aa4   :  { %v4580_v16 = vpop.xlane.xlu2 %4579  ;;  %4591 = vadd.xlane.f32.xlu1 %v4590_v46 }
0x1aa5   :  { %v4596_v34 = vmul.f32 %v4580_v16, %v6403_v52 }
0x1aa7   :  { %v4602_v2 = vadd.f32 1e-05, %v4596_v34 }
0x1aa9   :  { %5587 = vrsqrt.f32 %v4602_v2  ;;  %vm4614_vm4 = vweird.f32 %v4602_v2 }
0x1aaf   :  { %v5588_v50 = vpop.eup %5587 }
0x1ab0   :  { %v4609_v10 = vmul.f32 %v5588_v50, %v4602_v2  ;;  %vm4615_vm3 = vweird.f32 %v5588_v50 }
0x1ab1   :  { %vm4616_vm5 = vmor %vm4614_vm4, %vm4615_vm3 }
0x1ab2   :  { %v4610_v54 = vmul.f32 %v5588_v50, %v4609_v10  ;;  %v4761_v10 = vld [vmem:[%s7384_s7 + $0x10] sm:$0xff] }
0x1ab3   :  { %4802 = vmatpush.msra.mxu0 %v4761_v10 }
0x1ab4   :  { %v4611_v8 = vmul.f32 0.5, %v4610_v54 }
0x1ab6   :  { %v4612_v20 = vsub.f32 1.5, %v4611_v8 }
0x1ab8   :  { %v4613_v26 = vmul.f32 %v5588_v50, %v4612_v20 }
0x1aba   :  { %v4617_v43 = vsel %vm4616_vm5, %v5588_v50, %v4613_v26  ;;  %v4760_v26 = vld [vmem:[%s7384_s7 + $0x8] sm:$0xff] }
0x1abb   :  { %v4668_v23 = vmul.f32 %v4617_v43, %v4566_v0  ;;  %4803 = vmatpush.msra.mxu0 %v4760_v26 }
0x1abd   :  { %v4677_v12 = vmul.f32 %v7357_v37, %v4668_v23  ;;  %v4759_v23 = vld [vmem:[%s7384_s7] sm:$0xff] }
0x1abe   :  { %4804 = vmatpush.msra.mxu0 %v4759_v23 }
0x1abf   :  { %v4686_v32 = vadd.f32 %v7360_v38, %v4677_v12 }
0x1ac1   :  { %5172 = vmatmul.msk.f32.vlgmr.msra.gmra.mxu3 %vm635_vm7, %v4686_v32 }
0x1ad3   :  { %v4559_v53 = vpop.xlane.xlu0 %4558 }
0x1ad4   :  { %v4565_v55 = vmul.f32 %v4559_v53, %v6403_v52 }
0x1ad6   :  { %v7366_v14 = vsub.f32 %v4537_v13, %v4565_v55 }
0x1ad8   :  { %v4577_v40 = vmul.f32 %v7366_v14, %v7366_v14 }
0x1ada   :  { %v4593_v3 = vsel %vm635_vm7, %v4577_v40, 0.0 }
0x1adb   :  { %4594 = vadd.xlane.f32.xlu0 %v4593_v3  ;;  %v4583_v27 = vpop.xlane.xlu1 %4582 }
0x1adc   :  { %v4597_v41 = vmul.f32 %v4583_v27, %v6403_v52 }
0x1ade   :  { %v4603_v24 = vadd.f32 1e-05, %v4597_v41  ;;  %v5339_v41 = vld [vmem:[%s7354_s27] ss:$0 sm:$0xff] }
0x1ae0   :  { %5589 = vrsqrt.f32 %v4603_v24  ;;  %vm4624_vm8 = vweird.f32 %v4603_v24 }
0x1ae3   :  { %v4586_v11 = vpop.xlane.xlu0 %4585 }
0x1ae4   :  { %v4598_v31 = vmul.f32 %v4586_v11, %v6403_v52 }
0x1ae6   :  { %v5590_v63 = vpop.eup %5589  ;;  %v4604_v51 = vadd.f32 1e-05, %v4598_v31 }
0x1ae7   :  { %v4619_v25 = vmul.f32 %v5590_v63, %v4603_v24  ;;  %vm4625_vm6 = vweird.f32 %v5590_v63 }
0x1ae8   :  { %5591 = vrsqrt.f32 %v4604_v51  ;;  %vm4626_vm9 = vmor %vm4624_vm8, %vm4625_vm6  ;;  %vm4634_vm13 = vweird.f32 %v4604_v51 }
0x1ae9   :  { %v4620_v22 = vmul.f32 %v5590_v63, %v4619_v25 }
0x1aeb   :  { %v4621_v18 = vmul.f32 0.5, %v4620_v22 }
0x1aed   :  { %v4622_v36 = vsub.f32 1.5, %v4621_v18 }
0x1aee   :  { %v5592_v47 = vpop.eup %5591 }
0x1aef   :  { %v4623_v0 = vmul.f32 %v5590_v63, %v4622_v36  ;;  %v4629_v59 = vmul.f32 %v5592_v47, %v4604_v51  ;;  %vm4635_vm10 = vweird.f32 %v5592_v47 }
0x1af0   :  { %vm4636_vm14 = vmor %vm4634_vm13, %vm4635_vm10 }
0x1af1   :  { %v4627_v45 = vsel %vm4626_vm9, %v5590_v63, %v4623_v0  ;;  %v4630_v35 = vmul.f32 %v5592_v47, %v4629_v59 }
0x1af2   :  { %v4669_v4 = vmul.f32 %v4627_v45, %v7324_v5 }
0x1af3   :  { %v4631_v13 = vmul.f32 0.5, %v4630_v35 }
0x1af4   :  { %v4678_v7 = vmul.f32 %v7357_v37, %v4669_v4 }
0x1af5   :  { %v4632_v33 = vsub.f32 1.5, %v4631_v13 }
0x1af6   :  { %v4687_v1 = vadd.f32 %v7360_v38, %v4678_v7 }
0x1af7   :  { %v4633_v30 = vmul.f32 %v5592_v47, %v4632_v33 }
0x1af8   :  { %5173 = vmatmul.msk.f32.gmra.mxu3 %vm635_vm7, %v4687_v1 }
0x1af9   :  { %v4637_v49 = vsel %vm4636_vm14, %v5592_v47, %v4633_v30 }
0x1afa   :  { %v4670_v44 = vmul.f32 %v4637_v49, %v7330_v60 }
0x1afc   :  { %v4679_v42 = vmul.f32 %v7357_v37, %v4670_v44 }
0x1afe   :  { %v4688_v28 = vadd.f32 %v7360_v38, %v4679_v42 }
0x1b00   :  { %5174 = vmatmul.msk.f32.gmra.mxu3 %vm635_vm7, %v4688_v28 }
0x1b0f   :  { %v4589_v5 = vpop.xlane.xlu2 %4588 }
0x1b10   :  { %v4599_v60 = vmul.f32 %v4589_v5, %v6403_v52 }
0x1b12   :  { %v4605_v57 = vadd.f32 1e-05, %v4599_v60 }
0x1b14   :  { %5593 = vrsqrt.f32 %v4605_v57  ;;  %vm4644_vm12 = vweird.f32 %v4605_v57 }
0x1b17   :  { %v4592_v29 = vpop.xlane.xlu1 %4591 }
0x1b18   :  { %v4600_v58 = vmul.f32 %v4592_v29, %v6403_v52 }
0x1b1a   :  { %v5594_v15 = vpop.eup %5593  ;;  %v4606_v17 = vadd.f32 1e-05, %v4600_v58 }
0x1b1b   :  { %v4639_v61 = vmul.f32 %v5594_v15, %v4605_v57  ;;  %vm4645_vm0 = vweird.f32 %v5594_v15 }
0x1b1c   :  { %5595 = vrsqrt.f32 %v4606_v17  ;;  %vm4646_vm15 = vmor %vm4644_vm12, %vm4645_vm0  ;;  %vm4654_vm2 = vweird.f32 %v4606_v17 }
0x1b1d   :  { %v4640_v21 = vmul.f32 %v5594_v15, %v4639_v61 }
0x1b1f   :  { %v4641_v46 = vmul.f32 0.5, %v4640_v21 }
0x1b21   :  { %v4642_v16 = vsub.f32 1.5, %v4641_v46 }
0x1b22   :  { %v5596_v34 = vpop.eup %5595 }
0x1b23   :  { %v4643_v2 = vmul.f32 %v5594_v15, %v4642_v16  ;;  %v4649_v50 = vmul.f32 %v5596_v34, %v4606_v17  ;;  %vm4655_vm1 = vweird.f32 %v5596_v34 }
0x1b24   :  { %vm4656_vm3 = vmor %vm4654_vm2, %vm4655_vm1 }
0x1b25   :  { %v4647_v54 = vsel %vm4646_vm15, %v5594_v15, %v4643_v2  ;;  %v4650_v8 = vmul.f32 %v5596_v34, %v4649_v50 }
0x1b26   :  { %v4671_v20 = vmul.f32 %v4647_v54, %v7339_v19 }
0x1b27   :  { %v4651_v43 = vmul.f32 0.5, %v4650_v8 }
0x1b28   :  { %v4680_v12 = vmul.f32 %v7357_v37, %v4671_v20 }
0x1b29   :  { %v4652_v32 = vsub.f32 1.5, %v4651_v43 }
0x1b2a   :  { %v4689_v53 = vadd.f32 %v7360_v38, %v4680_v12 }
0x1b2b   :  { %v4653_v55 = vmul.f32 %v5596_v34, %v4652_v32 }
0x1b2c   :  { %5175 = vmatmul.msk.f32.gmra.mxu3 %vm635_vm7, %v4689_v53 }
0x1b2d   :  { %v4657_v40 = vsel %vm4656_vm3, %v5596_v34, %v4653_v55 }
0x1b2e   :  { %v4672_v19 = vmul.f32 %v4657_v40, %v7345_v56 }
0x1b30   :  { %v4681_v3 = vmul.f32 %v7357_v37, %v4672_v19 }
0x1b32   :  { %v4690_v27 = vadd.f32 %v7360_v38, %v4681_v3 }
0x1b34   :  { %5176 = vmatmul.msk.f32.gmra.mxu3 %vm635_vm7, %v4690_v27 }
0x1b44   :  { %v4735_v24 = vpop.f32.mrf.mxu3 }
0x1b45   :  { %v4736_v11 = vadd.f32 %v5339_v41, %v4735_v24 }
0x1b47   :  { %v4753_v31 = vmax.f32 %v4736_v11, 0.0 }
0x1b49   :  { %5178 = vmatmul.msk.f32.vlgmr.msra.gmra.mxu0 %vm2529_vm11, %v4753_v31 }
0x1b4e   :  { %v4595_v63 = vpop.xlane.xlu0 %4594 }
0x1b4f   :  { %v4601_v51 = vmul.f32 %v4595_v63, %v6403_v52 }
0x1b51   :  { %v4607_v25 = vadd.f32 1e-05, %v4601_v51 }
0x1b53   :  { %5597 = vrsqrt.f32 %v4607_v25  ;;  %vm4664_vm5 = vweird.f32 %v4607_v25 }
0x1b59   :  { %v5598_v22 = vpop.eup %5597 }
0x1b5a   :  { %v4659_v18 = vmul.f32 %v5598_v22, %v4607_v25  ;;  %vm4665_vm4 = vweird.f32 %v5598_v22 }
0x1b5b   :  { %vm4666_vm6 = vmor %vm4664_vm5, %vm4665_vm4 }
0x1b5c   :  { %v4660_v56 = vmul.f32 %v5598_v22, %v4659_v18 }
0x1b5e   :  { %v4661_v36 = vmul.f32 0.5, %v4660_v56 }
0x1b60   :  { %v4662_v47 = vsub.f32 1.5, %v4661_v36 }
0x1b62   :  { %v4663_v0 = vmul.f32 %v5598_v22, %v4662_v47 }
0x1b64   :  { %v4667_v59 = vsel %vm4666_vm6, %v5598_v22, %v4663_v0 }
0x1b65   :  { %v4673_v45 = vmul.f32 %v4667_v59, %v7366_v14 }
0x1b67   :  { %v4682_v35 = vmul.f32 %v7357_v37, %v4673_v45 }
0x1b69   :  { %v4691_v4 = vadd.f32 %v7360_v38, %v4682_v35 }
0x1b6b   :  { %5177 = vmatmul.msk.f32.gmra.mxu3 %vm635_vm7, %v4691_v4  ;;  %vm4820_vm7 = vcmask 385024  }
0x1b7b   :  { %v4738_v52 = vpop.f32.mrf.mxu3 }
0x1b7c   :  { %v4739_v13 = vadd.f32 %v5339_v41, %v4738_v52 }
0x1b7e   :  { %v4754_v7 = vmax.f32 %v4739_v13, 0.0 }
0x1b80   :  { %5179 = vmatmul.msk.f32.gmra.mxu0 %vm2529_vm11, %v4754_v7 }
0x1b83   :  { %v4741_v33 = vpop.f32.mrf.mxu3 }
0x1b84   :  { %v4742_v1 = vadd.f32 %v5339_v41, %v4741_v33 }
0x1b86   :  { %v4755_v30 = vmax.f32 %v4742_v1, 0.0 }
0x1b88   :  { %5180 = vmatmul.msk.f32.gmra.mxu0 %vm2529_vm11, %v4755_v30 }
0x1baf   :  { %v4744_v37 = vpop.f32.mrf.mxu3 }
0x1bb0   :  { %v4745_v14 = vadd.f32 %v5339_v41, %v4744_v37 }
0x1bb2   :  { %v4756_v38 = vmax.f32 %v4745_v14, 0.0 }
0x1bb4   :  { %5181 = vmatmul.msk.f32.gmra.mxu0 %vm2529_vm11, %v4756_v38 }
0x1bb7   :  { %v4747_v49 = vpop.f32.mrf.mxu3 }
0x1bb8   :  { %v4748_v44 = vadd.f32 %v5339_v41, %v4747_v49 }
0x1bba   :  { %v4757_v42 = vmax.f32 %v4748_v44, 0.0 }
0x1bbc   :  { %5182 = vmatmul.msk.f32.gmra.mxu0 %vm2529_vm11, %v4757_v42 }
0x1bc6   :  { %v4806_v28 = vpop.f32.mrf.mxu0 }
0x1bee   :  { %v4750_v5 = vpop.f32.mrf.mxu3 }
0x1bef   :  { %v4751_v60 = vadd.f32 %v5339_v41, %v4750_v5 }
0x1bf1   :  { %v4758_v57 = vmax.f32 %v4751_v60, 0.0 }
0x1bf3   :  { %5183 = vmatmul.msk.f32.gmra.mxu0 %vm2529_vm11, %v4758_v57 }
0x1bfd   :  { %v4808_v39 = vpop.f32.mrf.mxu0 }
0x1c05   :  { %v4810_v9 = vpop.f32.mrf.mxu0 }
0x1c06   :  { %v4811_v29 = vadd.f32 %v5340_v6, %v4810_v9 }
0x1c08   :  { %4821 = vst.msk [vmem:[%s4860_s13] sm:$0x1] %vm4820_vm7, %v4811_v29 }
0x1c31   :  { %v4813_v58 = vpop.f32.mrf.mxu0 }
0x1c39   :  { %v4815_v48 = vpop.f32.mrf.mxu0 }
0x1c70   :  { %v4817_v15 = vpop.f32.mrf.mxu0 }
0x1c71   :  { %v4818_v17 = vadd.f32 %v5340_v6, %v4817_v15 }
0x1c73   :  { %4822 = vst.msk [vmem:[%s4860_s13 + $0x1] sm:$0x1] %vm4820_vm7, %v4818_v17 }

</bundles_post_ra>
